<compile_context>
chip_gen: v6e
topology: v6e:2x2x1
jax: 0.10.0
libtpu: 0.0.40
codegen_flags: <defaults>
</compile_context>

<pallas_src>
import functools
import math

import jax
import jax.numpy as jnp
from jax import lax
from jax.experimental import pallas as pl
from jax.experimental.pallas import tpu as pltpu


# ----------------------------- Pallas kernel ------------------------------ #
def _gather_rel(pos, idx, impl):
    """Return pos[i, idx[i, c]] (idx holds clipped relative offsets).

    impl == "gather": one XLU lane-gather (jnp.take_along_axis) — the fast path.
    impl == "select": masked-select fallback, only used if lane-gather fails to
    lower on this Mosaic build.  Out-of-band entries are garbage either way and
    are overwritten by the band mask before softmax.
    """
    if impl == "gather":
        return jnp.take_along_axis(pos, idx, axis=-1, mode="promise_in_bounds")
    out = jnp.zeros(idx.shape, pos.dtype)
    for j in range(pos.shape[-1]):
        out = out + jnp.where(idx == j, pos[:, j:j + 1], 0.0)
    return out


def _fsa_kernel(h_ref, wq_ref, wk_ref, wv_ref, wo_ref, pe_ref,
                g1_ref, b1_ref, w1_ref, bf1_ref, w2_ref, bf2_ref,
                g2_ref, b2_ref, o_ref, *, skew_impl, matmul_dtype):
    h = h_ref[0].astype(jnp.float32)                 # (M, H)
    M, H = h.shape
    D, SPAN = pe_ref.shape                           # head_dim, attn_span
    K = H // D                                       # nb_heads
    scale = 1.0 / math.sqrt(D)
    cd = matmul_dtype

    hm = h.astype(cd)
    # Projections (proj_query / proj_key / proj_val are bias-free).
    # 1/sqrt(D) is folded into q once -> content AND positional logits pre-scaled.
    q = jnp.dot(hm, wq_ref[...].astype(cd), preferred_element_type=jnp.float32) * scale
    k = jnp.dot(hm, wk_ref[...].astype(cd), preferred_element_type=jnp.float32)
    v = jnp.dot(hm, wv_ref[...].astype(cd), preferred_element_type=jnp.float32)
    pe = pe_ref[...].astype(cd)                      # (D, SPAN)

    # Band geometry, head-independent -> hoisted out of the head loop.
    # torch's key axis is [SPAN zero-cache rows | M real rows]; the zero rows are
    # never materialized here: cache columns only carry the positional term and
    # P @ V runs over the M real keys only.
    i_c = lax.broadcasted_iota(jnp.int32, (M, SPAN), 0)       # query index
    c_c = lax.broadcasted_iota(jnp.int32, (M, SPAN), 1)       # cache column (abs pos c)
    mask_cache = c_c >= i_c                                   # rel = c - i in [0, SPAN)
    idx_cache = jnp.clip(c_c - i_c, 0, SPAN - 1)

    i_r = lax.broadcasted_iota(jnp.int32, (M, M), 0)          # query index
    n_r = lax.broadcasted_iota(jnp.int32, (M, M), 1)          # real key index (abs SPAN+n)
    mask_real = jnp.logical_and(n_r < i_r, n_r >= i_r - SPAN) # strictly previous tokens
    idx_real = jnp.clip(SPAN + n_r - i_r, 0, SPAN - 1)

    neg = jnp.float32(-1e30)

    heads = []
    # TODO(synk): for large K this static loop should become a head grid axis or a
    # batched (K, M, D) einsum to bound vreg live ranges.
    for kh in range(K):
        sl = slice(kh * D, (kh + 1) * D)
        qh = q[:, sl]                                          # (M, D), already scaled
        kk = k[:, sl].astype(cd)                               # (M, D)
        vv = v[:, sl].astype(cd)                               # (M, D)

        # Content scores only against the M real keys (zero-cache rows contribute 0).
        s = lax.dot_general(qh.astype(cd), kk, (((1,), (1,)), ((), ())),
                            preferred_element_type=jnp.float32)          # (M, M)
        # Positional logits per relative offset, then skewed onto key columns.
        pos = jnp.dot(qh.astype(cd), pe, preferred_element_type=jnp.float32)  # (M, SPAN)

        lg_cache = jnp.where(mask_cache, _gather_rel(pos, idx_cache, skew_impl), neg)
        lg_real = jnp.where(mask_real, s + _gather_rel(pos, idx_real, skew_impl), neg)

        mx = jnp.maximum(jnp.max(lg_cache, axis=-1, keepdims=True),
                         jnp.max(lg_real, axis=-1, keepdims=True))
        e_c = jnp.exp(lg_cache - mx)
        e_r = jnp.exp(lg_real - mx)
        denom = jnp.sum(e_c, axis=-1, keepdims=True) + jnp.sum(e_r, axis=-1, keepdims=True)
        p = e_r * pl.reciprocal(denom, approx=True)            # cache cols hit zero V

        heads.append(jnp.dot(p.astype(cd), vv,
                             preferred_element_type=jnp.float32))          # (M, D)

    # Single (M, H) @ (H, H) proj_out matmul on the concatenated heads.
    attn = jnp.concatenate(heads, axis=-1)                     # (M, H)
    attn_out = jnp.dot(attn.astype(cd), wo_ref[...].astype(cd),
                       preferred_element_type=jnp.float32)

    def layer_norm(x, g, b):
        mu = jnp.mean(x, axis=-1, keepdims=True)
        var = jnp.mean((x - mu) ** 2, axis=-1, keepdims=True)
        return (x - mu) * lax.rsqrt(var + 1e-5) * g + b

    h1 = layer_norm(h + attn_out, g1_ref[...], b1_ref[...])    # (M, H) f32

    # FeedForwardLayer (dropout is identity in eval mode).
    f = jnp.dot(h1.astype(cd), w1_ref[...].astype(cd),
                preferred_element_type=jnp.float32) + bf1_ref[...]
    f = jnp.maximum(f, 0.0)
    f = jnp.dot(f.astype(cd), w2_ref[...].astype(cd),
                preferred_element_type=jnp.float32) + bf2_ref[...]

    out = layer_norm(h1 + f, g2_ref[...], b2_ref[...])
    o_ref[0] = out.astype(o_ref.dtype)


def fsa_layer_pallas(h, params, *, matmul_dtype=jnp.float32):
    B, M, H = h.shape
    names = ('wq', 'wk', 'wv', 'wo', 'key_pe',
             'g1', 'b1', 'w1', 'bf1', 'w2', 'bf2', 'g2', 'b2')
    weights = [params[n] for n in names]

    in_specs = [pl.BlockSpec((1, M, H), lambda b: (b, 0, 0))]
    in_specs += [pl.BlockSpec(w.shape, lambda b: (0, 0)) for w in weights]
    out_specs = pl.BlockSpec((1, M, H), lambda b: (b, 0, 0))

    def build(skew_impl):
        kernel = functools.partial(_fsa_kernel, skew_impl=skew_impl,
                                   matmul_dtype=matmul_dtype)
        return pl.pallas_call(
            kernel,
            out_shape=jax.ShapeDtypeStruct((B, M, H), h.dtype),
            grid_spec=pltpu.PrefetchScalarGridSpec(
                num_scalar_prefetch=0,
                grid=(B,),
                in_specs=in_specs,
                out_specs=out_specs),
            compiler_params=pltpu.CompilerParams(
                dimension_semantics=("parallel",),
                vmem_limit_bytes=48 * 1024 * 1024),
        )

    try:
        # Fast path: take_along_axis lane-gather for the positional skew.
        return jax.block_until_ready(build("gather")(h, *weights))
    except Exception:
        # Safety net for Mosaic builds without lane-gather lowering.
        return build("select")(h, *weights)


# --------------------- pure-JAX reference (torch semantics) ---------------- #
def _skew_jnp(x, pad_value):
    b, m, l = x.shape
    x = jnp.pad(x, ((0, 0), (0, 0), (0, m + 1)), constant_values=pad_value)
    x = x.reshape(b, -1)[:, :-m]
    return x.reshape(b, m, m + l)


def _unskew_jnp(x):
    b, m, l = x.shape
    lr = l - m
    x = x.reshape(b, -1)
    x = jnp.pad(x, ((0, 0), (0, m)))
    x = x.reshape(b, m, m + lr + 1)
    return x[:, :, :lr]


def ref_forward(h, p):
    hi = lax.Precision.HIGHEST
    B, M, H = h.shape
    D, SPAN = p['key_pe'].shape
    K = H // D

    h_all = jnp.concatenate([jnp.zeros((B, SPAN, H), h.dtype), h], axis=1)
    q = jnp.dot(h, p['wq'], precision=hi)
    k = jnp.dot(h_all, p['wk'], precision=hi)
    v = jnp.dot(h_all, p['wv'], precision=hi)

    def heads(x):
        b, t, _ = x.shape
        return x.reshape(b, t, K, D).transpose(0, 2, 1, 3).reshape(b * K, t, D)

    q, k, v = heads(q), heads(k), heads(v)
    s = jnp.einsum('bmd,bld->bml', q, k, precision=hi)
    attn_cont = _unskew_jnp(s)                                   # (BK, M, SPAN)
    pos = jnp.einsum('bmd,ds->bms', q, p['key_pe'], precision=hi)
    attn = (attn_cont + pos) / math.sqrt(D)
    attn = jax.nn.softmax(attn, axis=-1)
    attn_full = _skew_jnp(attn, 0.0)                             # (BK, M, M+SPAN)
    out = jnp.einsum('bml,bld->bmd', attn_full, v, precision=hi)
    out = out.reshape(B, K, M, D).transpose(0, 2, 1, 3).reshape(B, M, H)
    out = jnp.dot(out, p['wo'], precision=hi)

    def ln(x, g, b):
        mu = x.mean(-1, keepdims=True)
        var = ((x - mu) ** 2).mean(-1, keepdims=True)
        return (x - mu) / jnp.sqrt(var + 1e-5) * g + b

    h1 = ln(h + out, p['g1'], p['b1'])
    f = jnp.maximum(jnp.dot(h1, p['w1'], precision=hi) + p['bf1'], 0.0)
    f = jnp.dot(f, p['w2'], precision=hi) + p['bf2']
    return ln(h1 + f, p['g2'], p['b2'])


# ----------------------------------- main ---------------------------------- #
if __name__ == "__main__":
    B, M, H = 2, 8, 32            # batch, seq, hidden
    K, SPAN, INNER = 4, 8, 64     # nb_heads, attn_span, inner_hidden_size
    D = H // K
    sc = 0.1

    key = jax.random.PRNGKey(0)
    ks = jax.random.split(key, 12)

    h = jax.random.normal(ks[0], (B, M, H), jnp.float32)
    params = {
        'wq': jax.random.normal(ks[1], (H, H), jnp.float32) * sc,
        'wk': jax.random.normal(ks[2], (H, H), jnp.float32) * sc,
        'wv': jax.random.normal(ks[3], (H, H), jnp.float32) * sc,
        'wo': jax.random.normal(ks[4], (H, H), jnp.float32) * sc,
        'key_pe': jax.random.normal(ks[5], (D, SPAN), jnp.float32),   # torch: (1, D, span)
        'g1': 1.0 + 0.1 * jax.random.normal(ks[6], (1, H), jnp.float32),
        'b1': 0.1 * jax.random.normal(ks[7], (1, H), jnp.float32),
        'w1': jax.random.normal(ks[8], (H, INNER), jnp.float32) * sc,
        'bf1': 0.1 * jax.random.normal(ks[9], (1, INNER), jnp.float32),
        'w2': jax.random.normal(ks[10], (INNER, H), jnp.float32) * sc,
        'bf2': 0.1 * jax.random.normal(ks[11], (1, H), jnp.float32),
        'g2': jnp.ones((1, H), jnp.float32),
        'b2': jnp.zeros((1, H), jnp.float32),
    }
    # TODO(synk): dropout is modeled as eval-mode identity (no in-kernel PRNG masking).
    # TODO(synk): h_cache is assumed to be the all-zero cache the module allocates in
    # forward(); a nonzero rolling cache would need to be passed as an extra input.

    out = fsa_layer_pallas(h, params)          # f32 matmuls; pass matmul_dtype=jnp.bfloat16
    out = jax.block_until_ready(out)           # to trade accuracy for 2x MXU throughput.

    ref = ref_forward(h, params)
    assert out.shape == (B, M, H)
    if not jnp.allclose(out, ref, rtol=3e-3, atol=3e-3):
        raise AssertionError(
            f"mismatch: max abs err {float(jnp.max(jnp.abs(out - ref)))}")

    print("KERNEL_OK")
</pallas_src>

<mosaic_0001>
module attributes {stable_mosaic.version = 11 : i64} {
  func.func @_fsa_kernel(%arg0: i32, %arg1: memref<1x8x32xf32, #tpu.memory_space<vmem>>, %arg2: memref<32x32xf32, #tpu.memory_space<vmem>>, %arg3: memref<32x32xf32, #tpu.memory_space<vmem>>, %arg4: memref<32x32xf32, #tpu.memory_space<vmem>>, %arg5: memref<32x32xf32, #tpu.memory_space<vmem>>, %arg6: memref<8x8xf32, #tpu.memory_space<vmem>>, %arg7: memref<1x32xf32, #tpu.memory_space<vmem>>, %arg8: memref<1x32xf32, #tpu.memory_space<vmem>>, %arg9: memref<32x64xf32, #tpu.memory_space<vmem>>, %arg10: memref<1x64xf32, #tpu.memory_space<vmem>>, %arg11: memref<64x32xf32, #tpu.memory_space<vmem>>, %arg12: memref<1x32xf32, #tpu.memory_space<vmem>>, %arg13: memref<1x32xf32, #tpu.memory_space<vmem>>, %arg14: memref<1x32xf32, #tpu.memory_space<vmem>>, %arg15: memref<1x8x32xf32, #tpu.memory_space<vmem>>) attributes {dimension_semantics = [#tpu.dimension_semantics<parallel>], iteration_bounds = array<i64: 2>, scalar_prefetch = 0 : i64, scratch_operands = 0 : i64, tpu.core_type = #tpu.core_type<tc>, window_params = [{transform_indices = @transform_0, window_bounds = array<i64: 1, 8, 32>}, {pipeline_mode = #tpu.pipeline_mode<synchronous>, transform_indices = @transform_1, window_bounds = array<i64: 32, 32>}, {pipeline_mode = #tpu.pipeline_mode<synchronous>, transform_indices = @transform_2, window_bounds = array<i64: 32, 32>}, {pipeline_mode = #tpu.pipeline_mode<synchronous>, transform_indices = @transform_3, window_bounds = array<i64: 32, 32>}, {pipeline_mode = #tpu.pipeline_mode<synchronous>, transform_indices = @transform_4, window_bounds = array<i64: 32, 32>}, {pipeline_mode = #tpu.pipeline_mode<synchronous>, transform_indices = @transform_5, window_bounds = array<i64: 8, 8>}, {pipeline_mode = #tpu.pipeline_mode<synchronous>, transform_indices = @transform_6, window_bounds = array<i64: 1, 32>}, {pipeline_mode = #tpu.pipeline_mode<synchronous>, transform_indices = @transform_7, window_bounds = array<i64: 1, 32>}, {pipeline_mode = #tpu.pipeline_mode<synchronous>, transform_indices = @transform_8, window_bounds = array<i64: 32, 64>}, {pipeline_mode = #tpu.pipeline_mode<synchronous>, transform_indices = @transform_9, window_bounds = array<i64: 1, 64>}, {pipeline_mode = #tpu.pipeline_mode<synchronous>, transform_indices = @transform_10, window_bounds = array<i64: 64, 32>}, {pipeline_mode = #tpu.pipeline_mode<synchronous>, transform_indices = @transform_11, window_bounds = array<i64: 1, 32>}, {pipeline_mode = #tpu.pipeline_mode<synchronous>, transform_indices = @transform_12, window_bounds = array<i64: 1, 32>}, {pipeline_mode = #tpu.pipeline_mode<synchronous>, transform_indices = @transform_13, window_bounds = array<i64: 1, 32>}, {transform_indices = @transform_14, window_bounds = array<i64: 1, 8, 32>}]} {
    %c0 = arith.constant 0 : index
    %c0_0 = arith.constant 0 : index
    %c0_1 = arith.constant 0 : index
    %0 = vector.load %arg1[%c0, %c0_0, %c0_1] : memref<1x8x32xf32, #tpu.memory_space<vmem>>, vector<1x8x32xf32>
    %1 = vector.shape_cast %0 : vector<1x8x32xf32> to vector<8x32xf32>
    %c0_2 = arith.constant 0 : index
    %c0_3 = arith.constant 0 : index
    %2 = vector.load %arg2[%c0_2, %c0_3] : memref<32x32xf32, #tpu.memory_space<vmem>>, vector<32x32xf32>
    %cst = arith.constant dense<0.000000e+00> : vector<8x32xf32>
    %3 = tpu.matmul %1, %2, %cst {dimension_numbers = #tpu.dot_dimension_numbers<[1], [0], [0], [1], [0, 0, 1, 1], [], []>} : vector<8x32xf32>, vector<32x32xf32>, vector<8x32xf32> -> vector<8x32xf32>
    %cst_4 = arith.constant 0.353553385 : f32
    %4 = vector.broadcast %cst_4 : f32 to vector<8x32xf32>
    %5 = arith.mulf %3, %4 : vector<8x32xf32>
    %c0_5 = arith.constant 0 : index
    %c0_6 = arith.constant 0 : index
    %6 = vector.load %arg3[%c0_5, %c0_6] : memref<32x32xf32, #tpu.memory_space<vmem>>, vector<32x32xf32>
    %cst_7 = arith.constant dense<0.000000e+00> : vector<8x32xf32>
    %7 = tpu.matmul %1, %6, %cst_7 {dimension_numbers = #tpu.dot_dimension_numbers<[1], [0], [0], [1], [0, 0, 1, 1], [], []>} : vector<8x32xf32>, vector<32x32xf32>, vector<8x32xf32> -> vector<8x32xf32>
    %c0_8 = arith.constant 0 : index
    %c0_9 = arith.constant 0 : index
    %8 = vector.load %arg4[%c0_8, %c0_9] : memref<32x32xf32, #tpu.memory_space<vmem>>, vector<32x32xf32>
    %cst_10 = arith.constant dense<0.000000e+00> : vector<8x32xf32>
    %9 = tpu.matmul %1, %8, %cst_10 {dimension_numbers = #tpu.dot_dimension_numbers<[1], [0], [0], [1], [0, 0, 1, 1], [], []>} : vector<8x32xf32>, vector<32x32xf32>, vector<8x32xf32> -> vector<8x32xf32>
    %c0_11 = arith.constant 0 : index
    %c0_12 = arith.constant 0 : index
    %10 = vector.load %arg6[%c0_11, %c0_12] : memref<8x8xf32, #tpu.memory_space<vmem>>, vector<8x8xf32>
    %11 = tpu.iota {dimensions = array<i32: 0>} : vector<8x8xi32>
    %12 = tpu.iota {dimensions = array<i32: 1>} : vector<8x8xi32>
    %13 = arith.cmpi sge, %12, %11 : vector<8x8xi32>
    %14 = arith.subi %12, %11 : vector<8x8xi32>
    %c0_i32 = arith.constant 0 : i32
    %c7_i32 = arith.constant 7 : i32
    %15 = vector.broadcast %c0_i32 : i32 to vector<8x8xi32>
    %16 = arith.maxsi %15, %14 : vector<8x8xi32>
    %17 = vector.broadcast %c7_i32 : i32 to vector<8x8xi32>
    %18 = arith.minsi %17, %16 : vector<8x8xi32>
    %19 = tpu.iota {dimensions = array<i32: 0>} : vector<8x8xi32>
    %20 = tpu.iota {dimensions = array<i32: 1>} : vector<8x8xi32>
    %21 = arith.cmpi slt, %20, %19 : vector<8x8xi32>
    %c8_i32 = arith.constant 8 : i32
    %22 = vector.broadcast %c8_i32 : i32 to vector<8x8xi32>
    %23 = arith.subi %19, %22 : vector<8x8xi32>
    %24 = arith.cmpi sge, %20, %23 : vector<8x8xi32>
    %25 = arith.andi %21, %24 : vector<8x8xi1>
    %c8_i32_13 = arith.constant 8 : i32
    %26 = vector.broadcast %c8_i32_13 : i32 to vector<8x8xi32>
    %27 = arith.addi %26, %20 : vector<8x8xi32>
    %28 = arith.subi %27, %19 : vector<8x8xi32>
    %c0_i32_14 = arith.constant 0 : i32
    %c7_i32_15 = arith.constant 7 : i32
    %29 = vector.broadcast %c0_i32_14 : i32 to vector<8x8xi32>
    %30 = arith.maxsi %29, %28 : vector<8x8xi32>
    %31 = vector.broadcast %c7_i32_15 : i32 to vector<8x8xi32>
    %32 = arith.minsi %31, %30 : vector<8x8xi32>
    %33 = vector.extract_strided_slice %5 {offsets = [0, 0], sizes = [8, 8], strides = [1, 1]} : vector<8x32xf32> to vector<8x8xf32>
    %34 = vector.extract_strided_slice %7 {offsets = [0, 0], sizes = [8, 8], strides = [1, 1]} : vector<8x32xf32> to vector<8x8xf32>
    %35 = vector.extract_strided_slice %9 {offsets = [0, 0], sizes = [8, 8], strides = [1, 1]} : vector<8x32xf32> to vector<8x8xf32>
    %cst_16 = arith.constant dense<0.000000e+00> : vector<8x8xf32>
    %36 = tpu.matmul %33, %34, %cst_16 {dimension_numbers = #tpu.dot_dimension_numbers<[1], [1], [0], [0], [0, 0, 1, 0], [], []>} : vector<8x8xf32>, vector<8x8xf32>, vector<8x8xf32> -> vector<8x8xf32>
    %cst_17 = arith.constant dense<0.000000e+00> : vector<8x8xf32>
    %37 = tpu.matmul %33, %10, %cst_17 {dimension_numbers = #tpu.dot_dimension_numbers<[1], [0], [0], [1], [0, 0, 1, 1], [], []>} : vector<8x8xf32>, vector<8x8xf32>, vector<8x8xf32> -> vector<8x8xf32>
    %38 = vector.shape_cast %18 : vector<8x8xi32> to vector<8x8x1xi32>
    %39 = vector.shape_cast %38 : vector<8x8x1xi32> to vector<8x8xi32>
    %40 = tpu.dynamic_gather %37[%39] in [1] : vector<8x8xf32>, vector<8x8xi32> -> vector<8x8xf32>
    %cst_18 = arith.constant -1.000000e+30 : f32
    %41 = vector.broadcast %cst_18 : f32 to vector<8x8xf32>
    %42 = arith.select %13, %40, %41 : vector<8x8xi1>, vector<8x8xf32>
    %43 = vector.shape_cast %32 : vector<8x8xi32> to vector<8x8x1xi32>
    %44 = vector.shape_cast %43 : vector<8x8x1xi32> to vector<8x8xi32>
    %45 = tpu.dynamic_gather %37[%44] in [1] : vector<8x8xf32>, vector<8x8xi32> -> vector<8x8xf32>
    %46 = arith.addf %36, %45 : vector<8x8xf32>
    %cst_19 = arith.constant -1.000000e+30 : f32
    %47 = vector.broadcast %cst_19 : f32 to vector<8x8xf32>
    %48 = arith.select %25, %46, %47 : vector<8x8xi1>, vector<8x8xf32>
    %cst_20 = arith.constant dense<0xFF800000> : vector<8xf32>
    %49 = vector.multi_reduction <maximumf>, %42, %cst_20 [1] : vector<8x8xf32> to vector<8xf32>
    %50 = vector.shape_cast %49 : vector<8xf32> to vector<8x1xf32>
    %cst_21 = arith.constant dense<0xFF800000> : vector<8xf32>
    %51 = vector.multi_reduction <maximumf>, %48, %cst_21 [1] : vector<8x8xf32> to vector<8xf32>
    %52 = vector.shape_cast %51 : vector<8xf32> to vector<8x1xf32>
    %53 = arith.maximumf %50, %52 : vector<8x1xf32>
    %54 = vector.broadcast %53 : vector<8x1xf32> to vector<8x8xf32>
    %55 = arith.subf %42, %54 : vector<8x8xf32>
    %56 = math.exp %55 : vector<8x8xf32>
    %57 = vector.broadcast %53 : vector<8x1xf32> to vector<8x8xf32>
    %58 = arith.subf %48, %57 : vector<8x8xf32>
    %59 = math.exp %58 : vector<8x8xf32>
    %cst_22 = arith.constant dense<0.000000e+00> : vector<8xf32>
    %60 = vector.multi_reduction <add>, %56, %cst_22 [1] : vector<8x8xf32> to vector<8xf32>
    %61 = vector.shape_cast %60 : vector<8xf32> to vector<8x1xf32>
    %cst_23 = arith.constant dense<0.000000e+00> : vector<8xf32>
    %62 = vector.multi_reduction <add>, %59, %cst_23 [1] : vector<8x8xf32> to vector<8xf32>
    %63 = vector.shape_cast %62 : vector<8xf32> to vector<8x1xf32>
    %64 = arith.addf %61, %63 : vector<8x1xf32>
    %65 = tpu.reciprocal %64 {approx = true} : vector<8x1xf32> -> vector<8x1xf32>
    %66 = vector.broadcast %65 : vector<8x1xf32> to vector<8x8xf32>
    %67 = arith.mulf %59, %66 : vector<8x8xf32>
    %cst_24 = arith.constant dense<0.000000e+00> : vector<8x8xf32>
    %68 = tpu.matmul %67, %35, %cst_24 {dimension_numbers = #tpu.dot_dimension_numbers<[1], [0], [0], [1], [0, 0, 1, 1], [], []>} : vector<8x8xf32>, vector<8x8xf32>, vector<8x8xf32> -> vector<8x8xf32>
    %69 = vector.extract_strided_slice %5 {offsets = [0, 8], sizes = [8, 8], strides = [1, 1]} : vector<8x32xf32> to vector<8x8xf32>
    %70 = vector.extract_strided_slice %7 {offsets = [0, 8], sizes = [8, 8], strides = [1, 1]} : vector<8x32xf32> to vector<8x8xf32>
    %71 = vector.extract_strided_slice %9 {offsets = [0, 8], sizes = [8, 8], strides = [1, 1]} : vector<8x32xf32> to vector<8x8xf32>
    %cst_25 = arith.constant dense<0.000000e+00> : vector<8x8xf32>
    %72 = tpu.matmul %69, %70, %cst_25 {dimension_numbers = #tpu.dot_dimension_numbers<[1], [1], [0], [0], [0, 0, 1, 0], [], []>} : vector<8x8xf32>, vector<8x8xf32>, vector<8x8xf32> -> vector<8x8xf32>
    %cst_26 = arith.constant dense<0.000000e+00> : vector<8x8xf32>
    %73 = tpu.matmul %69, %10, %cst_26 {dimension_numbers = #tpu.dot_dimension_numbers<[1], [0], [0], [1], [0, 0, 1, 1], [], []>} : vector<8x8xf32>, vector<8x8xf32>, vector<8x8xf32> -> vector<8x8xf32>
    %74 = vector.shape_cast %18 : vector<8x8xi32> to vector<8x8x1xi32>
    %75 = vector.shape_cast %74 : vector<8x8x1xi32> to vector<8x8xi32>
    %76 = tpu.dynamic_gather %73[%75] in [1] : vector<8x8xf32>, vector<8x8xi32> -> vector<8x8xf32>
    %cst_27 = arith.constant -1.000000e+30 : f32
    %77 = vector.broadcast %cst_27 : f32 to vector<8x8xf32>
    %78 = arith.select %13, %76, %77 : vector<8x8xi1>, vector<8x8xf32>
    %79 = vector.shape_cast %32 : vector<8x8xi32> to vector<8x8x1xi32>
    %80 = vector.shape_cast %79 : vector<8x8x1xi32> to vector<8x8xi32>
    %81 = tpu.dynamic_gather %73[%80] in [1] : vector<8x8xf32>, vector<8x8xi32> -> vector<8x8xf32>
    %82 = arith.addf %72, %81 : vector<8x8xf32>
    %cst_28 = arith.constant -1.000000e+30 : f32
    %83 = vector.broadcast %cst_28 : f32 to vector<8x8xf32>
    %84 = arith.select %25, %82, %83 : vector<8x8xi1>, vector<8x8xf32>
    %cst_29 = arith.constant dense<0xFF800000> : vector<8xf32>
    %85 = vector.multi_reduction <maximumf>, %78, %cst_29 [1] : vector<8x8xf32> to vector<8xf32>
    %86 = vector.shape_cast %85 : vector<8xf32> to vector<8x1xf32>
    %cst_30 = arith.constant dense<0xFF800000> : vector<8xf32>
    %87 = vector.multi_reduction <maximumf>, %84, %cst_30 [1] : vector<8x8xf32> to vector<8xf32>
    %88 = vector.shape_cast %87 : vector<8xf32> to vector<8x1xf32>
    %89 = arith.maximumf %86, %88 : vector<8x1xf32>
    %90 = vector.broadcast %89 : vector<8x1xf32> to vector<8x8xf32>
    %91 = arith.subf %78, %90 : vector<8x8xf32>
    %92 = math.exp %91 : vector<8x8xf32>
    %93 = vector.broadcast %89 : vector<8x1xf32> to vector<8x8xf32>
    %94 = arith.subf %84, %93 : vector<8x8xf32>
    %95 = math.exp %94 : vector<8x8xf32>
    %cst_31 = arith.constant dense<0.000000e+00> : vector<8xf32>
    %96 = vector.multi_reduction <add>, %92, %cst_31 [1] : vector<8x8xf32> to vector<8xf32>
    %97 = vector.shape_cast %96 : vector<8xf32> to vector<8x1xf32>
    %cst_32 = arith.constant dense<0.000000e+00> : vector<8xf32>
    %98 = vector.multi_reduction <add>, %95, %cst_32 [1] : vector<8x8xf32> to vector<8xf32>
    %99 = vector.shape_cast %98 : vector<8xf32> to vector<8x1xf32>
    %100 = arith.addf %97, %99 : vector<8x1xf32>
    %101 = tpu.reciprocal %100 {approx = true} : vector<8x1xf32> -> vector<8x1xf32>
    %102 = vector.broadcast %101 : vector<8x1xf32> to vector<8x8xf32>
    %103 = arith.mulf %95, %102 : vector<8x8xf32>
    %cst_33 = arith.constant dense<0.000000e+00> : vector<8x8xf32>
    %104 = tpu.matmul %103, %71, %cst_33 {dimension_numbers = #tpu.dot_dimension_numbers<[1], [0], [0], [1], [0, 0, 1, 1], [], []>} : vector<8x8xf32>, vector<8x8xf32>, vector<8x8xf32> -> vector<8x8xf32>
    %105 = vector.extract_strided_slice %5 {offsets = [0, 16], sizes = [8, 8], strides = [1, 1]} : vector<8x32xf32> to vector<8x8xf32>
    %106 = vector.extract_strided_slice %7 {offsets = [0, 16], sizes = [8, 8], strides = [1, 1]} : vector<8x32xf32> to vector<8x8xf32>
    %107 = vector.extract_strided_slice %9 {offsets = [0, 16], sizes = [8, 8], strides = [1, 1]} : vector<8x32xf32> to vector<8x8xf32>
    %cst_34 = arith.constant dense<0.000000e+00> : vector<8x8xf32>
    %108 = tpu.matmul %105, %106, %cst_34 {dimension_numbers = #tpu.dot_dimension_numbers<[1], [1], [0], [0], [0, 0, 1, 0], [], []>} : vector<8x8xf32>, vector<8x8xf32>, vector<8x8xf32> -> vector<8x8xf32>
    %cst_35 = arith.constant dense<0.000000e+00> : vector<8x8xf32>
    %109 = tpu.matmul %105, %10, %cst_35 {dimension_numbers = #tpu.dot_dimension_numbers<[1], [0], [0], [1], [0, 0, 1, 1], [], []>} : vector<8x8xf32>, vector<8x8xf32>, vector<8x8xf32> -> vector<8x8xf32>
    %110 = vector.shape_cast %18 : vector<8x8xi32> to vector<8x8x1xi32>
    %111 = vector.shape_cast %110 : vector<8x8x1xi32> to vector<8x8xi32>
    %112 = tpu.dynamic_gather %109[%111] in [1] : vector<8x8xf32>, vector<8x8xi32> -> vector<8x8xf32>
    %cst_36 = arith.constant -1.000000e+30 : f32
    %113 = vector.broadcast %cst_36 : f32 to vector<8x8xf32>
    %114 = arith.select %13, %112, %113 : vector<8x8xi1>, vector<8x8xf32>
    %115 = vector.shape_cast %32 : vector<8x8xi32> to vector<8x8x1xi32>
    %116 = vector.shape_cast %115 : vector<8x8x1xi32> to vector<8x8xi32>
    %117 = tpu.dynamic_gather %109[%116] in [1] : vector<8x8xf32>, vector<8x8xi32> -> vector<8x8xf32>
    %118 = arith.addf %108, %117 : vector<8x8xf32>
    %cst_37 = arith.constant -1.000000e+30 : f32
    %119 = vector.broadcast %cst_37 : f32 to vector<8x8xf32>
    %120 = arith.select %25, %118, %119 : vector<8x8xi1>, vector<8x8xf32>
    %cst_38 = arith.constant dense<0xFF800000> : vector<8xf32>
    %121 = vector.multi_reduction <maximumf>, %114, %cst_38 [1] : vector<8x8xf32> to vector<8xf32>
    %122 = vector.shape_cast %121 : vector<8xf32> to vector<8x1xf32>
    %cst_39 = arith.constant dense<0xFF800000> : vector<8xf32>
    %123 = vector.multi_reduction <maximumf>, %120, %cst_39 [1] : vector<8x8xf32> to vector<8xf32>
    %124 = vector.shape_cast %123 : vector<8xf32> to vector<8x1xf32>
    %125 = arith.maximumf %122, %124 : vector<8x1xf32>
    %126 = vector.broadcast %125 : vector<8x1xf32> to vector<8x8xf32>
    %127 = arith.subf %114, %126 : vector<8x8xf32>
    %128 = math.exp %127 : vector<8x8xf32>
    %129 = vector.broadcast %125 : vector<8x1xf32> to vector<8x8xf32>
    %130 = arith.subf %120, %129 : vector<8x8xf32>
    %131 = math.exp %130 : vector<8x8xf32>
    %cst_40 = arith.constant dense<0.000000e+00> : vector<8xf32>
    %132 = vector.multi_reduction <add>, %128, %cst_40 [1] : vector<8x8xf32> to vector<8xf32>
    %133 = vector.shape_cast %132 : vector<8xf32> to vector<8x1xf32>
    %cst_41 = arith.constant dense<0.000000e+00> : vector<8xf32>
    %134 = vector.multi_reduction <add>, %131, %cst_41 [1] : vector<8x8xf32> to vector<8xf32>
    %135 = vector.shape_cast %134 : vector<8xf32> to vector<8x1xf32>
    %136 = arith.addf %133, %135 : vector<8x1xf32>
    %137 = tpu.reciprocal %136 {approx = true} : vector<8x1xf32> -> vector<8x1xf32>
    %138 = vector.broadcast %137 : vector<8x1xf32> to vector<8x8xf32>
    %139 = arith.mulf %131, %138 : vector<8x8xf32>
    %cst_42 = arith.constant dense<0.000000e+00> : vector<8x8xf32>
    %140 = tpu.matmul %139, %107, %cst_42 {dimension_numbers = #tpu.dot_dimension_numbers<[1], [0], [0], [1], [0, 0, 1, 1], [], []>} : vector<8x8xf32>, vector<8x8xf32>, vector<8x8xf32> -> vector<8x8xf32>
    %141 = vector.extract_strided_slice %5 {offsets = [0, 24], sizes = [8, 8], strides = [1, 1]} : vector<8x32xf32> to vector<8x8xf32>
    %142 = vector.extract_strided_slice %7 {offsets = [0, 24], sizes = [8, 8], strides = [1, 1]} : vector<8x32xf32> to vector<8x8xf32>
    %143 = vector.extract_strided_slice %9 {offsets = [0, 24], sizes = [8, 8], strides = [1, 1]} : vector<8x32xf32> to vector<8x8xf32>
    %cst_43 = arith.constant dense<0.000000e+00> : vector<8x8xf32>
    %144 = tpu.matmul %141, %142, %cst_43 {dimension_numbers = #tpu.dot_dimension_numbers<[1], [1], [0], [0], [0, 0, 1, 0], [], []>} : vector<8x8xf32>, vector<8x8xf32>, vector<8x8xf32> -> vector<8x8xf32>
    %cst_44 = arith.constant dense<0.000000e+00> : vector<8x8xf32>
    %145 = tpu.matmul %141, %10, %cst_44 {dimension_numbers = #tpu.dot_dimension_numbers<[1], [0], [0], [1], [0, 0, 1, 1], [], []>} : vector<8x8xf32>, vector<8x8xf32>, vector<8x8xf32> -> vector<8x8xf32>
    %146 = vector.shape_cast %18 : vector<8x8xi32> to vector<8x8x1xi32>
    %147 = vector.shape_cast %146 : vector<8x8x1xi32> to vector<8x8xi32>
    %148 = tpu.dynamic_gather %145[%147] in [1] : vector<8x8xf32>, vector<8x8xi32> -> vector<8x8xf32>
    %cst_45 = arith.constant -1.000000e+30 : f32
    %149 = vector.broadcast %cst_45 : f32 to vector<8x8xf32>
    %150 = arith.select %13, %148, %149 : vector<8x8xi1>, vector<8x8xf32>
    %151 = vector.shape_cast %32 : vector<8x8xi32> to vector<8x8x1xi32>
    %152 = vector.shape_cast %151 : vector<8x8x1xi32> to vector<8x8xi32>
    %153 = tpu.dynamic_gather %145[%152] in [1] : vector<8x8xf32>, vector<8x8xi32> -> vector<8x8xf32>
    %154 = arith.addf %144, %153 : vector<8x8xf32>
    %cst_46 = arith.constant -1.000000e+30 : f32
    %155 = vector.broadcast %cst_46 : f32 to vector<8x8xf32>
    %156 = arith.select %25, %154, %155 : vector<8x8xi1>, vector<8x8xf32>
    %cst_47 = arith.constant dense<0xFF800000> : vector<8xf32>
    %157 = vector.multi_reduction <maximumf>, %150, %cst_47 [1] : vector<8x8xf32> to vector<8xf32>
    %158 = vector.shape_cast %157 : vector<8xf32> to vector<8x1xf32>
    %cst_48 = arith.constant dense<0xFF800000> : vector<8xf32>
    %159 = vector.multi_reduction <maximumf>, %156, %cst_48 [1] : vector<8x8xf32> to vector<8xf32>
    %160 = vector.shape_cast %159 : vector<8xf32> to vector<8x1xf32>
    %161 = arith.maximumf %158, %160 : vector<8x1xf32>
    %162 = vector.broadcast %161 : vector<8x1xf32> to vector<8x8xf32>
    %163 = arith.subf %150, %162 : vector<8x8xf32>
    %164 = math.exp %163 : vector<8x8xf32>
    %165 = vector.broadcast %161 : vector<8x1xf32> to vector<8x8xf32>
    %166 = arith.subf %156, %165 : vector<8x8xf32>
    %167 = math.exp %166 : vector<8x8xf32>
    %cst_49 = arith.constant dense<0.000000e+00> : vector<8xf32>
    %168 = vector.multi_reduction <add>, %164, %cst_49 [1] : vector<8x8xf32> to vector<8xf32>
    %169 = vector.shape_cast %168 : vector<8xf32> to vector<8x1xf32>
    %cst_50 = arith.constant dense<0.000000e+00> : vector<8xf32>
    %170 = vector.multi_reduction <add>, %167, %cst_50 [1] : vector<8x8xf32> to vector<8xf32>
    %171 = vector.shape_cast %170 : vector<8xf32> to vector<8x1xf32>
    %172 = arith.addf %169, %171 : vector<8x1xf32>
    %173 = tpu.reciprocal %172 {approx = true} : vector<8x1xf32> -> vector<8x1xf32>
    %174 = vector.broadcast %173 : vector<8x1xf32> to vector<8x8xf32>
    %175 = arith.mulf %167, %174 : vector<8x8xf32>
    %cst_51 = arith.constant dense<0.000000e+00> : vector<8x8xf32>
    %176 = tpu.matmul %175, %143, %cst_51 {dimension_numbers = #tpu.dot_dimension_numbers<[1], [0], [0], [1], [0, 0, 1, 1], [], []>} : vector<8x8xf32>, vector<8x8xf32>, vector<8x8xf32> -> vector<8x8xf32>
    %177 = tpu.concatenate %68, %104, %140, %176 in 1 : vector<8x8xf32>, vector<8x8xf32>, vector<8x8xf32>, vector<8x8xf32> -> vector<8x32xf32>
    %c0_52 = arith.constant 0 : index
    %c0_53 = arith.constant 0 : index
    %178 = vector.load %arg5[%c0_52, %c0_53] : memref<32x32xf32, #tpu.memory_space<vmem>>, vector<32x32xf32>
    %cst_54 = arith.constant dense<0.000000e+00> : vector<8x32xf32>
    %179 = tpu.matmul %177, %178, %cst_54 {dimension_numbers = #tpu.dot_dimension_numbers<[1], [0], [0], [1], [0, 0, 1, 1], [], []>} : vector<8x32xf32>, vector<32x32xf32>, vector<8x32xf32> -> vector<8x32xf32>
    %180 = arith.addf %1, %179 : vector<8x32xf32>
    %c0_55 = arith.constant 0 : index
    %c0_56 = arith.constant 0 : index
    %181 = vector.load %arg7[%c0_55, %c0_56] : memref<1x32xf32, #tpu.memory_space<vmem>>, vector<1x32xf32>
    %c0_57 = arith.constant 0 : index
    %c0_58 = arith.constant 0 : index
    %182 = vector.load %arg8[%c0_57, %c0_58] : memref<1x32xf32, #tpu.memory_space<vmem>>, vector<1x32xf32>
    %cst_59 = arith.constant dense<0.000000e+00> : vector<8xf32>
    %183 = vector.multi_reduction <add>, %180, %cst_59 [1] : vector<8x32xf32> to vector<8xf32>
    %184 = vector.shape_cast %183 : vector<8xf32> to vector<8x1xf32>
    %cst_60 = arith.constant 3.200000e+01 : f32
    %185 = vector.broadcast %cst_60 : f32 to vector<8x1xf32>
    %186 = arith.divf %184, %185 : vector<8x1xf32>
    %187 = vector.broadcast %186 : vector<8x1xf32> to vector<8x32xf32>
    %188 = arith.subf %180, %187 : vector<8x32xf32>
    %189 = arith.mulf %188, %188 : vector<8x32xf32>
    %cst_61 = arith.constant dense<0.000000e+00> : vector<8xf32>
    %190 = vector.multi_reduction <add>, %189, %cst_61 [1] : vector<8x32xf32> to vector<8xf32>
    %191 = vector.shape_cast %190 : vector<8xf32> to vector<8x1xf32>
    %cst_62 = arith.constant 3.200000e+01 : f32
    %192 = vector.broadcast %cst_62 : f32 to vector<8x1xf32>
    %193 = arith.divf %191, %192 : vector<8x1xf32>
    %194 = vector.broadcast %186 : vector<8x1xf32> to vector<8x32xf32>
    %195 = arith.subf %180, %194 : vector<8x32xf32>
    %cst_63 = arith.constant 9.99999974E-6 : f32
    %196 = vector.broadcast %cst_63 : f32 to vector<8x1xf32>
    %197 = arith.addf %193, %196 : vector<8x1xf32>
    %198 = math.rsqrt %197 : vector<8x1xf32>
    %199 = vector.broadcast %198 : vector<8x1xf32> to vector<8x32xf32>
    %200 = arith.mulf %195, %199 : vector<8x32xf32>
    %201 = vector.broadcast %181 : vector<1x32xf32> to vector<8x32xf32>
    %202 = arith.mulf %200, %201 : vector<8x32xf32>
    %203 = vector.broadcast %182 : vector<1x32xf32> to vector<8x32xf32>
    %204 = arith.addf %202, %203 : vector<8x32xf32>
    %c0_64 = arith.constant 0 : index
    %c0_65 = arith.constant 0 : index
    %205 = vector.load %arg9[%c0_64, %c0_65] : memref<32x64xf32, #tpu.memory_space<vmem>>, vector<32x64xf32>
    %cst_66 = arith.constant dense<0.000000e+00> : vector<8x64xf32>
    %206 = tpu.matmul %204, %205, %cst_66 {dimension_numbers = #tpu.dot_dimension_numbers<[1], [0], [0], [1], [0, 0, 1, 1], [], []>} : vector<8x32xf32>, vector<32x64xf32>, vector<8x64xf32> -> vector<8x64xf32>
    %c0_67 = arith.constant 0 : index
    %c0_68 = arith.constant 0 : index
    %207 = vector.load %arg10[%c0_67, %c0_68] : memref<1x64xf32, #tpu.memory_space<vmem>>, vector<1x64xf32>
    %208 = vector.broadcast %207 : vector<1x64xf32> to vector<8x64xf32>
    %209 = arith.addf %206, %208 : vector<8x64xf32>
    %cst_69 = arith.constant 0.000000e+00 : f32
    %210 = vector.broadcast %cst_69 : f32 to vector<8x64xf32>
    %211 = arith.maximumf %209, %210 : vector<8x64xf32>
    %c0_70 = arith.constant 0 : index
    %c0_71 = arith.constant 0 : index
    %212 = vector.load %arg11[%c0_70, %c0_71] : memref<64x32xf32, #tpu.memory_space<vmem>>, vector<64x32xf32>
    %cst_72 = arith.constant dense<0.000000e+00> : vector<8x32xf32>
    %213 = tpu.matmul %211, %212, %cst_72 {dimension_numbers = #tpu.dot_dimension_numbers<[1], [0], [0], [1], [0, 0, 1, 1], [], []>} : vector<8x64xf32>, vector<64x32xf32>, vector<8x32xf32> -> vector<8x32xf32>
    %c0_73 = arith.constant 0 : index
    %c0_74 = arith.constant 0 : index
    %214 = vector.load %arg12[%c0_73, %c0_74] : memref<1x32xf32, #tpu.memory_space<vmem>>, vector<1x32xf32>
    %215 = vector.broadcast %214 : vector<1x32xf32> to vector<8x32xf32>
    %216 = arith.addf %213, %215 : vector<8x32xf32>
    %217 = arith.addf %204, %216 : vector<8x32xf32>
    %c0_75 = arith.constant 0 : index
    %c0_76 = arith.constant 0 : index
    %218 = vector.load %arg13[%c0_75, %c0_76] : memref<1x32xf32, #tpu.memory_space<vmem>>, vector<1x32xf32>
    %c0_77 = arith.constant 0 : index
    %c0_78 = arith.constant 0 : index
    %219 = vector.load %arg14[%c0_77, %c0_78] : memref<1x32xf32, #tpu.memory_space<vmem>>, vector<1x32xf32>
    %cst_79 = arith.constant dense<0.000000e+00> : vector<8xf32>
    %220 = vector.multi_reduction <add>, %217, %cst_79 [1] : vector<8x32xf32> to vector<8xf32>
    %221 = vector.shape_cast %220 : vector<8xf32> to vector<8x1xf32>
    %cst_80 = arith.constant 3.200000e+01 : f32
    %222 = vector.broadcast %cst_80 : f32 to vector<8x1xf32>
    %223 = arith.divf %221, %222 : vector<8x1xf32>
    %224 = vector.broadcast %223 : vector<8x1xf32> to vector<8x32xf32>
    %225 = arith.subf %217, %224 : vector<8x32xf32>
    %226 = arith.mulf %225, %225 : vector<8x32xf32>
    %cst_81 = arith.constant dense<0.000000e+00> : vector<8xf32>
    %227 = vector.multi_reduction <add>, %226, %cst_81 [1] : vector<8x32xf32> to vector<8xf32>
    %228 = vector.shape_cast %227 : vector<8xf32> to vector<8x1xf32>
    %cst_82 = arith.constant 3.200000e+01 : f32
    %229 = vector.broadcast %cst_82 : f32 to vector<8x1xf32>
    %230 = arith.divf %228, %229 : vector<8x1xf32>
    %231 = vector.broadcast %223 : vector<8x1xf32> to vector<8x32xf32>
    %232 = arith.subf %217, %231 : vector<8x32xf32>
    %cst_83 = arith.constant 9.99999974E-6 : f32
    %233 = vector.broadcast %cst_83 : f32 to vector<8x1xf32>
    %234 = arith.addf %230, %233 : vector<8x1xf32>
    %235 = math.rsqrt %234 : vector<8x1xf32>
    %236 = vector.broadcast %235 : vector<8x1xf32> to vector<8x32xf32>
    %237 = arith.mulf %232, %236 : vector<8x32xf32>
    %238 = vector.broadcast %218 : vector<1x32xf32> to vector<8x32xf32>
    %239 = arith.mulf %237, %238 : vector<8x32xf32>
    %240 = vector.broadcast %219 : vector<1x32xf32> to vector<8x32xf32>
    %241 = arith.addf %239, %240 : vector<8x32xf32>
    %c0_84 = arith.constant 0 : index
    %c0_85 = arith.constant 0 : index
    %c0_86 = arith.constant 0 : index
    %242 = vector.load %arg15[%c0_84, %c0_85, %c0_86] : memref<1x8x32xf32, #tpu.memory_space<vmem>>, vector<1x8x32xf32>
    %243 = vector.shape_cast %242 : vector<1x8x32xf32> to vector<8x32xf32>
    %244 = vector.shape_cast %241 : vector<8x32xf32> to vector<1x8x32xf32>
    tpu.vector_store %arg15[%c0_84, %c0_85, %c0_86], %244 {strides = array<i32>} : memref<1x8x32xf32, #tpu.memory_space<vmem>>, vector<1x8x32xf32>,
    return
  }
  func.func @transform_0(%arg0: i32) -> (i32, i32, i32) {
    %c0_i32 = arith.constant 0 : i32
    %c0_i32_0 = arith.constant 0 : i32
    %c0_i32_1 = arith.constant 0 : i32
    return %arg0, %c0_i32, %c0_i32_0 : i32, i32, i32
  }
  func.func @transform_1(%arg0: i32) -> (i32, i32) {
    %c0_i32 = arith.constant 0 : i32
    %c0_i32_0 = arith.constant 0 : i32
    %c0_i32_1 = arith.constant 0 : i32
    return %c0_i32, %c0_i32_0 : i32, i32
  }
  func.func @transform_2(%arg0: i32) -> (i32, i32) {
    %c0_i32 = arith.constant 0 : i32
    %c0_i32_0 = arith.constant 0 : i32
    %c0_i32_1 = arith.constant 0 : i32
    return %c0_i32, %c0_i32_0 : i32, i32
  }
  func.func @transform_3(%arg0: i32) -> (i32, i32) {
    %c0_i32 = arith.constant 0 : i32
    %c0_i32_0 = arith.constant 0 : i32
    %c0_i32_1 = arith.constant 0 : i32
    return %c0_i32, %c0_i32_0 : i32, i32
  }
  func.func @transform_4(%arg0: i32) -> (i32, i32) {
    %c0_i32 = arith.constant 0 : i32
    %c0_i32_0 = arith.constant 0 : i32
    %c0_i32_1 = arith.constant 0 : i32
    return %c0_i32, %c0_i32_0 : i32, i32
  }
  func.func @transform_5(%arg0: i32) -> (i32, i32) {
    %c0_i32 = arith.constant 0 : i32
    %c0_i32_0 = arith.constant 0 : i32
    %c0_i32_1 = arith.constant 0 : i32
    return %c0_i32, %c0_i32_0 : i32, i32
  }
  func.func @transform_6(%arg0: i32) -> (i32, i32) {
    %c0_i32 = arith.constant 0 : i32
    %c0_i32_0 = arith.constant 0 : i32
    %c0_i32_1 = arith.constant 0 : i32
    return %c0_i32, %c0_i32_0 : i32, i32
  }
  func.func @transform_7(%arg0: i32) -> (i32, i32) {
    %c0_i32 = arith.constant 0 : i32
    %c0_i32_0 = arith.constant 0 : i32
    %c0_i32_1 = arith.constant 0 : i32
    return %c0_i32, %c0_i32_0 : i32, i32
  }
  func.func @transform_8(%arg0: i32) -> (i32, i32) {
    %c0_i32 = arith.constant 0 : i32
    %c0_i32_0 = arith.constant 0 : i32
    %c0_i32_1 = arith.constant 0 : i32
    return %c0_i32, %c0_i32_0 : i32, i32
  }
  func.func @transform_9(%arg0: i32) -> (i32, i32) {
    %c0_i32 = arith.constant 0 : i32
    %c0_i32_0 = arith.constant 0 : i32
    %c0_i32_1 = arith.constant 0 : i32
    return %c0_i32, %c0_i32_0 : i32, i32
  }
  func.func @transform_10(%arg0: i32) -> (i32, i32) {
    %c0_i32 = arith.constant 0 : i32
    %c0_i32_0 = arith.constant 0 : i32
    %c0_i32_1 = arith.constant 0 : i32
    return %c0_i32, %c0_i32_0 : i32, i32
  }
  func.func @transform_11(%arg0: i32) -> (i32, i32) {
    %c0_i32 = arith.constant 0 : i32
    %c0_i32_0 = arith.constant 0 : i32
    %c0_i32_1 = arith.constant 0 : i32
    return %c0_i32, %c0_i32_0 : i32, i32
  }
  func.func @transform_12(%arg0: i32) -> (i32, i32) {
    %c0_i32 = arith.constant 0 : i32
    %c0_i32_0 = arith.constant 0 : i32
    %c0_i32_1 = arith.constant 0 : i32
    return %c0_i32, %c0_i32_0 : i32, i32
  }
  func.func @transform_13(%arg0: i32) -> (i32, i32) {
    %c0_i32 = arith.constant 0 : i32
    %c0_i32_0 = arith.constant 0 : i32
    %c0_i32_1 = arith.constant 0 : i32
    return %c0_i32, %c0_i32_0 : i32, i32
  }
  func.func @transform_14(%arg0: i32) -> (i32, i32, i32) {
    %c0_i32 = arith.constant 0 : i32
    %c0_i32_0 = arith.constant 0 : i32
    %c0_i32_1 = arith.constant 0 : i32
    return %arg0, %c0_i32, %c0_i32_0 : i32, i32, i32
  }
}

module attributes {stable_mosaic.version = 11 : i64} {
  func.func @_fsa_kernel(%arg0: i32, %arg1: memref<1x8x32xf32, #tpu.memory_space<vmem>>, %arg2: memref<32x32xf32, #tpu.memory_space<vmem>>, %arg3: memref<32x32xf32, #tpu.memory_space<vmem>>, %arg4: memref<32x32xf32, #tpu.memory_space<vmem>>, %arg5: memref<32x32xf32, #tpu.memory_space<vmem>>, %arg6: memref<8x8xf32, #tpu.memory_space<vmem>>, %arg7: memref<1x32xf32, #tpu.memory_space<vmem>>, %arg8: memref<1x32xf32, #tpu.memory_space<vmem>>, %arg9: memref<32x64xf32, #tpu.memory_space<vmem>>, %arg10: memref<1x64xf32, #tpu.memory_space<vmem>>, %arg11: memref<64x32xf32, #tpu.memory_space<vmem>>, %arg12: memref<1x32xf32, #tpu.memory_space<vmem>>, %arg13: memref<1x32xf32, #tpu.memory_space<vmem>>, %arg14: memref<1x32xf32, #tpu.memory_space<vmem>>, %arg15: memref<1x8x32xf32, #tpu.memory_space<vmem>>) attributes {dimension_semantics = [#tpu.dimension_semantics<parallel>], iteration_bounds = array<i64: 2>, scalar_prefetch = 0 : i64, scratch_operands = 0 : i64, tpu.core_type = #tpu.core_type<tc>, window_params = [{transform_indices = @transform_0, window_bounds = array<i64: 1, 8, 32>}, {pipeline_mode = #tpu.pipeline_mode<synchronous>, transform_indices = @transform_1, window_bounds = array<i64: 32, 32>}, {pipeline_mode = #tpu.pipeline_mode<synchronous>, transform_indices = @transform_2, window_bounds = array<i64: 32, 32>}, {pipeline_mode = #tpu.pipeline_mode<synchronous>, transform_indices = @transform_3, window_bounds = array<i64: 32, 32>}, {pipeline_mode = #tpu.pipeline_mode<synchronous>, transform_indices = @transform_4, window_bounds = array<i64: 32, 32>}, {pipeline_mode = #tpu.pipeline_mode<synchronous>, transform_indices = @transform_5, window_bounds = array<i64: 8, 8>}, {pipeline_mode = #tpu.pipeline_mode<synchronous>, transform_indices = @transform_6, window_bounds = array<i64: 1, 32>}, {pipeline_mode = #tpu.pipeline_mode<synchronous>, transform_indices = @transform_7, window_bounds = array<i64: 1, 32>}, {pipeline_mode = #tpu.pipeline_mode<synchronous>, transform_indices = @transform_8, window_bounds = array<i64: 32, 64>}, {pipeline_mode = #tpu.pipeline_mode<synchronous>, transform_indices = @transform_9, window_bounds = array<i64: 1, 64>}, {pipeline_mode = #tpu.pipeline_mode<synchronous>, transform_indices = @transform_10, window_bounds = array<i64: 64, 32>}, {pipeline_mode = #tpu.pipeline_mode<synchronous>, transform_indices = @transform_11, window_bounds = array<i64: 1, 32>}, {pipeline_mode = #tpu.pipeline_mode<synchronous>, transform_indices = @transform_12, window_bounds = array<i64: 1, 32>}, {pipeline_mode = #tpu.pipeline_mode<synchronous>, transform_indices = @transform_13, window_bounds = array<i64: 1, 32>}, {transform_indices = @transform_14, window_bounds = array<i64: 1, 8, 32>}]} {
    %c0 = arith.constant 0 : index
    %c0_0 = arith.constant 0 : index
    %c0_1 = arith.constant 0 : index
    %0 = vector.load %arg1[%c0, %c0_0, %c0_1] : memref<1x8x32xf32, #tpu.memory_space<vmem>>, vector<1x8x32xf32>
    %1 = vector.shape_cast %0 : vector<1x8x32xf32> to vector<8x32xf32>
    %c0_2 = arith.constant 0 : index
    %c0_3 = arith.constant 0 : index
    %2 = vector.load %arg2[%c0_2, %c0_3] : memref<32x32xf32, #tpu.memory_space<vmem>>, vector<32x32xf32>
    %cst = arith.constant dense<0.000000e+00> : vector<8x32xf32>
    %3 = tpu.matmul %1, %2, %cst {dimension_numbers = #tpu.dot_dimension_numbers<[1], [0], [0], [1], [0, 0, 1, 1], [], []>} : vector<8x32xf32>, vector<32x32xf32>, vector<8x32xf32> -> vector<8x32xf32>
    %cst_4 = arith.constant 0.353553385 : f32
    %4 = vector.broadcast %cst_4 : f32 to vector<8x32xf32>
    %5 = arith.mulf %3, %4 : vector<8x32xf32>
    %c0_5 = arith.constant 0 : index
    %c0_6 = arith.constant 0 : index
    %6 = vector.load %arg3[%c0_5, %c0_6] : memref<32x32xf32, #tpu.memory_space<vmem>>, vector<32x32xf32>
    %cst_7 = arith.constant dense<0.000000e+00> : vector<8x32xf32>
    %7 = tpu.matmul %1, %6, %cst_7 {dimension_numbers = #tpu.dot_dimension_numbers<[1], [0], [0], [1], [0, 0, 1, 1], [], []>} : vector<8x32xf32>, vector<32x32xf32>, vector<8x32xf32> -> vector<8x32xf32>
    %c0_8 = arith.constant 0 : index
    %c0_9 = arith.constant 0 : index
    %8 = vector.load %arg4[%c0_8, %c0_9] : memref<32x32xf32, #tpu.memory_space<vmem>>, vector<32x32xf32>
    %cst_10 = arith.constant dense<0.000000e+00> : vector<8x32xf32>
    %9 = tpu.matmul %1, %8, %cst_10 {dimension_numbers = #tpu.dot_dimension_numbers<[1], [0], [0], [1], [0, 0, 1, 1], [], []>} : vector<8x32xf32>, vector<32x32xf32>, vector<8x32xf32> -> vector<8x32xf32>
    %c0_11 = arith.constant 0 : index
    %c0_12 = arith.constant 0 : index
    %10 = vector.load %arg6[%c0_11, %c0_12] : memref<8x8xf32, #tpu.memory_space<vmem>>, vector<8x8xf32>
    %11 = tpu.iota {dimensions = array<i32: 0>} : vector<8x8xi32>
    %12 = tpu.iota {dimensions = array<i32: 1>} : vector<8x8xi32>
    %13 = arith.cmpi sge, %12, %11 : vector<8x8xi32>
    %14 = arith.subi %12, %11 : vector<8x8xi32>
    %c0_i32 = arith.constant 0 : i32
    %c7_i32 = arith.constant 7 : i32
    %15 = vector.broadcast %c0_i32 : i32 to vector<8x8xi32>
    %16 = arith.maxsi %15, %14 : vector<8x8xi32>
    %17 = vector.broadcast %c7_i32 : i32 to vector<8x8xi32>
    %18 = arith.minsi %17, %16 : vector<8x8xi32>
    %19 = tpu.iota {dimensions = array<i32: 0>} : vector<8x8xi32>
    %20 = tpu.iota {dimensions = array<i32: 1>} : vector<8x8xi32>
    %21 = arith.cmpi slt, %20, %19 : vector<8x8xi32>
    %c8_i32 = arith.constant 8 : i32
    %22 = vector.broadcast %c8_i32 : i32 to vector<8x8xi32>
    %23 = arith.subi %19, %22 : vector<8x8xi32>
    %24 = arith.cmpi sge, %20, %23 : vector<8x8xi32>
    %25 = arith.andi %21, %24 : vector<8x8xi1>
    %c8_i32_13 = arith.constant 8 : i32
    %26 = vector.broadcast %c8_i32_13 : i32 to vector<8x8xi32>
    %27 = arith.addi %26, %20 : vector<8x8xi32>
    %28 = arith.subi %27, %19 : vector<8x8xi32>
    %c0_i32_14 = arith.constant 0 : i32
    %c7_i32_15 = arith.constant 7 : i32
    %29 = vector.broadcast %c0_i32_14 : i32 to vector<8x8xi32>
    %30 = arith.maxsi %29, %28 : vector<8x8xi32>
    %31 = vector.broadcast %c7_i32_15 : i32 to vector<8x8xi32>
    %32 = arith.minsi %31, %30 : vector<8x8xi32>
    %33 = vector.extract_strided_slice %5 {offsets = [0, 0], sizes = [8, 8], strides = [1, 1]} : vector<8x32xf32> to vector<8x8xf32>
    %34 = vector.extract_strided_slice %7 {offsets = [0, 0], sizes = [8, 8], strides = [1, 1]} : vector<8x32xf32> to vector<8x8xf32>
    %35 = vector.extract_strided_slice %9 {offsets = [0, 0], sizes = [8, 8], strides = [1, 1]} : vector<8x32xf32> to vector<8x8xf32>
    %cst_16 = arith.constant dense<0.000000e+00> : vector<8x8xf32>
    %36 = tpu.matmul %33, %34, %cst_16 {dimension_numbers = #tpu.dot_dimension_numbers<[1], [1], [0], [0], [0, 0, 1, 0], [], []>} : vector<8x8xf32>, vector<8x8xf32>, vector<8x8xf32> -> vector<8x8xf32>
    %cst_17 = arith.constant dense<0.000000e+00> : vector<8x8xf32>
    %37 = tpu.matmul %33, %10, %cst_17 {dimension_numbers = #tpu.dot_dimension_numbers<[1], [0], [0], [1], [0, 0, 1, 1], [], []>} : vector<8x8xf32>, vector<8x8xf32>, vector<8x8xf32> -> vector<8x8xf32>
    %cst_18 = arith.constant 0.000000e+00 : f32
    %38 = vector.broadcast %cst_18 : f32 to vector<8x8xf32>
    %c0_i32_19 = arith.constant 0 : i32
    %39 = vector.broadcast %c0_i32_19 : i32 to vector<8x8xi32>
    %40 = arith.cmpi eq, %18, %39 : vector<8x8xi32>
    %41 = vector.extract_strided_slice %37 {offsets = [0, 0], sizes = [8, 1], strides = [1, 1]} : vector<8x8xf32> to vector<8x1xf32>
    %cst_20 = arith.constant 0.000000e+00 : f32
    %42 = vector.shape_cast %41 : vector<8x1xf32> to vector<8x1xf32>
    %43 = vector.broadcast %42 : vector<8x1xf32> to vector<8x8xf32>
    %44 = vector.broadcast %cst_20 : f32 to vector<8x8xf32>
    %45 = arith.select %40, %43, %44 : vector<8x8xi1>, vector<8x8xf32>
    %46 = arith.addf %38, %45 : vector<8x8xf32>
    %c1_i32 = arith.constant 1 : i32
    %47 = vector.broadcast %c1_i32 : i32 to vector<8x8xi32>
    %48 = arith.cmpi eq, %18, %47 : vector<8x8xi32>
    %49 = vector.extract_strided_slice %37 {offsets = [0, 1], sizes = [8, 1], strides = [1, 1]} : vector<8x8xf32> to vector<8x1xf32>
    %cst_21 = arith.constant 0.000000e+00 : f32
    %50 = vector.shape_cast %49 : vector<8x1xf32> to vector<8x1xf32>
    %51 = vector.broadcast %50 : vector<8x1xf32> to vector<8x8xf32>
    %52 = vector.broadcast %cst_21 : f32 to vector<8x8xf32>
    %53 = arith.select %48, %51, %52 : vector<8x8xi1>, vector<8x8xf32>
    %54 = arith.addf %46, %53 : vector<8x8xf32>
    %c2_i32 = arith.constant 2 : i32
    %55 = vector.broadcast %c2_i32 : i32 to vector<8x8xi32>
    %56 = arith.cmpi eq, %18, %55 : vector<8x8xi32>
    %57 = vector.extract_strided_slice %37 {offsets = [0, 2], sizes = [8, 1], strides = [1, 1]} : vector<8x8xf32> to vector<8x1xf32>
    %cst_22 = arith.constant 0.000000e+00 : f32
    %58 = vector.shape_cast %57 : vector<8x1xf32> to vector<8x1xf32>
    %59 = vector.broadcast %58 : vector<8x1xf32> to vector<8x8xf32>
    %60 = vector.broadcast %cst_22 : f32 to vector<8x8xf32>
    %61 = arith.select %56, %59, %60 : vector<8x8xi1>, vector<8x8xf32>
    %62 = arith.addf %54, %61 : vector<8x8xf32>
    %c3_i32 = arith.constant 3 : i32
    %63 = vector.broadcast %c3_i32 : i32 to vector<8x8xi32>
    %64 = arith.cmpi eq, %18, %63 : vector<8x8xi32>
    %65 = vector.extract_strided_slice %37 {offsets = [0, 3], sizes = [8, 1], strides = [1, 1]} : vector<8x8xf32> to vector<8x1xf32>
    %cst_23 = arith.constant 0.000000e+00 : f32
    %66 = vector.shape_cast %65 : vector<8x1xf32> to vector<8x1xf32>
    %67 = vector.broadcast %66 : vector<8x1xf32> to vector<8x8xf32>
    %68 = vector.broadcast %cst_23 : f32 to vector<8x8xf32>
    %69 = arith.select %64, %67, %68 : vector<8x8xi1>, vector<8x8xf32>
    %70 = arith.addf %62, %69 : vector<8x8xf32>
    %c4_i32 = arith.constant 4 : i32
    %71 = vector.broadcast %c4_i32 : i32 to vector<8x8xi32>
    %72 = arith.cmpi eq, %18, %71 : vector<8x8xi32>
    %73 = vector.extract_strided_slice %37 {offsets = [0, 4], sizes = [8, 1], strides = [1, 1]} : vector<8x8xf32> to vector<8x1xf32>
    %cst_24 = arith.constant 0.000000e+00 : f32
    %74 = vector.shape_cast %73 : vector<8x1xf32> to vector<8x1xf32>
    %75 = vector.broadcast %74 : vector<8x1xf32> to vector<8x8xf32>
    %76 = vector.broadcast %cst_24 : f32 to vector<8x8xf32>
    %77 = arith.select %72, %75, %76 : vector<8x8xi1>, vector<8x8xf32>
    %78 = arith.addf %70, %77 : vector<8x8xf32>
    %c5_i32 = arith.constant 5 : i32
    %79 = vector.broadcast %c5_i32 : i32 to vector<8x8xi32>
    %80 = arith.cmpi eq, %18, %79 : vector<8x8xi32>
    %81 = vector.extract_strided_slice %37 {offsets = [0, 5], sizes = [8, 1], strides = [1, 1]} : vector<8x8xf32> to vector<8x1xf32>
    %cst_25 = arith.constant 0.000000e+00 : f32
    %82 = vector.shape_cast %81 : vector<8x1xf32> to vector<8x1xf32>
    %83 = vector.broadcast %82 : vector<8x1xf32> to vector<8x8xf32>
    %84 = vector.broadcast %cst_25 : f32 to vector<8x8xf32>
    %85 = arith.select %80, %83, %84 : vector<8x8xi1>, vector<8x8xf32>
    %86 = arith.addf %78, %85 : vector<8x8xf32>
    %c6_i32 = arith.constant 6 : i32
    %87 = vector.broadcast %c6_i32 : i32 to vector<8x8xi32>
    %88 = arith.cmpi eq, %18, %87 : vector<8x8xi32>
    %89 = vector.extract_strided_slice %37 {offsets = [0, 6], sizes = [8, 1], strides = [1, 1]} : vector<8x8xf32> to vector<8x1xf32>
    %cst_26 = arith.constant 0.000000e+00 : f32
    %90 = vector.shape_cast %89 : vector<8x1xf32> to vector<8x1xf32>
    %91 = vector.broadcast %90 : vector<8x1xf32> to vector<8x8xf32>
    %92 = vector.broadcast %cst_26 : f32 to vector<8x8xf32>
    %93 = arith.select %88, %91, %92 : vector<8x8xi1>, vector<8x8xf32>
    %94 = arith.addf %86, %93 : vector<8x8xf32>
    %c7_i32_27 = arith.constant 7 : i32
    %95 = vector.broadcast %c7_i32_27 : i32 to vector<8x8xi32>
    %96 = arith.cmpi eq, %18, %95 : vector<8x8xi32>
    %97 = vector.extract_strided_slice %37 {offsets = [0, 7], sizes = [8, 1], strides = [1, 1]} : vector<8x8xf32> to vector<8x1xf32>
    %cst_28 = arith.constant 0.000000e+00 : f32
    %98 = vector.shape_cast %97 : vector<8x1xf32> to vector<8x1xf32>
    %99 = vector.broadcast %98 : vector<8x1xf32> to vector<8x8xf32>
    %100 = vector.broadcast %cst_28 : f32 to vector<8x8xf32>
    %101 = arith.select %96, %99, %100 : vector<8x8xi1>, vector<8x8xf32>
    %102 = arith.addf %94, %101 : vector<8x8xf32>
    %cst_29 = arith.constant -1.000000e+30 : f32
    %103 = vector.broadcast %cst_29 : f32 to vector<8x8xf32>
    %104 = arith.select %13, %102, %103 : vector<8x8xi1>, vector<8x8xf32>
    %cst_30 = arith.constant 0.000000e+00 : f32
    %105 = vector.broadcast %cst_30 : f32 to vector<8x8xf32>
    %c0_i32_31 = arith.constant 0 : i32
    %106 = vector.broadcast %c0_i32_31 : i32 to vector<8x8xi32>
    %107 = arith.cmpi eq, %32, %106 : vector<8x8xi32>
    %108 = vector.extract_strided_slice %37 {offsets = [0, 0], sizes = [8, 1], strides = [1, 1]} : vector<8x8xf32> to vector<8x1xf32>
    %cst_32 = arith.constant 0.000000e+00 : f32
    %109 = vector.shape_cast %108 : vector<8x1xf32> to vector<8x1xf32>
    %110 = vector.broadcast %109 : vector<8x1xf32> to vector<8x8xf32>
    %111 = vector.broadcast %cst_32 : f32 to vector<8x8xf32>
    %112 = arith.select %107, %110, %111 : vector<8x8xi1>, vector<8x8xf32>
    %113 = arith.addf %105, %112 : vector<8x8xf32>
    %c1_i32_33 = arith.constant 1 : i32
    %114 = vector.broadcast %c1_i32_33 : i32 to vector<8x8xi32>
    %115 = arith.cmpi eq, %32, %114 : vector<8x8xi32>
    %116 = vector.extract_strided_slice %37 {offsets = [0, 1], sizes = [8, 1], strides = [1, 1]} : vector<8x8xf32> to vector<8x1xf32>
    %cst_34 = arith.constant 0.000000e+00 : f32
    %117 = vector.shape_cast %116 : vector<8x1xf32> to vector<8x1xf32>
    %118 = vector.broadcast %117 : vector<8x1xf32> to vector<8x8xf32>
    %119 = vector.broadcast %cst_34 : f32 to vector<8x8xf32>
    %120 = arith.select %115, %118, %119 : vector<8x8xi1>, vector<8x8xf32>
    %121 = arith.addf %113, %120 : vector<8x8xf32>
    %c2_i32_35 = arith.constant 2 : i32
    %122 = vector.broadcast %c2_i32_35 : i32 to vector<8x8xi32>
    %123 = arith.cmpi eq, %32, %122 : vector<8x8xi32>
    %124 = vector.extract_strided_slice %37 {offsets = [0, 2], sizes = [8, 1], strides = [1, 1]} : vector<8x8xf32> to vector<8x1xf32>
    %cst_36 = arith.constant 0.000000e+00 : f32
    %125 = vector.shape_cast %124 : vector<8x1xf32> to vector<8x1xf32>
    %126 = vector.broadcast %125 : vector<8x1xf32> to vector<8x8xf32>
    %127 = vector.broadcast %cst_36 : f32 to vector<8x8xf32>
    %128 = arith.select %123, %126, %127 : vector<8x8xi1>, vector<8x8xf32>
    %129 = arith.addf %121, %128 : vector<8x8xf32>
    %c3_i32_37 = arith.constant 3 : i32
    %130 = vector.broadcast %c3_i32_37 : i32 to vector<8x8xi32>
    %131 = arith.cmpi eq, %32, %130 : vector<8x8xi32>
    %132 = vector.extract_strided_slice %37 {offsets = [0, 3], sizes = [8, 1], strides = [1, 1]} : vector<8x8xf32> to vector<8x1xf32>
    %cst_38 = arith.constant 0.000000e+00 : f32
    %133 = vector.shape_cast %132 : vector<8x1xf32> to vector<8x1xf32>
    %134 = vector.broadcast %133 : vector<8x1xf32> to vector<8x8xf32>
    %135 = vector.broadcast %cst_38 : f32 to vector<8x8xf32>
    %136 = arith.select %131, %134, %135 : vector<8x8xi1>, vector<8x8xf32>
    %137 = arith.addf %129, %136 : vector<8x8xf32>
    %c4_i32_39 = arith.constant 4 : i32
    %138 = vector.broadcast %c4_i32_39 : i32 to vector<8x8xi32>
    %139 = arith.cmpi eq, %32, %138 : vector<8x8xi32>
    %140 = vector.extract_strided_slice %37 {offsets = [0, 4], sizes = [8, 1], strides = [1, 1]} : vector<8x8xf32> to vector<8x1xf32>
    %cst_40 = arith.constant 0.000000e+00 : f32
    %141 = vector.shape_cast %140 : vector<8x1xf32> to vector<8x1xf32>
    %142 = vector.broadcast %141 : vector<8x1xf32> to vector<8x8xf32>
    %143 = vector.broadcast %cst_40 : f32 to vector<8x8xf32>
    %144 = arith.select %139, %142, %143 : vector<8x8xi1>, vector<8x8xf32>
    %145 = arith.addf %137, %144 : vector<8x8xf32>
    %c5_i32_41 = arith.constant 5 : i32
    %146 = vector.broadcast %c5_i32_41 : i32 to vector<8x8xi32>
    %147 = arith.cmpi eq, %32, %146 : vector<8x8xi32>
    %148 = vector.extract_strided_slice %37 {offsets = [0, 5], sizes = [8, 1], strides = [1, 1]} : vector<8x8xf32> to vector<8x1xf32>
    %cst_42 = arith.constant 0.000000e+00 : f32
    %149 = vector.shape_cast %148 : vector<8x1xf32> to vector<8x1xf32>
    %150 = vector.broadcast %149 : vector<8x1xf32> to vector<8x8xf32>
    %151 = vector.broadcast %cst_42 : f32 to vector<8x8xf32>
    %152 = arith.select %147, %150, %151 : vector<8x8xi1>, vector<8x8xf32>
    %153 = arith.addf %145, %152 : vector<8x8xf32>
    %c6_i32_43 = arith.constant 6 : i32
    %154 = vector.broadcast %c6_i32_43 : i32 to vector<8x8xi32>
    %155 = arith.cmpi eq, %32, %154 : vector<8x8xi32>
    %156 = vector.extract_strided_slice %37 {offsets = [0, 6], sizes = [8, 1], strides = [1, 1]} : vector<8x8xf32> to vector<8x1xf32>
    %cst_44 = arith.constant 0.000000e+00 : f32
    %157 = vector.shape_cast %156 : vector<8x1xf32> to vector<8x1xf32>
    %158 = vector.broadcast %157 : vector<8x1xf32> to vector<8x8xf32>
    %159 = vector.broadcast %cst_44 : f32 to vector<8x8xf32>
    %160 = arith.select %155, %158, %159 : vector<8x8xi1>, vector<8x8xf32>
    %161 = arith.addf %153, %160 : vector<8x8xf32>
    %c7_i32_45 = arith.constant 7 : i32
    %162 = vector.broadcast %c7_i32_45 : i32 to vector<8x8xi32>
    %163 = arith.cmpi eq, %32, %162 : vector<8x8xi32>
    %164 = vector.extract_strided_slice %37 {offsets = [0, 7], sizes = [8, 1], strides = [1, 1]} : vector<8x8xf32> to vector<8x1xf32>
    %cst_46 = arith.constant 0.000000e+00 : f32
    %165 = vector.shape_cast %164 : vector<8x1xf32> to vector<8x1xf32>
    %166 = vector.broadcast %165 : vector<8x1xf32> to vector<8x8xf32>
    %167 = vector.broadcast %cst_46 : f32 to vector<8x8xf32>
    %168 = arith.select %163, %166, %167 : vector<8x8xi1>, vector<8x8xf32>
    %169 = arith.addf %161, %168 : vector<8x8xf32>
    %170 = arith.addf %36, %169 : vector<8x8xf32>
    %cst_47 = arith.constant -1.000000e+30 : f32
    %171 = vector.broadcast %cst_47 : f32 to vector<8x8xf32>
    %172 = arith.select %25, %170, %171 : vector<8x8xi1>, vector<8x8xf32>
    %cst_48 = arith.constant dense<0xFF800000> : vector<8xf32>
    %173 = vector.multi_reduction <maximumf>, %104, %cst_48 [1] : vector<8x8xf32> to vector<8xf32>
    %174 = vector.shape_cast %173 : vector<8xf32> to vector<8x1xf32>
    %cst_49 = arith.constant dense<0xFF800000> : vector<8xf32>
    %175 = vector.multi_reduction <maximumf>, %172, %cst_49 [1] : vector<8x8xf32> to vector<8xf32>
    %176 = vector.shape_cast %175 : vector<8xf32> to vector<8x1xf32>
    %177 = arith.maximumf %174, %176 : vector<8x1xf32>
    %178 = vector.broadcast %177 : vector<8x1xf32> to vector<8x8xf32>
    %179 = arith.subf %104, %178 : vector<8x8xf32>
    %180 = math.exp %179 : vector<8x8xf32>
    %181 = vector.broadcast %177 : vector<8x1xf32> to vector<8x8xf32>
    %182 = arith.subf %172, %181 : vector<8x8xf32>
    %183 = math.exp %182 : vector<8x8xf32>
    %cst_50 = arith.constant dense<0.000000e+00> : vector<8xf32>
    %184 = vector.multi_reduction <add>, %180, %cst_50 [1] : vector<8x8xf32> to vector<8xf32>
    %185 = vector.shape_cast %184 : vector<8xf32> to vector<8x1xf32>
    %cst_51 = arith.constant dense<0.000000e+00> : vector<8xf32>
    %186 = vector.multi_reduction <add>, %183, %cst_51 [1] : vector<8x8xf32> to vector<8xf32>
    %187 = vector.shape_cast %186 : vector<8xf32> to vector<8x1xf32>
    %188 = arith.addf %185, %187 : vector<8x1xf32>
    %189 = tpu.reciprocal %188 {approx = true} : vector<8x1xf32> -> vector<8x1xf32>
    %190 = vector.broadcast %189 : vector<8x1xf32> to vector<8x8xf32>
    %191 = arith.mulf %183, %190 : vector<8x8xf32>
    %cst_52 = arith.constant dense<0.000000e+00> : vector<8x8xf32>
    %192 = tpu.matmul %191, %35, %cst_52 {dimension_numbers = #tpu.dot_dimension_numbers<[1], [0], [0], [1], [0, 0, 1, 1], [], []>} : vector<8x8xf32>, vector<8x8xf32>, vector<8x8xf32> -> vector<8x8xf32>
    %193 = vector.extract_strided_slice %5 {offsets = [0, 8], sizes = [8, 8], strides = [1, 1]} : vector<8x32xf32> to vector<8x8xf32>
    %194 = vector.extract_strided_slice %7 {offsets = [0, 8], sizes = [8, 8], strides = [1, 1]} : vector<8x32xf32> to vector<8x8xf32>
    %195 = vector.extract_strided_slice %9 {offsets = [0, 8], sizes = [8, 8], strides = [1, 1]} : vector<8x32xf32> to vector<8x8xf32>
    %cst_53 = arith.constant dense<0.000000e+00> : vector<8x8xf32>
    %196 = tpu.matmul %193, %194, %cst_53 {dimension_numbers = #tpu.dot_dimension_numbers<[1], [1], [0], [0], [0, 0, 1, 0], [], []>} : vector<8x8xf32>, vector<8x8xf32>, vector<8x8xf32> -> vector<8x8xf32>
    %cst_54 = arith.constant dense<0.000000e+00> : vector<8x8xf32>
    %197 = tpu.matmul %193, %10, %cst_54 {dimension_numbers = #tpu.dot_dimension_numbers<[1], [0], [0], [1], [0, 0, 1, 1], [], []>} : vector<8x8xf32>, vector<8x8xf32>, vector<8x8xf32> -> vector<8x8xf32>
    %cst_55 = arith.constant 0.000000e+00 : f32
    %198 = vector.broadcast %cst_55 : f32 to vector<8x8xf32>
    %c0_i32_56 = arith.constant 0 : i32
    %199 = vector.broadcast %c0_i32_56 : i32 to vector<8x8xi32>
    %200 = arith.cmpi eq, %18, %199 : vector<8x8xi32>
    %201 = vector.extract_strided_slice %197 {offsets = [0, 0], sizes = [8, 1], strides = [1, 1]} : vector<8x8xf32> to vector<8x1xf32>
    %cst_57 = arith.constant 0.000000e+00 : f32
    %202 = vector.shape_cast %201 : vector<8x1xf32> to vector<8x1xf32>
    %203 = vector.broadcast %202 : vector<8x1xf32> to vector<8x8xf32>
    %204 = vector.broadcast %cst_57 : f32 to vector<8x8xf32>
    %205 = arith.select %200, %203, %204 : vector<8x8xi1>, vector<8x8xf32>
    %206 = arith.addf %198, %205 : vector<8x8xf32>
    %c1_i32_58 = arith.constant 1 : i32
    %207 = vector.broadcast %c1_i32_58 : i32 to vector<8x8xi32>
    %208 = arith.cmpi eq, %18, %207 : vector<8x8xi32>
    %209 = vector.extract_strided_slice %197 {offsets = [0, 1], sizes = [8, 1], strides = [1, 1]} : vector<8x8xf32> to vector<8x1xf32>
    %cst_59 = arith.constant 0.000000e+00 : f32
    %210 = vector.shape_cast %209 : vector<8x1xf32> to vector<8x1xf32>
    %211 = vector.broadcast %210 : vector<8x1xf32> to vector<8x8xf32>
    %212 = vector.broadcast %cst_59 : f32 to vector<8x8xf32>
    %213 = arith.select %208, %211, %212 : vector<8x8xi1>, vector<8x8xf32>
    %214 = arith.addf %206, %213 : vector<8x8xf32>
    %c2_i32_60 = arith.constant 2 : i32
    %215 = vector.broadcast %c2_i32_60 : i32 to vector<8x8xi32>
    %216 = arith.cmpi eq, %18, %215 : vector<8x8xi32>
    %217 = vector.extract_strided_slice %197 {offsets = [0, 2], sizes = [8, 1], strides = [1, 1]} : vector<8x8xf32> to vector<8x1xf32>
    %cst_61 = arith.constant 0.000000e+00 : f32
    %218 = vector.shape_cast %217 : vector<8x1xf32> to vector<8x1xf32>
    %219 = vector.broadcast %218 : vector<8x1xf32> to vector<8x8xf32>
    %220 = vector.broadcast %cst_61 : f32 to vector<8x8xf32>
    %221 = arith.select %216, %219, %220 : vector<8x8xi1>, vector<8x8xf32>
    %222 = arith.addf %214, %221 : vector<8x8xf32>
    %c3_i32_62 = arith.constant 3 : i32
    %223 = vector.broadcast %c3_i32_62 : i32 to vector<8x8xi32>
    %224 = arith.cmpi eq, %18, %223 : vector<8x8xi32>
    %225 = vector.extract_strided_slice %197 {offsets = [0, 3], sizes = [8, 1], strides = [1, 1]} : vector<8x8xf32> to vector<8x1xf32>
    %cst_63 = arith.constant 0.000000e+00 : f32
    %226 = vector.shape_cast %225 : vector<8x1xf32> to vector<8x1xf32>
    %227 = vector.broadcast %226 : vector<8x1xf32> to vector<8x8xf32>
    %228 = vector.broadcast %cst_63 : f32 to vector<8x8xf32>
    %229 = arith.select %224, %227, %228 : vector<8x8xi1>, vector<8x8xf32>
    %230 = arith.addf %222, %229 : vector<8x8xf32>
    %c4_i32_64 = arith.constant 4 : i32
    %231 = vector.broadcast %c4_i32_64 : i32 to vector<8x8xi32>
    %232 = arith.cmpi eq, %18, %231 : vector<8x8xi32>
    %233 = vector.extract_strided_slice %197 {offsets = [0, 4], sizes = [8, 1], strides = [1, 1]} : vector<8x8xf32> to vector<8x1xf32>
    %cst_65 = arith.constant 0.000000e+00 : f32
    %234 = vector.shape_cast %233 : vector<8x1xf32> to vector<8x1xf32>
    %235 = vector.broadcast %234 : vector<8x1xf32> to vector<8x8xf32>
    %236 = vector.broadcast %cst_65 : f32 to vector<8x8xf32>
    %237 = arith.select %232, %235, %236 : vector<8x8xi1>, vector<8x8xf32>
    %238 = arith.addf %230, %237 : vector<8x8xf32>
    %c5_i32_66 = arith.constant 5 : i32
    %239 = vector.broadcast %c5_i32_66 : i32 to vector<8x8xi32>
    %240 = arith.cmpi eq, %18, %239 : vector<8x8xi32>
    %241 = vector.extract_strided_slice %197 {offsets = [0, 5], sizes = [8, 1], strides = [1, 1]} : vector<8x8xf32> to vector<8x1xf32>
    %cst_67 = arith.constant 0.000000e+00 : f32
    %242 = vector.shape_cast %241 : vector<8x1xf32> to vector<8x1xf32>
    %243 = vector.broadcast %242 : vector<8x1xf32> to vector<8x8xf32>
    %244 = vector.broadcast %cst_67 : f32 to vector<8x8xf32>
    %245 = arith.select %240, %243, %244 : vector<8x8xi1>, vector<8x8xf32>
    %246 = arith.addf %238, %245 : vector<8x8xf32>
    %c6_i32_68 = arith.constant 6 : i32
    %247 = vector.broadcast %c6_i32_68 : i32 to vector<8x8xi32>
    %248 = arith.cmpi eq, %18, %247 : vector<8x8xi32>
    %249 = vector.extract_strided_slice %197 {offsets = [0, 6], sizes = [8, 1], strides = [1, 1]} : vector<8x8xf32> to vector<8x1xf32>
    %cst_69 = arith.constant 0.000000e+00 : f32
    %250 = vector.shape_cast %249 : vector<8x1xf32> to vector<8x1xf32>
    %251 = vector.broadcast %250 : vector<8x1xf32> to vector<8x8xf32>
    %252 = vector.broadcast %cst_69 : f32 to vector<8x8xf32>
    %253 = arith.select %248, %251, %252 : vector<8x8xi1>, vector<8x8xf32>
    %254 = arith.addf %246, %253 : vector<8x8xf32>
    %c7_i32_70 = arith.constant 7 : i32
    %255 = vector.broadcast %c7_i32_70 : i32 to vector<8x8xi32>
    %256 = arith.cmpi eq, %18, %255 : vector<8x8xi32>
    %257 = vector.extract_strided_slice %197 {offsets = [0, 7], sizes = [8, 1], strides = [1, 1]} : vector<8x8xf32> to vector<8x1xf32>
    %cst_71 = arith.constant 0.000000e+00 : f32
    %258 = vector.shape_cast %257 : vector<8x1xf32> to vector<8x1xf32>
    %259 = vector.broadcast %258 : vector<8x1xf32> to vector<8x8xf32>
    %260 = vector.broadcast %cst_71 : f32 to vector<8x8xf32>
    %261 = arith.select %256, %259, %260 : vector<8x8xi1>, vector<8x8xf32>
    %262 = arith.addf %254, %261 : vector<8x8xf32>
    %cst_72 = arith.constant -1.000000e+30 : f32
    %263 = vector.broadcast %cst_72 : f32 to vector<8x8xf32>
    %264 = arith.select %13, %262, %263 : vector<8x8xi1>, vector<8x8xf32>
    %cst_73 = arith.constant 0.000000e+00 : f32
    %265 = vector.broadcast %cst_73 : f32 to vector<8x8xf32>
    %c0_i32_74 = arith.constant 0 : i32
    %266 = vector.broadcast %c0_i32_74 : i32 to vector<8x8xi32>
    %267 = arith.cmpi eq, %32, %266 : vector<8x8xi32>
    %268 = vector.extract_strided_slice %197 {offsets = [0, 0], sizes = [8, 1], strides = [1, 1]} : vector<8x8xf32> to vector<8x1xf32>
    %cst_75 = arith.constant 0.000000e+00 : f32
    %269 = vector.shape_cast %268 : vector<8x1xf32> to vector<8x1xf32>
    %270 = vector.broadcast %269 : vector<8x1xf32> to vector<8x8xf32>
    %271 = vector.broadcast %cst_75 : f32 to vector<8x8xf32>
    %272 = arith.select %267, %270, %271 : vector<8x8xi1>, vector<8x8xf32>
    %273 = arith.addf %265, %272 : vector<8x8xf32>
    %c1_i32_76 = arith.constant 1 : i32
    %274 = vector.broadcast %c1_i32_76 : i32 to vector<8x8xi32>
    %275 = arith.cmpi eq, %32, %274 : vector<8x8xi32>
    %276 = vector.extract_strided_slice %197 {offsets = [0, 1], sizes = [8, 1], strides = [1, 1]} : vector<8x8xf32> to vector<8x1xf32>
    %cst_77 = arith.constant 0.000000e+00 : f32
    %277 = vector.shape_cast %276 : vector<8x1xf32> to vector<8x1xf32>
    %278 = vector.broadcast %277 : vector<8x1xf32> to vector<8x8xf32>
    %279 = vector.broadcast %cst_77 : f32 to vector<8x8xf32>
    %280 = arith.select %275, %278, %279 : vector<8x8xi1>, vector<8x8xf32>
    %281 = arith.addf %273, %280 : vector<8x8xf32>
    %c2_i32_78 = arith.constant 2 : i32
    %282 = vector.broadcast %c2_i32_78 : i32 to vector<8x8xi32>
    %283 = arith.cmpi eq, %32, %282 : vector<8x8xi32>
    %284 = vector.extract_strided_slice %197 {offsets = [0, 2], sizes = [8, 1], strides = [1, 1]} : vector<8x8xf32> to vector<8x1xf32>
    %cst_79 = arith.constant 0.000000e+00 : f32
    %285 = vector.shape_cast %284 : vector<8x1xf32> to vector<8x1xf32>
    %286 = vector.broadcast %285 : vector<8x1xf32> to vector<8x8xf32>
    %287 = vector.broadcast %cst_79 : f32 to vector<8x8xf32>
    %288 = arith.select %283, %286, %287 : vector<8x8xi1>, vector<8x8xf32>
    %289 = arith.addf %281, %288 : vector<8x8xf32>
    %c3_i32_80 = arith.constant 3 : i32
    %290 = vector.broadcast %c3_i32_80 : i32 to vector<8x8xi32>
    %291 = arith.cmpi eq, %32, %290 : vector<8x8xi32>
    %292 = vector.extract_strided_slice %197 {offsets = [0, 3], sizes = [8, 1], strides = [1, 1]} : vector<8x8xf32> to vector<8x1xf32>
    %cst_81 = arith.constant 0.000000e+00 : f32
    %293 = vector.shape_cast %292 : vector<8x1xf32> to vector<8x1xf32>
    %294 = vector.broadcast %293 : vector<8x1xf32> to vector<8x8xf32>
    %295 = vector.broadcast %cst_81 : f32 to vector<8x8xf32>
    %296 = arith.select %291, %294, %295 : vector<8x8xi1>, vector<8x8xf32>
    %297 = arith.addf %289, %296 : vector<8x8xf32>
    %c4_i32_82 = arith.constant 4 : i32
    %298 = vector.broadcast %c4_i32_82 : i32 to vector<8x8xi32>
    %299 = arith.cmpi eq, %32, %298 : vector<8x8xi32>
    %300 = vector.extract_strided_slice %197 {offsets = [0, 4], sizes = [8, 1], strides = [1, 1]} : vector<8x8xf32> to vector<8x1xf32>
    %cst_83 = arith.constant 0.000000e+00 : f32
    %301 = vector.shape_cast %300 : vector<8x1xf32> to vector<8x1xf32>
    %302 = vector.broadcast %301 : vector<8x1xf32> to vector<8x8xf32>
    %303 = vector.broadcast %cst_83 : f32 to vector<8x8xf32>
    %304 = arith.select %299, %302, %303 : vector<8x8xi1>, vector<8x8xf32>
    %305 = arith.addf %297, %304 : vector<8x8xf32>
    %c5_i32_84 = arith.constant 5 : i32
    %306 = vector.broadcast %c5_i32_84 : i32 to vector<8x8xi32>
    %307 = arith.cmpi eq, %32, %306 : vector<8x8xi32>
    %308 = vector.extract_strided_slice %197 {offsets = [0, 5], sizes = [8, 1], strides = [1, 1]} : vector<8x8xf32> to vector<8x1xf32>
    %cst_85 = arith.constant 0.000000e+00 : f32
    %309 = vector.shape_cast %308 : vector<8x1xf32> to vector<8x1xf32>
    %310 = vector.broadcast %309 : vector<8x1xf32> to vector<8x8xf32>
    %311 = vector.broadcast %cst_85 : f32 to vector<8x8xf32>
    %312 = arith.select %307, %310, %311 : vector<8x8xi1>, vector<8x8xf32>
    %313 = arith.addf %305, %312 : vector<8x8xf32>
    %c6_i32_86 = arith.constant 6 : i32
    %314 = vector.broadcast %c6_i32_86 : i32 to vector<8x8xi32>
    %315 = arith.cmpi eq, %32, %314 : vector<8x8xi32>
    %316 = vector.extract_strided_slice %197 {offsets = [0, 6], sizes = [8, 1], strides = [1, 1]} : vector<8x8xf32> to vector<8x1xf32>
    %cst_87 = arith.constant 0.000000e+00 : f32
    %317 = vector.shape_cast %316 : vector<8x1xf32> to vector<8x1xf32>
    %318 = vector.broadcast %317 : vector<8x1xf32> to vector<8x8xf32>
    %319 = vector.broadcast %cst_87 : f32 to vector<8x8xf32>
    %320 = arith.select %315, %318, %319 : vector<8x8xi1>, vector<8x8xf32>
    %321 = arith.addf %313, %320 : vector<8x8xf32>
    %c7_i32_88 = arith.constant 7 : i32
    %322 = vector.broadcast %c7_i32_88 : i32 to vector<8x8xi32>
    %323 = arith.cmpi eq, %32, %322 : vector<8x8xi32>
    %324 = vector.extract_strided_slice %197 {offsets = [0, 7], sizes = [8, 1], strides = [1, 1]} : vector<8x8xf32> to vector<8x1xf32>
    %cst_89 = arith.constant 0.000000e+00 : f32
    %325 = vector.shape_cast %324 : vector<8x1xf32> to vector<8x1xf32>
    %326 = vector.broadcast %325 : vector<8x1xf32> to vector<8x8xf32>
    %327 = vector.broadcast %cst_89 : f32 to vector<8x8xf32>
    %328 = arith.select %323, %326, %327 : vector<8x8xi1>, vector<8x8xf32>
    %329 = arith.addf %321, %328 : vector<8x8xf32>
    %330 = arith.addf %196, %329 : vector<8x8xf32>
    %cst_90 = arith.constant -1.000000e+30 : f32
    %331 = vector.broadcast %cst_90 : f32 to vector<8x8xf32>
    %332 = arith.select %25, %330, %331 : vector<8x8xi1>, vector<8x8xf32>
    %cst_91 = arith.constant dense<0xFF800000> : vector<8xf32>
    %333 = vector.multi_reduction <maximumf>, %264, %cst_91 [1] : vector<8x8xf32> to vector<8xf32>
    %334 = vector.shape_cast %333 : vector<8xf32> to vector<8x1xf32>
    %cst_92 = arith.constant dense<0xFF800000> : vector<8xf32>
    %335 = vector.multi_reduction <maximumf>, %332, %cst_92 [1] : vector<8x8xf32> to vector<8xf32>
    %336 = vector.shape_cast %335 : vector<8xf32> to vector<8x1xf32>
    %337 = arith.maximumf %334, %336 : vector<8x1xf32>
    %338 = vector.broadcast %337 : vector<8x1xf32> to vector<8x8xf32>
    %339 = arith.subf %264, %338 : vector<8x8xf32>
    %340 = math.exp %339 : vector<8x8xf32>
    %341 = vector.broadcast %337 : vector<8x1xf32> to vector<8x8xf32>
    %342 = arith.subf %332, %341 : vector<8x8xf32>
    %343 = math.exp %342 : vector<8x8xf32>
    %cst_93 = arith.constant dense<0.000000e+00> : vector<8xf32>
    %344 = vector.multi_reduction <add>, %340, %cst_93 [1] : vector<8x8xf32> to vector<8xf32>
    %345 = vector.shape_cast %344 : vector<8xf32> to vector<8x1xf32>
    %cst_94 = arith.constant dense<0.000000e+00> : vector<8xf32>
    %346 = vector.multi_reduction <add>, %343, %cst_94 [1] : vector<8x8xf32> to vector<8xf32>
    %347 = vector.shape_cast %346 : vector<8xf32> to vector<8x1xf32>
    %348 = arith.addf %345, %347 : vector<8x1xf32>
    %349 = tpu.reciprocal %348 {approx = true} : vector<8x1xf32> -> vector<8x1xf32>
    %350 = vector.broadcast %349 : vector<8x1xf32> to vector<8x8xf32>
    %351 = arith.mulf %343, %350 : vector<8x8xf32>
    %cst_95 = arith.constant dense<0.000000e+00> : vector<8x8xf32>
    %352 = tpu.matmul %351, %195, %cst_95 {dimension_numbers = #tpu.dot_dimension_numbers<[1], [0], [0], [1], [0, 0, 1, 1], [], []>} : vector<8x8xf32>, vector<8x8xf32>, vector<8x8xf32> -> vector<8x8xf32>
    %353 = vector.extract_strided_slice %5 {offsets = [0, 16], sizes = [8, 8], strides = [1, 1]} : vector<8x32xf32> to vector<8x8xf32>
    %354 = vector.extract_strided_slice %7 {offsets = [0, 16], sizes = [8, 8], strides = [1, 1]} : vector<8x32xf32> to vector<8x8xf32>
    %355 = vector.extract_strided_slice %9 {offsets = [0, 16], sizes = [8, 8], strides = [1, 1]} : vector<8x32xf32> to vector<8x8xf32>
    %cst_96 = arith.constant dense<0.000000e+00> : vector<8x8xf32>
    %356 = tpu.matmul %353, %354, %cst_96 {dimension_numbers = #tpu.dot_dimension_numbers<[1], [1], [0], [0], [0, 0, 1, 0], [], []>} : vector<8x8xf32>, vector<8x8xf32>, vector<8x8xf32> -> vector<8x8xf32>
    %cst_97 = arith.constant dense<0.000000e+00> : vector<8x8xf32>
    %357 = tpu.matmul %353, %10, %cst_97 {dimension_numbers = #tpu.dot_dimension_numbers<[1], [0], [0], [1], [0, 0, 1, 1], [], []>} : vector<8x8xf32>, vector<8x8xf32>, vector<8x8xf32> -> vector<8x8xf32>
    %cst_98 = arith.constant 0.000000e+00 : f32
    %358 = vector.broadcast %cst_98 : f32 to vector<8x8xf32>
    %c0_i32_99 = arith.constant 0 : i32
    %359 = vector.broadcast %c0_i32_99 : i32 to vector<8x8xi32>
    %360 = arith.cmpi eq, %18, %359 : vector<8x8xi32>
    %361 = vector.extract_strided_slice %357 {offsets = [0, 0], sizes = [8, 1], strides = [1, 1]} : vector<8x8xf32> to vector<8x1xf32>
    %cst_100 = arith.constant 0.000000e+00 : f32
    %362 = vector.shape_cast %361 : vector<8x1xf32> to vector<8x1xf32>
    %363 = vector.broadcast %362 : vector<8x1xf32> to vector<8x8xf32>
    %364 = vector.broadcast %cst_100 : f32 to vector<8x8xf32>
    %365 = arith.select %360, %363, %364 : vector<8x8xi1>, vector<8x8xf32>
    %366 = arith.addf %358, %365 : vector<8x8xf32>
    %c1_i32_101 = arith.constant 1 : i32
    %367 = vector.broadcast %c1_i32_101 : i32 to vector<8x8xi32>
    %368 = arith.cmpi eq, %18, %367 : vector<8x8xi32>
    %369 = vector.extract_strided_slice %357 {offsets = [0, 1], sizes = [8, 1], strides = [1, 1]} : vector<8x8xf32> to vector<8x1xf32>
    %cst_102 = arith.constant 0.000000e+00 : f32
    %370 = vector.shape_cast %369 : vector<8x1xf32> to vector<8x1xf32>
    %371 = vector.broadcast %370 : vector<8x1xf32> to vector<8x8xf32>
    %372 = vector.broadcast %cst_102 : f32 to vector<8x8xf32>
    %373 = arith.select %368, %371, %372 : vector<8x8xi1>, vector<8x8xf32>
    %374 = arith.addf %366, %373 : vector<8x8xf32>
    %c2_i32_103 = arith.constant 2 : i32
    %375 = vector.broadcast %c2_i32_103 : i32 to vector<8x8xi32>
    %376 = arith.cmpi eq, %18, %375 : vector<8x8xi32>
    %377 = vector.extract_strided_slice %357 {offsets = [0, 2], sizes = [8, 1], strides = [1, 1]} : vector<8x8xf32> to vector<8x1xf32>
    %cst_104 = arith.constant 0.000000e+00 : f32
    %378 = vector.shape_cast %377 : vector<8x1xf32> to vector<8x1xf32>
    %379 = vector.broadcast %378 : vector<8x1xf32> to vector<8x8xf32>
    %380 = vector.broadcast %cst_104 : f32 to vector<8x8xf32>
    %381 = arith.select %376, %379, %380 : vector<8x8xi1>, vector<8x8xf32>
    %382 = arith.addf %374, %381 : vector<8x8xf32>
    %c3_i32_105 = arith.constant 3 : i32
    %383 = vector.broadcast %c3_i32_105 : i32 to vector<8x8xi32>
    %384 = arith.cmpi eq, %18, %383 : vector<8x8xi32>
    %385 = vector.extract_strided_slice %357 {offsets = [0, 3], sizes = [8, 1], strides = [1, 1]} : vector<8x8xf32> to vector<8x1xf32>
    %cst_106 = arith.constant 0.000000e+00 : f32
    %386 = vector.shape_cast %385 : vector<8x1xf32> to vector<8x1xf32>
    %387 = vector.broadcast %386 : vector<8x1xf32> to vector<8x8xf32>
    %388 = vector.broadcast %cst_106 : f32 to vector<8x8xf32>
    %389 = arith.select %384, %387, %388 : vector<8x8xi1>, vector<8x8xf32>
    %390 = arith.addf %382, %389 : vector<8x8xf32>
    %c4_i32_107 = arith.constant 4 : i32
    %391 = vector.broadcast %c4_i32_107 : i32 to vector<8x8xi32>
    %392 = arith.cmpi eq, %18, %391 : vector<8x8xi32>
    %393 = vector.extract_strided_slice %357 {offsets = [0, 4], sizes = [8, 1], strides = [1, 1]} : vector<8x8xf32> to vector<8x1xf32>
    %cst_108 = arith.constant 0.000000e+00 : f32
    %394 = vector.shape_cast %393 : vector<8x1xf32> to vector<8x1xf32>
    %395 = vector.broadcast %394 : vector<8x1xf32> to vector<8x8xf32>
    %396 = vector.broadcast %cst_108 : f32 to vector<8x8xf32>
    %397 = arith.select %392, %395, %396 : vector<8x8xi1>, vector<8x8xf32>
    %398 = arith.addf %390, %397 : vector<8x8xf32>
    %c5_i32_109 = arith.constant 5 : i32
    %399 = vector.broadcast %c5_i32_109 : i32 to vector<8x8xi32>
    %400 = arith.cmpi eq, %18, %399 : vector<8x8xi32>
    %401 = vector.extract_strided_slice %357 {offsets = [0, 5], sizes = [8, 1], strides = [1, 1]} : vector<8x8xf32> to vector<8x1xf32>
    %cst_110 = arith.constant 0.000000e+00 : f32
    %402 = vector.shape_cast %401 : vector<8x1xf32> to vector<8x1xf32>
    %403 = vector.broadcast %402 : vector<8x1xf32> to vector<8x8xf32>
    %404 = vector.broadcast %cst_110 : f32 to vector<8x8xf32>
    %405 = arith.select %400, %403, %404 : vector<8x8xi1>, vector<8x8xf32>
    %406 = arith.addf %398, %405 : vector<8x8xf32>
    %c6_i32_111 = arith.constant 6 : i32
    %407 = vector.broadcast %c6_i32_111 : i32 to vector<8x8xi32>
    %408 = arith.cmpi eq, %18, %407 : vector<8x8xi32>
    %409 = vector.extract_strided_slice %357 {offsets = [0, 6], sizes = [8, 1], strides = [1, 1]} : vector<8x8xf32> to vector<8x1xf32>
    %cst_112 = arith.constant 0.000000e+00 : f32
    %410 = vector.shape_cast %409 : vector<8x1xf32> to vector<8x1xf32>
    %411 = vector.broadcast %410 : vector<8x1xf32> to vector<8x8xf32>
    %412 = vector.broadcast %cst_112 : f32 to vector<8x8xf32>
    %413 = arith.select %408, %411, %412 : vector<8x8xi1>, vector<8x8xf32>
    %414 = arith.addf %406, %413 : vector<8x8xf32>
    %c7_i32_113 = arith.constant 7 : i32
    %415 = vector.broadcast %c7_i32_113 : i32 to vector<8x8xi32>
    %416 = arith.cmpi eq, %18, %415 : vector<8x8xi32>
    %417 = vector.extract_strided_slice %357 {offsets = [0, 7], sizes = [8, 1], strides = [1, 1]} : vector<8x8xf32> to vector<8x1xf32>
    %cst_114 = arith.constant 0.000000e+00 : f32
    %418 = vector.shape_cast %417 : vector<8x1xf32> to vector<8x1xf32>
    %419 = vector.broadcast %418 : vector<8x1xf32> to vector<8x8xf32>
    %420 = vector.broadcast %cst_114 : f32 to vector<8x8xf32>
    %421 = arith.select %416, %419, %420 : vector<8x8xi1>, vector<8x8xf32>
    %422 = arith.addf %414, %421 : vector<8x8xf32>
    %cst_115 = arith.constant -1.000000e+30 : f32
    %423 = vector.broadcast %cst_115 : f32 to vector<8x8xf32>
    %424 = arith.select %13, %422, %423 : vector<8x8xi1>, vector<8x8xf32>
    %cst_116 = arith.constant 0.000000e+00 : f32
    %425 = vector.broadcast %cst_116 : f32 to vector<8x8xf32>
    %c0_i32_117 = arith.constant 0 : i32
    %426 = vector.broadcast %c0_i32_117 : i32 to vector<8x8xi32>
    %427 = arith.cmpi eq, %32, %426 : vector<8x8xi32>
    %428 = vector.extract_strided_slice %357 {offsets = [0, 0], sizes = [8, 1], strides = [1, 1]} : vector<8x8xf32> to vector<8x1xf32>
    %cst_118 = arith.constant 0.000000e+00 : f32
    %429 = vector.shape_cast %428 : vector<8x1xf32> to vector<8x1xf32>
    %430 = vector.broadcast %429 : vector<8x1xf32> to vector<8x8xf32>
    %431 = vector.broadcast %cst_118 : f32 to vector<8x8xf32>
    %432 = arith.select %427, %430, %431 : vector<8x8xi1>, vector<8x8xf32>
    %433 = arith.addf %425, %432 : vector<8x8xf32>
    %c1_i32_119 = arith.constant 1 : i32
    %434 = vector.broadcast %c1_i32_119 : i32 to vector<8x8xi32>
    %435 = arith.cmpi eq, %32, %434 : vector<8x8xi32>
    %436 = vector.extract_strided_slice %357 {offsets = [0, 1], sizes = [8, 1], strides = [1, 1]} : vector<8x8xf32> to vector<8x1xf32>
    %cst_120 = arith.constant 0.000000e+00 : f32
    %437 = vector.shape_cast %436 : vector<8x1xf32> to vector<8x1xf32>
    %438 = vector.broadcast %437 : vector<8x1xf32> to vector<8x8xf32>
    %439 = vector.broadcast %cst_120 : f32 to vector<8x8xf32>
    %440 = arith.select %435, %438, %439 : vector<8x8xi1>, vector<8x8xf32>
    %441 = arith.addf %433, %440 : vector<8x8xf32>
    %c2_i32_121 = arith.constant 2 : i32
    %442 = vector.broadcast %c2_i32_121 : i32 to vector<8x8xi32>
    %443 = arith.cmpi eq, %32, %442 : vector<8x8xi32>
    %444 = vector.extract_strided_slice %357 {offsets = [0, 2], sizes = [8, 1], strides = [1, 1]} : vector<8x8xf32> to vector<8x1xf32>
    %cst_122 = arith.constant 0.000000e+00 : f32
    %445 = vector.shape_cast %444 : vector<8x1xf32> to vector<8x1xf32>
    %446 = vector.broadcast %445 : vector<8x1xf32> to vector<8x8xf32>
    %447 = vector.broadcast %cst_122 : f32 to vector<8x8xf32>
    %448 = arith.select %443, %446, %447 : vector<8x8xi1>, vector<8x8xf32>
    %449 = arith.addf %441, %448 : vector<8x8xf32>
    %c3_i32_123 = arith.constant 3 : i32
    %450 = vector.broadcast %c3_i32_123 : i32 to vector<8x8xi32>
    %451 = arith.cmpi eq, %32, %450 : vector<8x8xi32>
    %452 = vector.extract_strided_slice %357 {offsets = [0, 3], sizes = [8, 1], strides = [1, 1]} : vector<8x8xf32> to vector<8x1xf32>
    %cst_124 = arith.constant 0.000000e+00 : f32
    %453 = vector.shape_cast %452 : vector<8x1xf32> to vector<8x1xf32>
    %454 = vector.broadcast %453 : vector<8x1xf32> to vector<8x8xf32>
    %455 = vector.broadcast %cst_124 : f32 to vector<8x8xf32>
    %456 = arith.select %451, %454, %455 : vector<8x8xi1>, vector<8x8xf32>
    %457 = arith.addf %449, %456 : vector<8x8xf32>
    %c4_i32_125 = arith.constant 4 : i32
    %458 = vector.broadcast %c4_i32_125 : i32 to vector<8x8xi32>
    %459 = arith.cmpi eq, %32, %458 : vector<8x8xi32>
    %460 = vector.extract_strided_slice %357 {offsets = [0, 4], sizes = [8, 1], strides = [1, 1]} : vector<8x8xf32> to vector<8x1xf32>
    %cst_126 = arith.constant 0.000000e+00 : f32
    %461 = vector.shape_cast %460 : vector<8x1xf32> to vector<8x1xf32>
    %462 = vector.broadcast %461 : vector<8x1xf32> to vector<8x8xf32>
    %463 = vector.broadcast %cst_126 : f32 to vector<8x8xf32>
    %464 = arith.select %459, %462, %463 : vector<8x8xi1>, vector<8x8xf32>
    %465 = arith.addf %457, %464 : vector<8x8xf32>
    %c5_i32_127 = arith.constant 5 : i32
    %466 = vector.broadcast %c5_i32_127 : i32 to vector<8x8xi32>
    %467 = arith.cmpi eq, %32, %466 : vector<8x8xi32>
    %468 = vector.extract_strided_slice %357 {offsets = [0, 5], sizes = [8, 1], strides = [1, 1]} : vector<8x8xf32> to vector<8x1xf32>
    %cst_128 = arith.constant 0.000000e+00 : f32
    %469 = vector.shape_cast %468 : vector<8x1xf32> to vector<8x1xf32>
    %470 = vector.broadcast %469 : vector<8x1xf32> to vector<8x8xf32>
    %471 = vector.broadcast %cst_128 : f32 to vector<8x8xf32>
    %472 = arith.select %467, %470, %471 : vector<8x8xi1>, vector<8x8xf32>
    %473 = arith.addf %465, %472 : vector<8x8xf32>
    %c6_i32_129 = arith.constant 6 : i32
    %474 = vector.broadcast %c6_i32_129 : i32 to vector<8x8xi32>
    %475 = arith.cmpi eq, %32, %474 : vector<8x8xi32>
    %476 = vector.extract_strided_slice %357 {offsets = [0, 6], sizes = [8, 1], strides = [1, 1]} : vector<8x8xf32> to vector<8x1xf32>
    %cst_130 = arith.constant 0.000000e+00 : f32
    %477 = vector.shape_cast %476 : vector<8x1xf32> to vector<8x1xf32>
    %478 = vector.broadcast %477 : vector<8x1xf32> to vector<8x8xf32>
    %479 = vector.broadcast %cst_130 : f32 to vector<8x8xf32>
    %480 = arith.select %475, %478, %479 : vector<8x8xi1>, vector<8x8xf32>
    %481 = arith.addf %473, %480 : vector<8x8xf32>
    %c7_i32_131 = arith.constant 7 : i32
    %482 = vector.broadcast %c7_i32_131 : i32 to vector<8x8xi32>
    %483 = arith.cmpi eq, %32, %482 : vector<8x8xi32>
    %484 = vector.extract_strided_slice %357 {offsets = [0, 7], sizes = [8, 1], strides = [1, 1]} : vector<8x8xf32> to vector<8x1xf32>
    %cst_132 = arith.constant 0.000000e+00 : f32
    %485 = vector.shape_cast %484 : vector<8x1xf32> to vector<8x1xf32>
    %486 = vector.broadcast %485 : vector<8x1xf32> to vector<8x8xf32>
    %487 = vector.broadcast %cst_132 : f32 to vector<8x8xf32>
    %488 = arith.select %483, %486, %487 : vector<8x8xi1>, vector<8x8xf32>
    %489 = arith.addf %481, %488 : vector<8x8xf32>
    %490 = arith.addf %356, %489 : vector<8x8xf32>
    %cst_133 = arith.constant -1.000000e+30 : f32
    %491 = vector.broadcast %cst_133 : f32 to vector<8x8xf32>
    %492 = arith.select %25, %490, %491 : vector<8x8xi1>, vector<8x8xf32>
    %cst_134 = arith.constant dense<0xFF800000> : vector<8xf32>
    %493 = vector.multi_reduction <maximumf>, %424, %cst_134 [1] : vector<8x8xf32> to vector<8xf32>
    %494 = vector.shape_cast %493 : vector<8xf32> to vector<8x1xf32>
    %cst_135 = arith.constant dense<0xFF800000> : vector<8xf32>
    %495 = vector.multi_reduction <maximumf>, %492, %cst_135 [1] : vector<8x8xf32> to vector<8xf32>
    %496 = vector.shape_cast %495 : vector<8xf32> to vector<8x1xf32>
    %497 = arith.maximumf %494, %496 : vector<8x1xf32>
    %498 = vector.broadcast %497 : vector<8x1xf32> to vector<8x8xf32>
    %499 = arith.subf %424, %498 : vector<8x8xf32>
    %500 = math.exp %499 : vector<8x8xf32>
    %501 = vector.broadcast %497 : vector<8x1xf32> to vector<8x8xf32>
    %502 = arith.subf %492, %501 : vector<8x8xf32>
    %503 = math.exp %502 : vector<8x8xf32>
    %cst_136 = arith.constant dense<0.000000e+00> : vector<8xf32>
    %504 = vector.multi_reduction <add>, %500, %cst_136 [1] : vector<8x8xf32> to vector<8xf32>
    %505 = vector.shape_cast %504 : vector<8xf32> to vector<8x1xf32>
    %cst_137 = arith.constant dense<0.000000e+00> : vector<8xf32>
    %506 = vector.multi_reduction <add>, %503, %cst_137 [1] : vector<8x8xf32> to vector<8xf32>
    %507 = vector.shape_cast %506 : vector<8xf32> to vector<8x1xf32>
    %508 = arith.addf %505, %507 : vector<8x1xf32>
    %509 = tpu.reciprocal %508 {approx = true} : vector<8x1xf32> -> vector<8x1xf32>
    %510 = vector.broadcast %509 : vector<8x1xf32> to vector<8x8xf32>
    %511 = arith.mulf %503, %510 : vector<8x8xf32>
    %cst_138 = arith.constant dense<0.000000e+00> : vector<8x8xf32>
    %512 = tpu.matmul %511, %355, %cst_138 {dimension_numbers = #tpu.dot_dimension_numbers<[1], [0], [0], [1], [0, 0, 1, 1], [], []>} : vector<8x8xf32>, vector<8x8xf32>, vector<8x8xf32> -> vector<8x8xf32>
    %513 = vector.extract_strided_slice %5 {offsets = [0, 24], sizes = [8, 8], strides = [1, 1]} : vector<8x32xf32> to vector<8x8xf32>
    %514 = vector.extract_strided_slice %7 {offsets = [0, 24], sizes = [8, 8], strides = [1, 1]} : vector<8x32xf32> to vector<8x8xf32>
    %515 = vector.extract_strided_slice %9 {offsets = [0, 24], sizes = [8, 8], strides = [1, 1]} : vector<8x32xf32> to vector<8x8xf32>
    %cst_139 = arith.constant dense<0.000000e+00> : vector<8x8xf32>
    %516 = tpu.matmul %513, %514, %cst_139 {dimension_numbers = #tpu.dot_dimension_numbers<[1], [1], [0], [0], [0, 0, 1, 0], [], []>} : vector<8x8xf32>, vector<8x8xf32>, vector<8x8xf32> -> vector<8x8xf32>
    %cst_140 = arith.constant dense<0.000000e+00> : vector<8x8xf32>
    %517 = tpu.matmul %513, %10, %cst_140 {dimension_numbers = #tpu.dot_dimension_numbers<[1], [0], [0], [1], [0, 0, 1, 1], [], []>} : vector<8x8xf32>, vector<8x8xf32>, vector<8x8xf32> -> vector<8x8xf32>
    %cst_141 = arith.constant 0.000000e+00 : f32
    %518 = vector.broadcast %cst_141 : f32 to vector<8x8xf32>
    %c0_i32_142 = arith.constant 0 : i32
    %519 = vector.broadcast %c0_i32_142 : i32 to vector<8x8xi32>
    %520 = arith.cmpi eq, %18, %519 : vector<8x8xi32>
    %521 = vector.extract_strided_slice %517 {offsets = [0, 0], sizes = [8, 1], strides = [1, 1]} : vector<8x8xf32> to vector<8x1xf32>
    %cst_143 = arith.constant 0.000000e+00 : f32
    %522 = vector.shape_cast %521 : vector<8x1xf32> to vector<8x1xf32>
    %523 = vector.broadcast %522 : vector<8x1xf32> to vector<8x8xf32>
    %524 = vector.broadcast %cst_143 : f32 to vector<8x8xf32>
    %525 = arith.select %520, %523, %524 : vector<8x8xi1>, vector<8x8xf32>
    %526 = arith.addf %518, %525 : vector<8x8xf32>
    %c1_i32_144 = arith.constant 1 : i32
    %527 = vector.broadcast %c1_i32_144 : i32 to vector<8x8xi32>
    %528 = arith.cmpi eq, %18, %527 : vector<8x8xi32>
    %529 = vector.extract_strided_slice %517 {offsets = [0, 1], sizes = [8, 1], strides = [1, 1]} : vector<8x8xf32> to vector<8x1xf32>
    %cst_145 = arith.constant 0.000000e+00 : f32
    %530 = vector.shape_cast %529 : vector<8x1xf32> to vector<8x1xf32>
    %531 = vector.broadcast %530 : vector<8x1xf32> to vector<8x8xf32>
    %532 = vector.broadcast %cst_145 : f32 to vector<8x8xf32>
    %533 = arith.select %528, %531, %532 : vector<8x8xi1>, vector<8x8xf32>
    %534 = arith.addf %526, %533 : vector<8x8xf32>
    %c2_i32_146 = arith.constant 2 : i32
    %535 = vector.broadcast %c2_i32_146 : i32 to vector<8x8xi32>
    %536 = arith.cmpi eq, %18, %535 : vector<8x8xi32>
    %537 = vector.extract_strided_slice %517 {offsets = [0, 2], sizes = [8, 1], strides = [1, 1]} : vector<8x8xf32> to vector<8x1xf32>
    %cst_147 = arith.constant 0.000000e+00 : f32
    %538 = vector.shape_cast %537 : vector<8x1xf32> to vector<8x1xf32>
    %539 = vector.broadcast %538 : vector<8x1xf32> to vector<8x8xf32>
    %540 = vector.broadcast %cst_147 : f32 to vector<8x8xf32>
    %541 = arith.select %536, %539, %540 : vector<8x8xi1>, vector<8x8xf32>
    %542 = arith.addf %534, %541 : vector<8x8xf32>
    %c3_i32_148 = arith.constant 3 : i32
    %543 = vector.broadcast %c3_i32_148 : i32 to vector<8x8xi32>
    %544 = arith.cmpi eq, %18, %543 : vector<8x8xi32>
    %545 = vector.extract_strided_slice %517 {offsets = [0, 3], sizes = [8, 1], strides = [1, 1]} : vector<8x8xf32> to vector<8x1xf32>
    %cst_149 = arith.constant 0.000000e+00 : f32
    %546 = vector.shape_cast %545 : vector<8x1xf32> to vector<8x1xf32>
    %547 = vector.broadcast %546 : vector<8x1xf32> to vector<8x8xf32>
    %548 = vector.broadcast %cst_149 : f32 to vector<8x8xf32>
    %549 = arith.select %544, %547, %548 : vector<8x8xi1>, vector<8x8xf32>
    %550 = arith.addf %542, %549 : vector<8x8xf32>
    %c4_i32_150 = arith.constant 4 : i32
    %551 = vector.broadcast %c4_i32_150 : i32 to vector<8x8xi32>
    %552 = arith.cmpi eq, %18, %551 : vector<8x8xi32>
    %553 = vector.extract_strided_slice %517 {offsets = [0, 4], sizes = [8, 1], strides = [1, 1]} : vector<8x8xf32> to vector<8x1xf32>
    %cst_151 = arith.constant 0.000000e+00 : f32
    %554 = vector.shape_cast %553 : vector<8x1xf32> to vector<8x1xf32>
    %555 = vector.broadcast %554 : vector<8x1xf32> to vector<8x8xf32>
    %556 = vector.broadcast %cst_151 : f32 to vector<8x8xf32>
    %557 = arith.select %552, %555, %556 : vector<8x8xi1>, vector<8x8xf32>
    %558 = arith.addf %550, %557 : vector<8x8xf32>
    %c5_i32_152 = arith.constant 5 : i32
    %559 = vector.broadcast %c5_i32_152 : i32 to vector<8x8xi32>
    %560 = arith.cmpi eq, %18, %559 : vector<8x8xi32>
    %561 = vector.extract_strided_slice %517 {offsets = [0, 5], sizes = [8, 1], strides = [1, 1]} : vector<8x8xf32> to vector<8x1xf32>
    %cst_153 = arith.constant 0.000000e+00 : f32
    %562 = vector.shape_cast %561 : vector<8x1xf32> to vector<8x1xf32>
    %563 = vector.broadcast %562 : vector<8x1xf32> to vector<8x8xf32>
    %564 = vector.broadcast %cst_153 : f32 to vector<8x8xf32>
    %565 = arith.select %560, %563, %564 : vector<8x8xi1>, vector<8x8xf32>
    %566 = arith.addf %558, %565 : vector<8x8xf32>
    %c6_i32_154 = arith.constant 6 : i32
    %567 = vector.broadcast %c6_i32_154 : i32 to vector<8x8xi32>
    %568 = arith.cmpi eq, %18, %567 : vector<8x8xi32>
    %569 = vector.extract_strided_slice %517 {offsets = [0, 6], sizes = [8, 1], strides = [1, 1]} : vector<8x8xf32> to vector<8x1xf32>
    %cst_155 = arith.constant 0.000000e+00 : f32
    %570 = vector.shape_cast %569 : vector<8x1xf32> to vector<8x1xf32>
    %571 = vector.broadcast %570 : vector<8x1xf32> to vector<8x8xf32>
    %572 = vector.broadcast %cst_155 : f32 to vector<8x8xf32>
    %573 = arith.select %568, %571, %572 : vector<8x8xi1>, vector<8x8xf32>
    %574 = arith.addf %566, %573 : vector<8x8xf32>
    %c7_i32_156 = arith.constant 7 : i32
    %575 = vector.broadcast %c7_i32_156 : i32 to vector<8x8xi32>
    %576 = arith.cmpi eq, %18, %575 : vector<8x8xi32>
    %577 = vector.extract_strided_slice %517 {offsets = [0, 7], sizes = [8, 1], strides = [1, 1]} : vector<8x8xf32> to vector<8x1xf32>
    %cst_157 = arith.constant 0.000000e+00 : f32
    %578 = vector.shape_cast %577 : vector<8x1xf32> to vector<8x1xf32>
    %579 = vector.broadcast %578 : vector<8x1xf32> to vector<8x8xf32>
    %580 = vector.broadcast %cst_157 : f32 to vector<8x8xf32>
    %581 = arith.select %576, %579, %580 : vector<8x8xi1>, vector<8x8xf32>
    %582 = arith.addf %574, %581 : vector<8x8xf32>
    %cst_158 = arith.constant -1.000000e+30 : f32
    %583 = vector.broadcast %cst_158 : f32 to vector<8x8xf32>
    %584 = arith.select %13, %582, %583 : vector<8x8xi1>, vector<8x8xf32>
    %cst_159 = arith.constant 0.000000e+00 : f32
    %585 = vector.broadcast %cst_159 : f32 to vector<8x8xf32>
    %c0_i32_160 = arith.constant 0 : i32
    %586 = vector.broadcast %c0_i32_160 : i32 to vector<8x8xi32>
    %587 = arith.cmpi eq, %32, %586 : vector<8x8xi32>
    %588 = vector.extract_strided_slice %517 {offsets = [0, 0], sizes = [8, 1], strides = [1, 1]} : vector<8x8xf32> to vector<8x1xf32>
    %cst_161 = arith.constant 0.000000e+00 : f32
    %589 = vector.shape_cast %588 : vector<8x1xf32> to vector<8x1xf32>
    %590 = vector.broadcast %589 : vector<8x1xf32> to vector<8x8xf32>
    %591 = vector.broadcast %cst_161 : f32 to vector<8x8xf32>
    %592 = arith.select %587, %590, %591 : vector<8x8xi1>, vector<8x8xf32>
    %593 = arith.addf %585, %592 : vector<8x8xf32>
    %c1_i32_162 = arith.constant 1 : i32
    %594 = vector.broadcast %c1_i32_162 : i32 to vector<8x8xi32>
    %595 = arith.cmpi eq, %32, %594 : vector<8x8xi32>
    %596 = vector.extract_strided_slice %517 {offsets = [0, 1], sizes = [8, 1], strides = [1, 1]} : vector<8x8xf32> to vector<8x1xf32>
    %cst_163 = arith.constant 0.000000e+00 : f32
    %597 = vector.shape_cast %596 : vector<8x1xf32> to vector<8x1xf32>
    %598 = vector.broadcast %597 : vector<8x1xf32> to vector<8x8xf32>
    %599 = vector.broadcast %cst_163 : f32 to vector<8x8xf32>
    %600 = arith.select %595, %598, %599 : vector<8x8xi1>, vector<8x8xf32>
    %601 = arith.addf %593, %600 : vector<8x8xf32>
    %c2_i32_164 = arith.constant 2 : i32
    %602 = vector.broadcast %c2_i32_164 : i32 to vector<8x8xi32>
    %603 = arith.cmpi eq, %32, %602 : vector<8x8xi32>
    %604 = vector.extract_strided_slice %517 {offsets = [0, 2], sizes = [8, 1], strides = [1, 1]} : vector<8x8xf32> to vector<8x1xf32>
    %cst_165 = arith.constant 0.000000e+00 : f32
    %605 = vector.shape_cast %604 : vector<8x1xf32> to vector<8x1xf32>
    %606 = vector.broadcast %605 : vector<8x1xf32> to vector<8x8xf32>
    %607 = vector.broadcast %cst_165 : f32 to vector<8x8xf32>
    %608 = arith.select %603, %606, %607 : vector<8x8xi1>, vector<8x8xf32>
    %609 = arith.addf %601, %608 : vector<8x8xf32>
    %c3_i32_166 = arith.constant 3 : i32
    %610 = vector.broadcast %c3_i32_166 : i32 to vector<8x8xi32>
    %611 = arith.cmpi eq, %32, %610 : vector<8x8xi32>
    %612 = vector.extract_strided_slice %517 {offsets = [0, 3], sizes = [8, 1], strides = [1, 1]} : vector<8x8xf32> to vector<8x1xf32>
    %cst_167 = arith.constant 0.000000e+00 : f32
    %613 = vector.shape_cast %612 : vector<8x1xf32> to vector<8x1xf32>
    %614 = vector.broadcast %613 : vector<8x1xf32> to vector<8x8xf32>
    %615 = vector.broadcast %cst_167 : f32 to vector<8x8xf32>
    %616 = arith.select %611, %614, %615 : vector<8x8xi1>, vector<8x8xf32>
    %617 = arith.addf %609, %616 : vector<8x8xf32>
    %c4_i32_168 = arith.constant 4 : i32
    %618 = vector.broadcast %c4_i32_168 : i32 to vector<8x8xi32>
    %619 = arith.cmpi eq, %32, %618 : vector<8x8xi32>
    %620 = vector.extract_strided_slice %517 {offsets = [0, 4], sizes = [8, 1], strides = [1, 1]} : vector<8x8xf32> to vector<8x1xf32>
    %cst_169 = arith.constant 0.000000e+00 : f32
    %621 = vector.shape_cast %620 : vector<8x1xf32> to vector<8x1xf32>
    %622 = vector.broadcast %621 : vector<8x1xf32> to vector<8x8xf32>
    %623 = vector.broadcast %cst_169 : f32 to vector<8x8xf32>
    %624 = arith.select %619, %622, %623 : vector<8x8xi1>, vector<8x8xf32>
    %625 = arith.addf %617, %624 : vector<8x8xf32>
    %c5_i32_170 = arith.constant 5 : i32
    %626 = vector.broadcast %c5_i32_170 : i32 to vector<8x8xi32>
    %627 = arith.cmpi eq, %32, %626 : vector<8x8xi32>
    %628 = vector.extract_strided_slice %517 {offsets = [0, 5], sizes = [8, 1], strides = [1, 1]} : vector<8x8xf32> to vector<8x1xf32>
    %cst_171 = arith.constant 0.000000e+00 : f32
    %629 = vector.shape_cast %628 : vector<8x1xf32> to vector<8x1xf32>
    %630 = vector.broadcast %629 : vector<8x1xf32> to vector<8x8xf32>
    %631 = vector.broadcast %cst_171 : f32 to vector<8x8xf32>
    %632 = arith.select %627, %630, %631 : vector<8x8xi1>, vector<8x8xf32>
    %633 = arith.addf %625, %632 : vector<8x8xf32>
    %c6_i32_172 = arith.constant 6 : i32
    %634 = vector.broadcast %c6_i32_172 : i32 to vector<8x8xi32>
    %635 = arith.cmpi eq, %32, %634 : vector<8x8xi32>
    %636 = vector.extract_strided_slice %517 {offsets = [0, 6], sizes = [8, 1], strides = [1, 1]} : vector<8x8xf32> to vector<8x1xf32>
    %cst_173 = arith.constant 0.000000e+00 : f32
    %637 = vector.shape_cast %636 : vector<8x1xf32> to vector<8x1xf32>
    %638 = vector.broadcast %637 : vector<8x1xf32> to vector<8x8xf32>
    %639 = vector.broadcast %cst_173 : f32 to vector<8x8xf32>
    %640 = arith.select %635, %638, %639 : vector<8x8xi1>, vector<8x8xf32>
    %641 = arith.addf %633, %640 : vector<8x8xf32>
    %c7_i32_174 = arith.constant 7 : i32
    %642 = vector.broadcast %c7_i32_174 : i32 to vector<8x8xi32>
    %643 = arith.cmpi eq, %32, %642 : vector<8x8xi32>
    %644 = vector.extract_strided_slice %517 {offsets = [0, 7], sizes = [8, 1], strides = [1, 1]} : vector<8x8xf32> to vector<8x1xf32>
    %cst_175 = arith.constant 0.000000e+00 : f32
    %645 = vector.shape_cast %644 : vector<8x1xf32> to vector<8x1xf32>
    %646 = vector.broadcast %645 : vector<8x1xf32> to vector<8x8xf32>
    %647 = vector.broadcast %cst_175 : f32 to vector<8x8xf32>
    %648 = arith.select %643, %646, %647 : vector<8x8xi1>, vector<8x8xf32>
    %649 = arith.addf %641, %648 : vector<8x8xf32>
    %650 = arith.addf %516, %649 : vector<8x8xf32>
    %cst_176 = arith.constant -1.000000e+30 : f32
    %651 = vector.broadcast %cst_176 : f32 to vector<8x8xf32>
    %652 = arith.select %25, %650, %651 : vector<8x8xi1>, vector<8x8xf32>
    %cst_177 = arith.constant dense<0xFF800000> : vector<8xf32>
    %653 = vector.multi_reduction <maximumf>, %584, %cst_177 [1] : vector<8x8xf32> to vector<8xf32>
    %654 = vector.shape_cast %653 : vector<8xf32> to vector<8x1xf32>
    %cst_178 = arith.constant dense<0xFF800000> : vector<8xf32>
    %655 = vector.multi_reduction <maximumf>, %652, %cst_178 [1] : vector<8x8xf32> to vector<8xf32>
    %656 = vector.shape_cast %655 : vector<8xf32> to vector<8x1xf32>
    %657 = arith.maximumf %654, %656 : vector<8x1xf32>
    %658 = vector.broadcast %657 : vector<8x1xf32> to vector<8x8xf32>
    %659 = arith.subf %584, %658 : vector<8x8xf32>
    %660 = math.exp %659 : vector<8x8xf32>
    %661 = vector.broadcast %657 : vector<8x1xf32> to vector<8x8xf32>
    %662 = arith.subf %652, %661 : vector<8x8xf32>
    %663 = math.exp %662 : vector<8x8xf32>
    %cst_179 = arith.constant dense<0.000000e+00> : vector<8xf32>
    %664 = vector.multi_reduction <add>, %660, %cst_179 [1] : vector<8x8xf32> to vector<8xf32>
    %665 = vector.shape_cast %664 : vector<8xf32> to vector<8x1xf32>
    %cst_180 = arith.constant dense<0.000000e+00> : vector<8xf32>
    %666 = vector.multi_reduction <add>, %663, %cst_180 [1] : vector<8x8xf32> to vector<8xf32>
    %667 = vector.shape_cast %666 : vector<8xf32> to vector<8x1xf32>
    %668 = arith.addf %665, %667 : vector<8x1xf32>
    %669 = tpu.reciprocal %668 {approx = true} : vector<8x1xf32> -> vector<8x1xf32>
    %670 = vector.broadcast %669 : vector<8x1xf32> to vector<8x8xf32>
    %671 = arith.mulf %663, %670 : vector<8x8xf32>
    %cst_181 = arith.constant dense<0.000000e+00> : vector<8x8xf32>
    %672 = tpu.matmul %671, %515, %cst_181 {dimension_numbers = #tpu.dot_dimension_numbers<[1], [0], [0], [1], [0, 0, 1, 1], [], []>} : vector<8x8xf32>, vector<8x8xf32>, vector<8x8xf32> -> vector<8x8xf32>
    %673 = tpu.concatenate %192, %352, %512, %672 in 1 : vector<8x8xf32>, vector<8x8xf32>, vector<8x8xf32>, vector<8x8xf32> -> vector<8x32xf32>
    %c0_182 = arith.constant 0 : index
    %c0_183 = arith.constant 0 : index
    %674 = vector.load %arg5[%c0_182, %c0_183] : memref<32x32xf32, #tpu.memory_space<vmem>>, vector<32x32xf32>
    %cst_184 = arith.constant dense<0.000000e+00> : vector<8x32xf32>
    %675 = tpu.matmul %673, %674, %cst_184 {dimension_numbers = #tpu.dot_dimension_numbers<[1], [0], [0], [1], [0, 0, 1, 1], [], []>} : vector<8x32xf32>, vector<32x32xf32>, vector<8x32xf32> -> vector<8x32xf32>
    %676 = arith.addf %1, %675 : vector<8x32xf32>
    %c0_185 = arith.constant 0 : index
    %c0_186 = arith.constant 0 : index
    %677 = vector.load %arg7[%c0_185, %c0_186] : memref<1x32xf32, #tpu.memory_space<vmem>>, vector<1x32xf32>
    %c0_187 = arith.constant 0 : index
    %c0_188 = arith.constant 0 : index
    %678 = vector.load %arg8[%c0_187, %c0_188] : memref<1x32xf32, #tpu.memory_space<vmem>>, vector<1x32xf32>
    %cst_189 = arith.constant dense<0.000000e+00> : vector<8xf32>
    %679 = vector.multi_reduction <add>, %676, %cst_189 [1] : vector<8x32xf32> to vector<8xf32>
    %680 = vector.shape_cast %679 : vector<8xf32> to vector<8x1xf32>
    %cst_190 = arith.constant 3.200000e+01 : f32
    %681 = vector.broadcast %cst_190 : f32 to vector<8x1xf32>
    %682 = arith.divf %680, %681 : vector<8x1xf32>
    %683 = vector.broadcast %682 : vector<8x1xf32> to vector<8x32xf32>
    %684 = arith.subf %676, %683 : vector<8x32xf32>
    %685 = arith.mulf %684, %684 : vector<8x32xf32>
    %cst_191 = arith.constant dense<0.000000e+00> : vector<8xf32>
    %686 = vector.multi_reduction <add>, %685, %cst_191 [1] : vector<8x32xf32> to vector<8xf32>
    %687 = vector.shape_cast %686 : vector<8xf32> to vector<8x1xf32>
    %cst_192 = arith.constant 3.200000e+01 : f32
    %688 = vector.broadcast %cst_192 : f32 to vector<8x1xf32>
    %689 = arith.divf %687, %688 : vector<8x1xf32>
    %690 = vector.broadcast %682 : vector<8x1xf32> to vector<8x32xf32>
    %691 = arith.subf %676, %690 : vector<8x32xf32>
    %cst_193 = arith.constant 9.99999974E-6 : f32
    %692 = vector.broadcast %cst_193 : f32 to vector<8x1xf32>
    %693 = arith.addf %689, %692 : vector<8x1xf32>
    %694 = math.rsqrt %693 : vector<8x1xf32>
    %695 = vector.broadcast %694 : vector<8x1xf32> to vector<8x32xf32>
    %696 = arith.mulf %691, %695 : vector<8x32xf32>
    %697 = vector.broadcast %677 : vector<1x32xf32> to vector<8x32xf32>
    %698 = arith.mulf %696, %697 : vector<8x32xf32>
    %699 = vector.broadcast %678 : vector<1x32xf32> to vector<8x32xf32>
    %700 = arith.addf %698, %699 : vector<8x32xf32>
    %c0_194 = arith.constant 0 : index
    %c0_195 = arith.constant 0 : index
    %701 = vector.load %arg9[%c0_194, %c0_195] : memref<32x64xf32, #tpu.memory_space<vmem>>, vector<32x64xf32>
    %cst_196 = arith.constant dense<0.000000e+00> : vector<8x64xf32>
    %702 = tpu.matmul %700, %701, %cst_196 {dimension_numbers = #tpu.dot_dimension_numbers<[1], [0], [0], [1], [0, 0, 1, 1], [], []>} : vector<8x32xf32>, vector<32x64xf32>, vector<8x64xf32> -> vector<8x64xf32>
    %c0_197 = arith.constant 0 : index
    %c0_198 = arith.constant 0 : index
    %703 = vector.load %arg10[%c0_197, %c0_198] : memref<1x64xf32, #tpu.memory_space<vmem>>, vector<1x64xf32>
    %704 = vector.broadcast %703 : vector<1x64xf32> to vector<8x64xf32>
    %705 = arith.addf %702, %704 : vector<8x64xf32>
    %cst_199 = arith.constant 0.000000e+00 : f32
    %706 = vector.broadcast %cst_199 : f32 to vector<8x64xf32>
    %707 = arith.maximumf %705, %706 : vector<8x64xf32>
    %c0_200 = arith.constant 0 : index
    %c0_201 = arith.constant 0 : index
    %708 = vector.load %arg11[%c0_200, %c0_201] : memref<64x32xf32, #tpu.memory_space<vmem>>, vector<64x32xf32>
    %cst_202 = arith.constant dense<0.000000e+00> : vector<8x32xf32>
    %709 = tpu.matmul %707, %708, %cst_202 {dimension_numbers = #tpu.dot_dimension_numbers<[1], [0], [0], [1], [0, 0, 1, 1], [], []>} : vector<8x64xf32>, vector<64x32xf32>, vector<8x32xf32> -> vector<8x32xf32>
    %c0_203 = arith.constant 0 : index
    %c0_204 = arith.constant 0 : index
    %710 = vector.load %arg12[%c0_203, %c0_204] : memref<1x32xf32, #tpu.memory_space<vmem>>, vector<1x32xf32>
    %711 = vector.broadcast %710 : vector<1x32xf32> to vector<8x32xf32>
    %712 = arith.addf %709, %711 : vector<8x32xf32>
    %713 = arith.addf %700, %712 : vector<8x32xf32>
    %c0_205 = arith.constant 0 : index
    %c0_206 = arith.constant 0 : index
    %714 = vector.load %arg13[%c0_205, %c0_206] : memref<1x32xf32, #tpu.memory_space<vmem>>, vector<1x32xf32>
    %c0_207 = arith.constant 0 : index
    %c0_208 = arith.constant 0 : index
    %715 = vector.load %arg14[%c0_207, %c0_208] : memref<1x32xf32, #tpu.memory_space<vmem>>, vector<1x32xf32>
    %cst_209 = arith.constant dense<0.000000e+00> : vector<8xf32>
    %716 = vector.multi_reduction <add>, %713, %cst_209 [1] : vector<8x32xf32> to vector<8xf32>
    %717 = vector.shape_cast %716 : vector<8xf32> to vector<8x1xf32>
    %cst_210 = arith.constant 3.200000e+01 : f32
    %718 = vector.broadcast %cst_210 : f32 to vector<8x1xf32>
    %719 = arith.divf %717, %718 : vector<8x1xf32>
    %720 = vector.broadcast %719 : vector<8x1xf32> to vector<8x32xf32>
    %721 = arith.subf %713, %720 : vector<8x32xf32>
    %722 = arith.mulf %721, %721 : vector<8x32xf32>
    %cst_211 = arith.constant dense<0.000000e+00> : vector<8xf32>
    %723 = vector.multi_reduction <add>, %722, %cst_211 [1] : vector<8x32xf32> to vector<8xf32>
    %724 = vector.shape_cast %723 : vector<8xf32> to vector<8x1xf32>
    %cst_212 = arith.constant 3.200000e+01 : f32
    %725 = vector.broadcast %cst_212 : f32 to vector<8x1xf32>
    %726 = arith.divf %724, %725 : vector<8x1xf32>
    %727 = vector.broadcast %719 : vector<8x1xf32> to vector<8x32xf32>
    %728 = arith.subf %713, %727 : vector<8x32xf32>
    %cst_213 = arith.constant 9.99999974E-6 : f32
    %729 = vector.broadcast %cst_213 : f32 to vector<8x1xf32>
    %730 = arith.addf %726, %729 : vector<8x1xf32>
    %731 = math.rsqrt %730 : vector<8x1xf32>
    %732 = vector.broadcast %731 : vector<8x1xf32> to vector<8x32xf32>
    %733 = arith.mulf %728, %732 : vector<8x32xf32>
    %734 = vector.broadcast %714 : vector<1x32xf32> to vector<8x32xf32>
    %735 = arith.mulf %733, %734 : vector<8x32xf32>
    %736 = vector.broadcast %715 : vector<1x32xf32> to vector<8x32xf32>
    %737 = arith.addf %735, %736 : vector<8x32xf32>
    %c0_214 = arith.constant 0 : index
    %c0_215 = arith.constant 0 : index
    %c0_216 = arith.constant 0 : index
    %738 = vector.load %arg15[%c0_214, %c0_215, %c0_216] : memref<1x8x32xf32, #tpu.memory_space<vmem>>, vector<1x8x32xf32>
    %739 = vector.shape_cast %738 : vector<1x8x32xf32> to vector<8x32xf32>
    %740 = vector.shape_cast %737 : vector<8x32xf32> to vector<1x8x32xf32>
    tpu.vector_store %arg15[%c0_214, %c0_215, %c0_216], %740 {strides = array<i32>} : memref<1x8x32xf32, #tpu.memory_space<vmem>>, vector<1x8x32xf32>,
    return
  }
  func.func @transform_0(%arg0: i32) -> (i32, i32, i32) {
    %c0_i32 = arith.constant 0 : i32
    %c0_i32_0 = arith.constant 0 : i32
    %c0_i32_1 = arith.constant 0 : i32
    return %arg0, %c0_i32, %c0_i32_0 : i32, i32, i32
  }
  func.func @transform_1(%arg0: i32) -> (i32, i32) {
    %c0_i32 = arith.constant 0 : i32
    %c0_i32_0 = arith.constant 0 : i32
    %c0_i32_1 = arith.constant 0 : i32
    return %c0_i32, %c0_i32_0 : i32, i32
  }
  func.func @transform_2(%arg0: i32) -> (i32, i32) {
    %c0_i32 = arith.constant 0 : i32
    %c0_i32_0 = arith.constant 0 : i32
    %c0_i32_1 = arith.constant 0 : i32
    return %c0_i32, %c0_i32_0 : i32, i32
  }
  func.func @transform_3(%arg0: i32) -> (i32, i32) {
    %c0_i32 = arith.constant 0 : i32
    %c0_i32_0 = arith.constant 0 : i32
    %c0_i32_1 = arith.constant 0 : i32
    return %c0_i32, %c0_i32_0 : i32, i32
  }
  func.func @transform_4(%arg0: i32) -> (i32, i32) {
    %c0_i32 = arith.constant 0 : i32
    %c0_i32_0 = arith.constant 0 : i32
    %c0_i32_1 = arith.constant 0 : i32
    return %c0_i32, %c0_i32_0 : i32, i32
  }
  func.func @transform_5(%arg0: i32) -> (i32, i32) {
    %c0_i32 = arith.constant 0 : i32
    %c0_i32_0 = arith.constant 0 : i32
    %c0_i32_1 = arith.constant 0 : i32
    return %c0_i32, %c0_i32_0 : i32, i32
  }
  func.func @transform_6(%arg0: i32) -> (i32, i32) {
    %c0_i32 = arith.constant 0 : i32
    %c0_i32_0 = arith.constant 0 : i32
    %c0_i32_1 = arith.constant 0 : i32
    return %c0_i32, %c0_i32_0 : i32, i32
  }
  func.func @transform_7(%arg0: i32) -> (i32, i32) {
    %c0_i32 = arith.constant 0 : i32
    %c0_i32_0 = arith.constant 0 : i32
    %c0_i32_1 = arith.constant 0 : i32
    return %c0_i32, %c0_i32_0 : i32, i32
  }
  func.func @transform_8(%arg0: i32) -> (i32, i32) {
    %c0_i32 = arith.constant 0 : i32
    %c0_i32_0 = arith.constant 0 : i32
    %c0_i32_1 = arith.constant 0 : i32
    return %c0_i32, %c0_i32_0 : i32, i32
  }
  func.func @transform_9(%arg0: i32) -> (i32, i32) {
    %c0_i32 = arith.constant 0 : i32
    %c0_i32_0 = arith.constant 0 : i32
    %c0_i32_1 = arith.constant 0 : i32
    return %c0_i32, %c0_i32_0 : i32, i32
  }
  func.func @transform_10(%arg0: i32) -> (i32, i32) {
    %c0_i32 = arith.constant 0 : i32
    %c0_i32_0 = arith.constant 0 : i32
    %c0_i32_1 = arith.constant 0 : i32
    return %c0_i32, %c0_i32_0 : i32, i32
  }
  func.func @transform_11(%arg0: i32) -> (i32, i32) {
    %c0_i32 = arith.constant 0 : i32
    %c0_i32_0 = arith.constant 0 : i32
    %c0_i32_1 = arith.constant 0 : i32
    return %c0_i32, %c0_i32_0 : i32, i32
  }
  func.func @transform_12(%arg0: i32) -> (i32, i32) {
    %c0_i32 = arith.constant 0 : i32
    %c0_i32_0 = arith.constant 0 : i32
    %c0_i32_1 = arith.constant 0 : i32
    return %c0_i32, %c0_i32_0 : i32, i32
  }
  func.func @transform_13(%arg0: i32) -> (i32, i32) {
    %c0_i32 = arith.constant 0 : i32
    %c0_i32_0 = arith.constant 0 : i32
    %c0_i32_1 = arith.constant 0 : i32
    return %c0_i32, %c0_i32_0 : i32, i32
  }
  func.func @transform_14(%arg0: i32) -> (i32, i32, i32) {
    %c0_i32 = arith.constant 0 : i32
    %c0_i32_0 = arith.constant 0 : i32
    %c0_i32_1 = arith.constant 0 : i32
    return %arg0, %c0_i32, %c0_i32_0 : i32, i32, i32
  }
}

</mosaic_0001>

<bundles_post_ra>
// kernel: tpu_custom_call.1
= control target key start
LH: loop header
LB: loop body
LE: loop exit
PB: predicated region body
PF: predicated region fallthrough
CT: control target
= control target key end

     0   :  { %s3257_s0 = inlined_call_operand.hbm [shape: f32[2,8,32], index: 0, kind: input, shape index: {}]   ;;  %s3258_s1 = inlined_call_operand.vmem [shape: f32[32,32], index: 1, kind: input, shape index: {}]   ;;  %s3259_s2 = inlined_call_operand.vmem [shape: f32[32,32], index: 2, kind: input, shape index: {}]   ;;  %s3260_s3 = inlined_call_operand.vmem [shape: f32[32,32], index: 3, kind: input, shape index: {}]   ;;  %s3261_s4 = inlined_call_operand.hbm [shape: f32[32,32], index: 4, kind: input, shape index: {}]   ;;  %s3262_s5 = inlined_call_operand.vmem [shape: f32[8,8], index: 5, kind: input, shape index: {}]   ;;  %s3263_s6 = inlined_call_operand.vmem [shape: f32[1,32], index: 6, kind: input, shape index: {}]   ;;  %s3264_s7 = inlined_call_operand.vmem [shape: f32[1,32], index: 7, kind: input, shape index: {}]   ;;  %s3265_s8 = inlined_call_operand.hbm [shape: f32[32,64], index: 8, kind: input, shape index: {}]   ;;  %s3266_s9 = inlined_call_operand.vmem [shape: f32[1,64], index: 9, kind: input, shape index: {}]   ;;  %s3267_s10 = inlined_call_operand.vmem [shape: f32[64,32], index: 10, kind: input, shape index: {}]   ;;  %s3268_s11 = inlined_call_operand.vmem [shape: f32[1,32], index: 11, kind: input, shape index: {}]   ;;  %s3269_s12 = inlined_call_operand.vmem [shape: f32[1,32], index: 12, kind: input, shape index: {}]   ;;  %s3270_s13 = inlined_call_operand.vmem [shape: f32[1,32], index: 13, kind: input, shape index: {}]   ;;  %s3271_s14 = inlined_call_operand.hbm [shape: f32[2,8,32], index: 14, kind: output, shape index: {}]  }
   0x1   :  { %3283 = sst [smem:[#allocation18_spill]] %s3261_s4 }
   0x2   :  { %3284 = sst [smem:[#allocation19_spill]] %s3265_s8 }
   0x3   :  { %3285 = sst [smem:[#allocation20_spill]] %s3271_s14 }
   0x4   :  { %19 = vsyncpa [#allocation3], 0 }
   0x5   :  { %21 = vsyncpa [#allocation3 + $0x1], 0 }
   0x6   :  { %22 = vsyncpa [#allocation6], 0 }
   0x7   :  { %23 = vsyncpa [#allocation4], 0 }
   0x8   :  { %25 = vsyncpa [#allocation4 + $0x1], 0  ;;  %s2795_s29 = smov 0   ;;  %s2797_s30 = smov 0  }
   0x9   :  { %s2799_s15 = smov 0   ;;  %s2801_s16 = smov 0  }
   0xa LB: > { %3286 = sst [smem:[#allocation12_spill]] %s2692_s29  ;;  %s2816_s17 = sadd.s32 4294967295, %s2704_s16   ;;  %s2704_s16 = sphi %s2801_s16, %s3312_s16   ;;  %s2700_s15 = sphi %s2799_s15, %s3314_s15   ;;  %s2696_s30 = sphi %s2797_s30, %s3316_s30   ;;  %s2692_s29 = sphi %s2795_s29, %s3315_s29  }
   0xb   : > { %3287 = sst [smem:[#allocation13_spill]] %s2700_s15  ;;  %s2207_s18 = sadd.s32 4294967294, %s2704_s16  }
   0xc   : > { %3288 = sst [smem:[#allocation14_spill]] %s2704_s16  ;;  %p51_p0 = scmp.ne.s32.totalorder %s2696_s30, %s2692_s29 }
   0xd   : > { %p3273_p1 = scmp.eq.s32.totalorder %s2816_s17, 0  ;;  %p354_p3 = scmp.eq.s32.totalorder %s2207_s18, 1 }
   0xe   : > { %p2208_p5 = scmp.ge.s32.totalorder %s2704_s16, 1  ;;  %p361_p7 = scmp.lt.s32.totalorder %s2704_s16, 3 }
   0xf   : > { %p2825_p4 = por %p3273_p1, %p51_p0  ;;  %p2830_p6 = por %p354_p3, %p51_p0 }
  0x10   : > { %p2835_p8 = pnand %p2208_p5, %p361_p7  ;;  %s2706_s22 = smov [#allocation5]  }
  0x11   : > { %s3289_s19 = scalar_select %p2825_p4, 1, 0 }
  0x12   : > { %s3290_s20 = scalar_select %p2830_p6, 1, 0 }
  0x13   : > { %s3292_s21 = scalar_select %p2835_p8, 1, 0 }
  0x14   : > { %3291 = sst [smem:[#allocation15_spill]] %s3290_s20  ;;  %s382_s23 = sshll.u32 %s2706_s22, 4  ;;  %s383_s23 = int_to_ptr.vmem [resolvable:$true] %s382_s23 }
  0x15   : > { %p2456_p9 = pneg %p2835_p8  ;;  %s2707_s25 = smov [#allocation7]  }
  0x16   : > { %s404_s26 = sshll.u32 %s2707_s25, 4  ;;  %s2567_s27 = scalar_lea.vmem %s383_s23, 512  ;;  %s405_s26 = int_to_ptr.vmem [resolvable:$true] %s404_s26 }
  0x17   : > { %p2844_p11 = pnand %p2456_p9, %p3273_p1  ;;  %p2568_p13 = scmp.ne.s32.totalorder %s383_s23, %s2567_s27 }
  0x18   : > { %p2575_p5 = scmp.lt.s32.totalorder %s383_s23, %s383_s23  ;;  %p2576_p7 = scmp.lt.s32.totalorder %s2567_s27, %s2567_s27 }
  0x19   : > { %p2558_p12 = pneg %p2844_p11 }
  0x1a   : > { %p2577_p10 = por %p2576_p7, %p2575_p5 }
  0x1b   : > { %p2570_p0 = pnand %p2568_p13, %p2558_p12 }
  0x1d   : > { %p2571_p3 = pneg %p2570_p0 }
  0x1f   : > { %p2578_p9 = pnand %p2577_p10, %p2571_p3 }
  0x21   : > { %2581 = shalt.err (!%p2578_p9)
}
  0x22   : > { %s2708_s28 = smov 128   ;;  %s2709_s18 = smov 8  }
  0x23   : > { %s3294_s4 = sld [smem:[#allocation18_spill]]  ;;  %s2593_s20 = scalar_lea.vmem %s405_s26, 512 }
  0x24   : > { %p2594_p1 = scmp.ne.s32.totalorder %s405_s26, %s2593_s20  ;;  %p2601_p2 = scmp.lt.s32.totalorder %s405_s26, %s405_s26 }
  0x25   : > { %p2602_p6 = scmp.lt.s32.totalorder %s2593_s20, %s2593_s20 }
  0x26   : > { %p2596_p13 = pnand %p2594_p1, %p2558_p12 }
  0x27   : > { %p2603_p5 = por %p2602_p6, %p2601_p2 }
  0x28   : > { %p2597_p0 = pneg %p2596_p13 }
  0x29   : > { %2459 = dma.hbm_to_vmem [thread:$0]  (!%p2844_p11), %s3294_s4, 512, %s383_s23, [#allocation6], %s2708_s28, %s2708_s28, %s2709_s18  }
  0x2a   : > { %p2604_p10 = pnand %p2603_p5, %p2597_p0 }
  0x2c   : > { %2607 = shalt.err (!%p2604_p10)
}
  0x2d   : > { %s3295_s8 = sld [smem:[#allocation19_spill]]  ;;  %s2867_s20 = sadd.s32 1, %s2704_s16  }
  0x2e   : > { %3296 = sst [smem:[#allocation16_spill]] %s2867_s20  ;;  %s38_s23 = sadd.s32 1, %s2700_s15 }
  0x2f   : > { %s35_s24 = ssub.s32 %s2704_s16, %s2867_s20  ;;  %p45_p1 = scmp.ne.s32.totalorder %s2700_s15, %s2696_s30 }
  0x30   : > { %p36_p2 = scmp.eq.s32.totalorder %s35_s24, 0  ;;  %p46_p6 = scmp.eq.s32.totalorder %s2704_s16, 0 }
  0x31   : > { %p3297_p12 = scmp.eq.s32.totalorder %s2816_s17, 1  ;;  %p2473_p7 = scmp.lt.s32.totalorder %s2704_s16, 2 }
  0x32   : > { %s2883_s22 = scalar_select %p36_p2, %s2700_s15, %s38_s23  }
  0x33   : > { %2462 = dma.hbm_to_vmem [thread:$0]  (!%p2844_p11), %s3295_s8, 512, %s405_s26, [#allocation6], %s2708_s28, %s2708_s28, %s2709_s18  }
  0x34   : > { %p2877_p3 = por %p3297_p12, %p45_p1  ;;  %3299 = sst [smem:[#allocation17_spill]] %s2883_s22 }
  0x35   : > { %p47_p9 = por %p46_p6, %p45_p1  ;;  %s433_s25 = sand.u32 1, %s2700_s15  }
  0x36   : > { %s3298_s29 = scalar_select %p2877_p3, 1, 0 }
  0x37   : > { %s2212_s27 = sshll.u32 %s433_s25, 3  ;;  %s2213_s26 = sshll.u32 %s2704_s16, 7 }
  0x38   : > { %s2890_s4 = scalar_lea.hbm %s3257_s0, %s2213_s26  ;;  %s437_s24 = scalar_lea.vmem [#allocation2], %s2212_s27 }
  0x39   : > { %s444_s8 = sshll.u32 %s437_s24, 4  ;;  %p2892_p11 = pnand %p2473_p7, %p47_p9  ;;  %s445_s8 = int_to_ptr.vmem [resolvable:$true] %s444_s8 }
  0x3a   : > { %s434_s23 = scalar_lea.sflag [#allocation3], %s433_s25  ;;  %s2608_s22 = scalar_lea.hbm %s2890_s4, 128 }
  0x3b   : > { %p2609_p13 = scmp.ne.s32.totalorder %s2890_s4, %s2608_s22  ;;  %p2610_p0 = pneg %p2892_p11 }
  0x3c   : > { %s2613_s18 = scalar_lea.hbm %s3257_s0, 256  ;;  %p2614_p1 = scmp.lt.s32.totalorder %s2890_s4, %s3257_s0 }
  0x3d   : > { %p2611_p5 = pnand %p2610_p0, %p2609_p13  ;;  %p2615_p2 = scmp.lt.s32.totalorder %s2613_s18, %s2608_s22 }
  0x3f   : > { %p2612_p10 = pneg %p2611_p5  ;;  %p2616_p6 = por %p2615_p2, %p2614_p1 }
  0x41   : > { %p2617_p12 = pnand %p2616_p6, %p2612_p10 }
  0x43   : > { %2620 = shalt.err (!%p2617_p12)
}
  0x44   : > { %s2621_s24 = scalar_lea.vmem %s445_s8, 128  ;;  %s2710_s25 = smov [#allocation2]  }
  0x45   : > { %p2622_p7 = scmp.ne.s32.totalorder %s445_s8, %s2621_s24  ;;  %s2626_s16 = sshll.u32 %s2710_s25, 4  ;;  %s2627_s16 = int_to_ptr.vmem [resolvable:$false] %s2626_s16 }
  0x46   : > { %s2628_s14 = scalar_lea.vmem %s2627_s16, 256  ;;  %p2629_p13 = scmp.lt.s32.totalorder %s445_s8, %s2627_s16 }
  0x47   : > { %p2624_p9 = pnand %p2622_p7, %p2610_p0  ;;  %p2630_p5 = scmp.lt.s32.totalorder %s2628_s14, %s2621_s24 }
  0x49   : > { %p2625_p3 = pneg %p2624_p9  ;;  %p2631_p4 = por %p2630_p5, %p2629_p13 }
  0x4b   : > { %p2632_p8 = pnand %p2631_p4, %p2625_p3 }
  0x4d   : > { %2635 = shalt.err (!%p2632_p8)
}
  0x4e   : > { %2466 = dma.hbm_to_vmem [thread:$0]  (!%p2892_p11), %s2890_s4, 128, %s445_s8, %s434_s23  }
  0x4f   : > { %p3301_p10 = scmp.ne.s32.totalorder %s3292_s21, 0 }
  0x50   : > { %s2913_s15 = sand.u32 (!%p3301_p10), 1, %s2696_s30   ;;  %p3302_p4 = scmp.ne.s32.totalorder (!%p3301_p10), %s3289_s19, 0 }
  0x51   : > { %453 = sbr.rel (%p3301_p10) target bundleno = 4026 (0xfba), region = 76  ;;  %s2215_s22 = sshll.u32 (!%p3301_p10), %s2913_s15, 3 }
  0x52   : > { %s456_s16 = scalar_lea.sflag (!%p3301_p10), [#allocation3], %s2913_s15  ;;  %s459_s14 = scalar_lea.vmem (!%p3301_p10), [#allocation2], %s2215_s22 }
  0x56   : > { %2679 = dma.done.wait (%p3302_p4), %s456_s16, 128  }
  0x57   : > { %2681 = vsyncadd (%p3302_p4), %s456_s16, 4294967168  ;;  %p3303_p8 = scmp.eq.s32.totalorder %s2816_s17, 0 }
  0x59   : > { %2683 = dma.done.wait (%p3303_p8), [#allocation6], 1024   ;;  %p3304_p3 = pmov %p3303_p8 }
  0x5a   : > { %v2711_v0 = vmov 0.0   ;;  %vm2712_vm0 = vmmov 0   ;;  %v516_v1 = vld [vmem:[%s3258_s1 + $0x18] sm:$0xff]  ;;  %v515_v2 = vld [vmem:[%s3258_s1 + $0x10] sm:$0xff]  ;;  %v514_v3 = vld [vmem:[%s3258_s1 + $0x8] sm:$0xff]  ;;  %vm517_vm1 = vcmask 261120   ;;  %v741_v11 = vlaneseq }
  0x5b   : > { %2685 = vsyncadd (%p3304_p3), [#allocation6], 4294966272  ;;  %2310 = vmatprep.subr.mxu1 %v2711_v0  ;;  %2318 = vmatprep.mubr.msk.f32.mxu1 %vm2712_vm0, %v2711_v0  ;;  %v513_v4 = vld [vmem:[%s3258_s1] sm:$0xff]  ;;  %v595_v6 = vld [vmem:[%s3259_s2 + $0x18] sm:$0xff]  ;;  %vm761_vm3 = vcmask 64512   ;;  %s2713_s16 = smov 120  }
  0x5c   : > { %2332 = vmatprep.subr.mxu0 %v2711_v0  ;;  %2340 = vmatprep.mubr.msk.f32.mxu0 %vm2712_vm0, %v2711_v0  ;;  %v2947_v5 = vld [vmem:[%s459_s14] sm:$0xff]  ;;  %v594_v7 = vld [vmem:[%s3259_s2 + $0x10] sm:$0xff]  ;;  %v2982_v12 = vshrl.u32 %v741_v11, 7  ;;  %v2984_v13 = vand.u32 127, %v741_v11  ;;  %v669_v29 = vld [vmem:[%s3260_s3 + $0x18] sm:$0xff]  ;;  %s2714_s14 = smov 112  }
  0x5d   : > { %2311 = vmatpush3.msra.mxu1 %v516_v1  ;;  %v593_v8 = vld [vmem:[%s3259_s2 + $0x8] sm:$0xff]  ;;  %v592_v9 = vld [vmem:[%s3259_s2] sm:$0xff]  ;;  %v668_v30 = vld [vmem:[%s3260_s3 + $0x10] sm:$0xff]  ;;  %2333 = vmatpush3.msra.mxu0 %v669_v29  ;;  %s2715_s4 = smov 104   ;;  %s2716_s8 = smov 8   ;;  %vm1787_vm8 = vcmask 130048  }
  0x5e   : > { %2312 = vmatprep.subr.mxu1 %v2711_v0  ;;  %v2973_v10 = vld [vmem:[%s3262_s5] sm:$0xff]  ;;  %v755_v14 = vadd.s32 8, %v2984_v13  ;;  %v746_v22 = vsub.s32 %v2984_v13, %v2982_v12  ;;  %2334 = vmatprep.subr.mxu0 %v2711_v0  ;;  %v667_v31 = vld [vmem:[%s3260_s3 + $0x8] sm:$0xff]  ;;  %vm745_vm6 = vcmp.ge.s32.totalorder %v2984_v13, %v2982_v12  ;;  %vm751_vm7 = vcmp.lt.s32.totalorder %v2984_v13, %v2982_v12  ;;  %s2717_s19 = smov 16   ;;  %s2718_s21 = smov 24  }
  0x5f   : > { %2313 = vmatpush3.msra.mxu1 %v515_v2  ;;  %2335 = vmatpush3.msra.mxu0 %v668_v30  ;;  %v666_v32 = vld [vmem:[%s3260_s3] sm:$0xff]  ;;  %vm1789_vm9 = vcmask 195584   ;;  %vm1999_vm10 = vcmask 523264   ;;  %s2249_s20 = sshll.u32 %s2816_s17, 7  ;;  %s511_s23 = scalar_lea.vmem [#allocation8], %s2215_s22 }
  0x60   : > { %2314 = vmatprep.subr.mxu1 %v2711_v0  ;;  %v756_v15 = vsub.s32 %v755_v14, %v2982_v12  ;;  %vm747_vm4 = vcmp.gt.s32.totalorder %v746_v22, 0  ;;  %2336 = vmatprep.subr.mxu0 %v2711_v0  ;;  %s2118_s26 = sshll.u32 %s511_s23, 4  ;;  %s3305_s27 = sld [smem:[#allocation20_spill]]  ;;  %s2119_s26 = int_to_ptr.vmem [resolvable:$true] %s2118_s26 }
  0x61   : > { %2315 = vmatpush3.msra.mxu1 %v514_v3  ;;  %v748_v23 = vsel %vm747_vm4, %v746_v22, 0  ;;  %2337 = vmatpush3.msra.mxu0 %v667_v31  ;;  %s2105_s25 = scalar_lea.sflag [#allocation4], %s2913_s15  ;;  %p3306_p0 = scmp.ne.s32.totalorder %s3298_s29, 0 }
  0x62   : > { %2316 = vmatprep.subr.mxu1 %v2711_v0  ;;  %vm759_vm2 = vcmp.lt.s32.totalorder %v756_v15, 7  ;;  %vm749_vm5 = vcmp.lt.s32.totalorder %v748_v23, 7  ;;  %2338 = vmatprep.subr.mxu0 %v2711_v0 }
  0x63   : > { %2317 = vmatpush3.msra.mxu1 %v513_v4  ;;  %v2988_v16 = vsel %vm759_vm2, %v756_v15, 7  ;;  %v3011_v26 = vsel %vm749_vm5, %v748_v23, 7  ;;  %2339 = vmatpush3.msra.mxu0 %v666_v32 }
  0x64   : > { %2319 = vmatmul.mubr.msk.f32.vlgmr.msra.gmra.mxu1 %vm517_vm1, %v2947_v5  ;;  %2321 = vmatprep.subr.mxu1 %v2711_v0 }
  0x65   : > { %2322 = vmatpush3.msra.mxu1 %v595_v6  ;;  %2329 = vmatprep.mubr.msk.f32.mxu1 %vm2712_vm0, %v2711_v0 }
  0x66   : > { %2323 = vmatprep.subr.mxu1 %v2711_v0  ;;  %2521 = vset.pattern.permute.xlu0 %v2988_v16  ;;  %s2116_s24 = scalar_lea.hbm %s3305_s27, %s2249_s20 }
  0x67   : > { %2324 = vmatpush3.msra.mxu1 %v594_v7  ;;  %2523 = vset.pattern.permute.xlu1 %v2988_v16 }
  0x68   : > { %2325 = vmatprep.subr.mxu1 %v2711_v0  ;;  %2341 = vmatmul.mubr.msk.f32.vlgmr.msra.gmra.mxu0 %vm517_vm1, %v2947_v5 }
  0x69   : > { %2326 = vmatpush3.msra.mxu1 %v593_v8  ;;  %2353 = vmatprep.subr.mxu0 %v2711_v0 }
  0x6a   : > { %2327 = vmatprep.subr.mxu1 %v2711_v0  ;;  %2355 = vmatprep.mubr.msk.f32.mxu0 %vm2712_vm0, %v2711_v0 }
  0x6b   : > { %2328 = vmatpush3.msra.mxu1 %v592_v9 }
  0x6c   : > { %2330 = vmatmul.mubr.msk.f32.vlgmr.msra.gmra.mxu1 %vm517_vm1, %v2947_v5  ;;  %2343 = vmatprep.subr.mxu1 %v2711_v0 }
  0x6d   : > { %2344 = vmatpush3.msra.mxu1 %v2973_v10  ;;  %2345 = vmatprep.mubr.msk.f32.mxu1 %vm2712_vm0, %v2711_v0 }
  0x6e   : > { %2348 = vmatprep.subr.mxu1 %v2711_v0 }
 0x124   : > { %v587_v17 = vpop.f32.mrf.mxu1 }
 0x125   : > { %v2992_v18 = vmul.f32 0.35355338, %v587_v17 }
 0x126   : > { %v2320_v19 = vpop.f32.mrf.mxu1 }
 0x127   : > { %2346 = vmatmul.mubr.msk.f32.vlgmr.msra.gmra.mxu1 %vm761_vm3, %v2992_v18 }
 0x128   : > { %2350 = vmatprep.mubr.msk.f32.mxu1 %vm2712_vm0, %v2711_v0  ;;  %v3053_v52 = vpop.f32.mrf.mxu0 }
 0x129   : > { %2354 = vmatpush3.msra.mxu0 %v3053_v52 }
 0x12a   : > { %v2342_v53 = vpop.f32.mrf.mxu0  ;;  %2363 = vmatprep.subr.mxu0 %v2711_v0 }
 0x12c   : > { %v2998_v20 = vpop.f32.mrf.mxu1 }
 0x12d   : > { %2349 = vmatpush3.xpose.msk.msra.mxu1 %vm761_vm3, %v2998_v20 }
 0x12e   : > { %v2331_v21 = vpop.f32.mrf.mxu1  ;;  %2358 = vmatprep.subr.mxu1 %v2711_v0 }
 0x130   : > { %2351 = vmatmul.mubr.msk.f32.vlgmr.msra.gmra.mxu1 %vm761_vm3, %v2992_v18 }
 0x131   : > { %2359 = vmatpush3.msra.mxu1 %v2973_v10  ;;  %2360 = vmatprep.mubr.msk.f32.mxu1 %vm2712_vm0, %v2711_v0 }
 0x132   : > { %2368 = vmatprep.subr.mxu1 %v2711_v0 }
 0x1e7   : > { %v831_v24 = vpop.f32.mrf.mxu1 }
 0x1e8   : > { %840 = vperm.xlu0 %2521, %v831_v24  }
 0x1e9   : > { %v2347_v25 = vpop.f32.mrf.mxu1 }
 0x1ec   : > { %2522 = vset.pattern.permute.xlu0 %v3011_v26 }
 0x1f0   : > { %836 = vperm.xlu0 %2522, %v831_v24   ;;  %v911_v27 = vpop.f32.mrf.mxu1 }
 0x1f2   : > { %v2352_v28 = vpop.f32.mrf.mxu1 }
 0x263   : > { %v841_v33 = vpop.permute.xlu0 %840 }
 0x264   : > { %v912_v34 = vadd.f32 %v911_v27, %v841_v33 }
 0x266   : > { %v915_v38 = vsel %vm751_vm7, %v912_v34, -1e+30 }
 0x267   : > { %v919_v39 = vsel %vm761_vm3, %v915_v38, -inf }
 0x26b   : > { %v837_v35 = vpop.permute.xlu0 %836 }
 0x26c   : > { %v838_v36 = vsel %vm745_vm6, %v837_v35, -1e+30 }
 0x26d   : > { %v916_v37 = vsel %vm761_vm3, %v838_v36, -inf }
 0x26e   : > { %917 = vmax.xlane.f32.xlu1 %v916_v37 }
 0x272   : > { %920 = vmax.xlane.f32.xlu1 %v919_v39 }
 0x283   : > { %1011 = vrot.lane.b32.xlu1 %v2992_v18, %s2713_s16 }
 0x2f7   : > { %v918_v40 = vpop.xlane.xlu1 %917 }
 0x2fb   : > { %v921_v41 = vpop.xlane.xlu1 %920 }
 0x2fc   : > { %v922_v42 = vmax.f32 %v918_v40, %v921_v41 }
 0x2fe   : > { %v923_v43 = vsub.f32 %v838_v36, %v922_v42  ;;  %v926_v44 = vsub.f32 %v915_v38, %v922_v42 }
 0x2ff   : > { %v1012_v45 = vpop.permute.xlu1 %1011 }
 0x300   : > { %v924_v46 = vmul.f32 1.442695, %v923_v43  ;;  %v927_v47 = vmul.f32 1.442695, %v926_v44  ;;  %2361 = vmatmul.mubr.msk.f32.vlgmr.msra.gmra.mxu1 %vm761_vm3, %v1012_v45 }
 0x301   : > { %2370 = vmatprep.mubr.msk.f32.mxu1 %vm2712_vm0, %v2711_v0 }
 0x302   : > { %2528 = vpow2.f32 %v924_v46 }
 0x303   : > { %2530 = vpow2.f32 %v927_v47 }
 0x30f   : > { %v2529_v48 = vpop.eup %2528 }
 0x310   : > { %v2531_v49 = vpop.eup %2530  ;;  %v929_v50 = vsel %vm761_vm3, %v2529_v48, 0.0 }
 0x311   : > { %v932_v51 = vsel %vm761_vm3, %v2531_v49, 0.0  ;;  %930 = vadd.xlane.f32.xlu0 %v929_v50 }
 0x312   : > { %933 = vadd.xlane.f32.xlu1 %v932_v51 }
 0x327   : > { %1092 = vrot.lane.b32.xlu0 %v2998_v20, %s2713_s16 }
 0x39a   : > { %v931_v54 = vpop.xlane.xlu0 %930 }
 0x39b   : > { %v934_v55 = vpop.xlane.xlu1 %933 }
 0x39c   : > { %v935_v56 = vadd.f32 %v934_v55, %v931_v54 }
 0x39e   : > { %2532 = vrcp.f32 %v935_v56  ;;  %v1093_v59 = vpop.permute.xlu0 %1092 }
 0x3ab   : > { %v2533_v57 = vpop.eup %2532 }
 0x3ac   : > { %v937_v58 = vmul.f32 %v2533_v57, %v2531_v49 }
 0x3ae   : > { %2356 = vmatmul.mubr.msk.f32.vlgmr.msra.gmra.mxu0 %vm761_vm3, %v937_v58 }
 0x3af   : > { %2364 = vmatpush3.xpose.msk.msra.mxu0 %vm761_vm3, %v1093_v59  ;;  %2365 = vmatprep.mubr.msk.f32.mxu0 %vm2712_vm0, %v2711_v0 }
 0x3b0   : > { %2373 = vmatprep.subr.mxu0 %v2711_v0 }
 0x3b2   : > { %2366 = vmatmul.mubr.msk.f32.vlgmr.msra.gmra.mxu0 %vm761_vm3, %v1012_v45 }
 0x3b3   : > { %2374 = vmatpush3.msra.mxu0 %v2973_v10  ;;  %2375 = vmatprep.mubr.msk.f32.mxu0 %vm2712_vm0, %v2711_v0 }
 0x3b4   : > { %2383 = vmatprep.subr.mxu0 %v2711_v0 }
 0x3c0   : > { %v1081_v60 = vpop.f32.mrf.mxu1 }
 0x3c1   : > { %1086 = vperm.xlu0 %2522, %v1081_v60   ;;  %1090 = vperm.xlu1 %2523, %v1081_v60  }
 0x3c2   : > { %v2362_v61 = vpop.f32.mrf.mxu1 }
 0x3c5   : > { %2524 = vset.pattern.permute.xlu0 %v2988_v16  ;;  %2527 = vset.pattern.permute.xlu1 %v3011_v26 }
 0x43c   : > { %v1087_v62 = vpop.permute.xlu0 %1086  ;;  %v1091_v4 = vpop.permute.xlu1 %1090 }
 0x43d   : > { %v1088_v63 = vsel %vm745_vm6, %v1087_v62, -1e+30 }
 0x43e   : > { %v1167_v1 = vsel %vm761_vm3, %v1088_v63, -inf }
 0x43f   : > { %1168 = vmax.xlane.f32.xlu0 %v1167_v1 }
 0x455   : > { %1266 = vrot.lane.b32.xlu0 %v2992_v18, %s2714_s14 }
 0x459   : > { %1190 = vrot.lane.b32.xlu0 %v3053_v52, %s2713_s16  ;;  %s2636_s16 = scalar_lea.vmem %s2119_s26, 128 }
 0x45a   : > { %p2637_p11 = scmp.ne.s32.totalorder %s2119_s26, %s2636_s16 }
 0x45c   : > { %p2638_p1 = pnand %p2637_p11, %p3306_p0 }
 0x45e   : > { %p2639_p2 = pneg %p2638_p1 }
 0x46e   : > { %v3079_v2 = vpop.f32.mrf.mxu0 }
 0x470   : > { %v2357_v3 = vpop.f32.mrf.mxu0 }
 0x472   : > { %v1162_v6 = vpop.f32.mrf.mxu0 }
 0x473   : > { %v1163_v7 = vadd.f32 %v1162_v6, %v1091_v4 }
 0x474   : > { %v2367_v8 = vpop.f32.mrf.mxu0 }
 0x475   : > { %v1166_v9 = vsel %vm751_vm7, %v1163_v7, -1e+30 }
 0x476   : > { %v1170_v11 = vsel %vm761_vm3, %v1166_v9, -inf }
 0x477   : > { %1171 = vmax.xlane.f32.xlu1 %v1170_v11 }
 0x4c8   : > { %v1169_v14 = vpop.xlane.xlu0 %1168 }
 0x4cc   : > { %v1267_v15 = vpop.permute.xlu0 %1266 }
 0x4cd   : > { %2376 = vmatmul.mubr.msk.f32.vlgmr.msra.gmra.mxu0 %vm761_vm3, %v1267_v15 }
 0x4ce   : > { %2385 = vmatprep.mubr.msk.f32.mxu0 %vm2712_vm0, %v2711_v0 }
 0x4d0   : > { %v1191_v17 = vpop.permute.xlu0 %1190 }
 0x4d1   : > { %2369 = vmatpush3.msra.mxu1 %v1191_v17 }
 0x4d2   : > { %2378 = vmatprep.subr.mxu1 %v2711_v0 }
 0x500   : > { %v1172_v19 = vpop.xlane.xlu1 %1171 }
 0x501   : > { %v1173_v21 = vmax.f32 %v1169_v14, %v1172_v19 }
 0x503   : > { %v1174_v22 = vsub.f32 %v1088_v63, %v1173_v21  ;;  %v1177_v23 = vsub.f32 %v1166_v9, %v1173_v21 }
 0x505   : > { %v1175_v24 = vmul.f32 1.442695, %v1174_v22  ;;  %v1178_v25 = vmul.f32 1.442695, %v1177_v23 }
 0x507   : > { %2534 = vpow2.f32 %v1175_v24 }
 0x508   : > { %2536 = vpow2.f32 %v1178_v25 }
 0x514   : > { %v2535_v27 = vpop.eup %2534 }
 0x515   : > { %v1180_v28 = vsel %vm761_vm3, %v2535_v27, 0.0  ;;  %v2537_v29 = vpop.eup %2536 }
 0x516   : > { %1181 = vadd.xlane.f32.xlu1 %v1180_v28  ;;  %v1183_v30 = vsel %vm761_vm3, %v2537_v29, 0.0 }
 0x51a   : > { %1184 = vadd.xlane.f32.xlu1 %v1183_v30 }
 0x52b   : > { %1347 = vrot.lane.b32.xlu1 %v2998_v20, %s2714_s14 }
 0x58d   : > { %v1336_v31 = vpop.f32.mrf.mxu0 }
 0x58e   : > { %1345 = vperm.xlu0 %2524, %v1336_v31  }
 0x58f   : > { %v2377_v32 = vpop.f32.mrf.mxu0 }
 0x592   : > { %2525 = vset.pattern.permute.xlu0 %v3011_v26 }
 0x596   : > { %1341 = vperm.xlu0 %2525, %v1336_v31  }
 0x59a   : > { %2526 = vset.pattern.permute.xlu0 %v2988_v16 }
 0x59f   : > { %v1182_v33 = vpop.xlane.xlu1 %1181 }
 0x5a3   : > { %v1185_v34 = vpop.xlane.xlu1 %1184 }
 0x5a4   : > { %v1186_v35 = vadd.f32 %v1185_v34, %v1182_v33 }
 0x5a6   : > { %2538 = vrcp.f32 %v1186_v35 }
 0x5a7   : > { %v1348_v38 = vpop.permute.xlu1 %1347 }
 0x5b3   : > { %v2539_v36 = vpop.eup %2538 }
 0x5b4   : > { %v1188_v37 = vmul.f32 %v2539_v36, %v2537_v29 }
 0x5b6   : > { %2371 = vmatmul.mubr.msk.f32.vlgmr.msra.gmra.mxu1 %vm761_vm3, %v1188_v37 }
 0x5b7   : > { %2379 = vmatpush3.xpose.msk.msra.mxu1 %vm761_vm3, %v1348_v38  ;;  %2380 = vmatprep.mubr.msk.f32.mxu1 %vm2712_vm0, %v2711_v0 }
 0x5b8   : > { %2388 = vmatprep.subr.mxu1 %v2711_v0 }
 0x5ba   : > { %2381 = vmatmul.mubr.msk.f32.vlgmr.msra.gmra.mxu1 %vm761_vm3, %v1267_v15 }
 0x5bb   : > { %2389 = vmatpush3.msra.mxu1 %v2973_v10  ;;  %2390 = vmatprep.mubr.msk.f32.mxu1 %vm2712_vm0, %v2711_v0 }
 0x5bc   : > { %2398 = vmatprep.subr.mxu1 %v2711_v0 }
 0x609   : > { %v1346_v16 = vpop.permute.xlu0 %1345 }
 0x611   : > { %v1342_v26 = vpop.permute.xlu0 %1341 }
 0x612   : > { %v1343_v39 = vsel %vm745_vm6, %v1342_v26, -1e+30  ;;  %v1793_v26 = vld [vmem:[#allocation5 + $0x10] sm:$0xff] }
 0x613   : > { %v1422_v40 = vsel %vm761_vm3, %v1343_v39, -inf }
 0x614   : > { %1423 = vmax.xlane.f32.xlu1 %v1422_v40 }
 0x676   : > { %v3109_v41 = vpop.f32.mrf.mxu1 }
 0x678   : > { %v2372_v42 = vpop.f32.mrf.mxu1 }
 0x67a   : > { %v1417_v43 = vpop.f32.mrf.mxu1 }
 0x67b   : > { %v1418_v44 = vadd.f32 %v1417_v43, %v1346_v16  ;;  %v1794_v16 = vld [vmem:[#allocation5 + $0x18] sm:$0xff] }
 0x67c   : > { %v2382_v10 = vpop.f32.mrf.mxu1 }
 0x67d   : > { %v1421_v45 = vsel %vm751_vm7, %v1418_v44, -1e+30 }
 0x67e   : > { %v1425_v46 = vsel %vm761_vm3, %v1421_v45, -inf }
 0x67f   : > { %1426 = vmax.xlane.f32.xlu0 %v1425_v46 }
 0x695   : > { %1520 = vrot.lane.b32.xlu0 %v2992_v18, %s2715_s4 }
 0x699   : > { %1601 = vrot.lane.b32.xlu0 %v2998_v20, %s2715_s4 }
 0x69d   : > { %v1424_v47 = vpop.xlane.xlu1 %1423 }
 0x708   : > { %v1427_v48 = vpop.xlane.xlu0 %1426 }
 0x709   : > { %v1428_v49 = vmax.f32 %v1424_v47, %v1427_v48 }
 0x70b   : > { %v1429_v50 = vsub.f32 %v1343_v39, %v1428_v49  ;;  %v1432_v51 = vsub.f32 %v1421_v45, %v1428_v49  ;;  %v1791_v39 = vld [vmem:[#allocation5] sm:$0xff] }
 0x70c   : > { %v1521_v53 = vpop.permute.xlu0 %1520 }
 0x70d   : > { %v1430_v54 = vmul.f32 1.442695, %v1429_v50  ;;  %v1433_v55 = vmul.f32 1.442695, %v1432_v51  ;;  %2391 = vmatmul.mubr.msk.f32.vlgmr.msra.gmra.mxu1 %vm761_vm3, %v1521_v53 }
 0x70e   : > { %2400 = vmatprep.mubr.msk.f32.mxu1 %vm2712_vm0, %v2711_v0 }
 0x70f   : > { %2540 = vpow2.f32 %v1430_v54 }
 0x710   : > { %2542 = vpow2.f32 %v1433_v55  ;;  %v1602_v1 = vpop.permute.xlu0 %1601 }
 0x71c   : > { %v2541_v56 = vpop.eup %2540 }
 0x71d   : > { %v1435_v18 = vsel %vm761_vm3, %v2541_v56, 0.0  ;;  %v2543_v57 = vpop.eup %2542  ;;  %v1902_v56 = vld [vmem:[#allocation7 + $0x18] sm:$0xff] }
 0x71e   : > { %1436 = vadd.xlane.f32.xlu1 %v1435_v18  ;;  %v1438_v20 = vsel %vm761_vm3, %v2543_v57, 0.0  ;;  %v1901_v18 = vld [vmem:[#allocation7 + $0x10] sm:$0xff] }
 0x722   : > { %1439 = vadd.xlane.f32.xlu1 %v1438_v20  ;;  %v1991_v20 = vld [vmem:[%s3267_s10 + $0x38] sm:$0xff] }
 0x733   : > { %1444 = vrot.lane.b32.xlu1 %v3053_v52, %s2714_s14  ;;  %s2719_s14 = smov [#allocation8]  }
 0x734   : > { %s2640_s17 = sshll.u32 %s2719_s14, 4  ;;  %s2641_s17 = int_to_ptr.vmem [resolvable:$false] %s2640_s17 }
 0x735   : > { %s2642_s22 = scalar_lea.vmem %s2641_s17, 256  ;;  %p2643_p6 = scmp.lt.s32.totalorder %s2119_s26, %s2641_s17 }
 0x736   : > { %p2644_p12 = scmp.lt.s32.totalorder %s2642_s22, %s2636_s16 }
 0x738   : > { %p2645_p7 = por %p2644_p12, %p2643_p6 }
 0x73a   : > { %p2646_p9 = pnand %p2645_p7, %p2639_p2 }
 0x7a7   : > { %v1437_v58 = vpop.xlane.xlu1 %1436 }
 0x7ab   : > { %v1440_v59 = vpop.xlane.xlu1 %1439 }
 0x7ac   : > { %v1441_v60 = vadd.f32 %v1440_v59, %v1437_v58  ;;  %v1990_v58 = vld [vmem:[%s3267_s10 + $0x30] sm:$0xff]  ;;  %v1989_v59 = vld [vmem:[%s3267_s10 + $0x28] sm:$0xff] }
 0x7ae   : > { %2544 = vrcp.f32 %v1441_v60  ;;  %v1988_v60 = vld [vmem:[%s3267_s10 + $0x20] sm:$0xff] }
 0x7af   : > { %v1445_v61 = vpop.permute.xlu1 %1444 }
 0x7b0   : > { %2384 = vmatpush3.msra.mxu0 %v1445_v61  ;;  %v1987_v61 = vld [vmem:[%s3267_s10 + $0x18] sm:$0xff] }
 0x7b1   : > { %2393 = vmatprep.subr.mxu0 %v2711_v0 }
 0x7bb   : > { %v2545_v62 = vpop.eup %2544 }
 0x7bc   : > { %v1443_v63 = vmul.f32 %v2545_v62, %v2543_v57  ;;  %v1900_v57 = vld [vmem:[#allocation7 + $0x8] sm:$0xff] }
 0x7be   : > { %2386 = vmatmul.mubr.msk.f32.vlgmr.msra.gmra.mxu0 %vm761_vm3, %v1443_v63 }
 0x7bf   : > { %2394 = vmatpush3.xpose.msk.msra.mxu0 %vm761_vm3, %v1602_v1  ;;  %2395 = vmatprep.mubr.msk.f32.mxu0 %vm2712_vm0, %v2711_v0 }
 0x7c0   : > { %2403 = vmatprep.subr.mxu0 %v2711_v0 }
 0x7c2   : > { %2396 = vmatmul.mubr.msk.f32.vlgmr.msra.gmra.mxu0 %vm761_vm3, %v1521_v53 }
 0x7c3   : > { %2411 = vmatprep.mubr.msk.f32.mxu0 %vm2712_vm0, %v2711_v0  ;;  %2404 = vmatpush3.msra.mxu0 %v1794_v16  ;;  %v2247_v16 = vld [vmem:[%s3270_s13] ss:$0 sm:$0xff] }
 0x7c4   : > { %2405 = vmatprep.subr.mxu0 %v2711_v0 }
 0x7c5   : > { %2406 = vmatpush3.msra.mxu0 %v1793_v26 }
 0x7c6   : > { %2407 = vmatprep.subr.mxu0 %v2711_v0 }
 0x7cd   : > { %v1590_v3 = vpop.f32.mrf.mxu1 }
 0x7ce   : > { %1595 = vperm.xlu1 %2527, %v1590_v3   ;;  %1599 = vperm.xlu0 %2526, %v1590_v3  }
 0x7cf   : > { %v2392_v4 = vpop.f32.mrf.mxu1 }
 0x7d0   : > { %v2240_v4 = vld [vmem:[%s3263_s6] ss:$0 sm:$0xff] }
 0x849   : > { %v1596_v6 = vpop.permute.xlu1 %1595  ;;  %v1600_v14 = vpop.permute.xlu0 %1599 }
 0x84a   : > { %v1597_v7 = vsel %vm745_vm6, %v1596_v6, -1e+30 }
 0x84b   : > { %v1676_v8 = vsel %vm761_vm3, %v1597_v7, -inf }
 0x84c   : > { %1677 = vmax.xlane.f32.xlu1 %v1676_v8 }
 0x87e   : > { %v1516_v9 = vpop.f32.mrf.mxu0 }
 0x880   : > { %v2387_v11 = vpop.f32.mrf.mxu0 }
 0x881   : > { %v1986_v11 = vld [vmem:[%s3267_s10 + $0x10] sm:$0xff] }
 0x882   : > { %v1671_v15 = vpop.f32.mrf.mxu0 }
 0x883   : > { %v1672_v17 = vadd.f32 %v1671_v15, %v1600_v14  ;;  %v1985_v14 = vld [vmem:[%s3267_s10 + $0x8] sm:$0xff]  ;;  %v1984_v15 = vld [vmem:[%s3267_s10] sm:$0xff] }
 0x884   : > { %v2397_v19 = vpop.f32.mrf.mxu0 }
 0x885   : > { %v1675_v21 = vsel %vm751_vm7, %v1672_v17, -1e+30  ;;  %v2242_v17 = vld [vmem:[%s3266_s9] ss:$0 sm:$0xff] }
 0x886   : > { %v1679_v22 = vsel %vm761_vm3, %v1675_v21, -inf }
 0x887   : > { %1680 = vmax.xlane.f32.xlu0 %v1679_v22 }
 0x8d5   : > { %v1678_v23 = vpop.xlane.xlu1 %1677 }
 0x910   : > { %v1681_v24 = vpop.xlane.xlu0 %1680 }
 0x911   : > { %v1682_v25 = vmax.f32 %v1678_v23, %v1681_v24  ;;  %v2244_v24 = vld [vmem:[%s3268_s11] ss:$0 sm:$0xff] }
 0x913   : > { %v1683_v27 = vsub.f32 %v1597_v7, %v1682_v25  ;;  %v1686_v28 = vsub.f32 %v1675_v21, %v1682_v25  ;;  %v2241_v7 = vld [vmem:[%s3264_s7] ss:$0 sm:$0xff] }
 0x915   : > { %v1684_v29 = vmul.f32 1.442695, %v1683_v27  ;;  %v1687_v30 = vmul.f32 1.442695, %v1686_v28 }
 0x917   : > { %2546 = vpow2.f32 %v1684_v29 }
 0x918   : > { %2548 = vpow2.f32 %v1687_v30 }
 0x924   : > { %v2547_v31 = vpop.eup %2546 }
 0x925   : > { %v2549_v32 = vpop.eup %2548  ;;  %v1689_v33 = vsel %vm761_vm3, %v2547_v31, 0.0 }
 0x926   : > { %v1692_v34 = vsel %vm761_vm3, %v2549_v32, 0.0  ;;  %1690 = vadd.xlane.f32.xlu0 %v1689_v33 }
 0x927   : > { %1693 = vadd.xlane.f32.xlu1 %v1692_v34 }
 0x938   : > { %1775 = vrot.lane.b32.xlu1 %v3109_v41, %s2716_s8 }
 0x93c   : > { %1779 = vrot.lane.b32.xlu1 %v1516_v9, %s2717_s19  ;;  %1698 = vrot.lane.b32.xlu0 %v3053_v52, %s2715_s4  ;;  %v1792_v52 = vld [vmem:[#allocation5 + $0x8] sm:$0xff] }
 0x93d   : > { %2408 = vmatpush3.msra.mxu0 %v1792_v52 }
 0x93e   : > { %2409 = vmatprep.subr.mxu0 %v2711_v0 }
 0x93f   : > { %2410 = vmatpush3.msra.mxu0 %v1791_v39 }
 0x940   : > { %2425 = vmatprep.subr.mxu0 %v2711_v0 }
 0x9af   : > { %v1691_v12 = vpop.xlane.xlu0 %1690 }
 0x9b0   : > { %v1694_v13 = vpop.xlane.xlu1 %1693 }
 0x9b1   : > { %v1695_v35 = vadd.f32 %v1694_v13, %v1691_v12 }
 0x9b3   : > { %2550 = vrcp.f32 %v1695_v35  ;;  %v1699_v36 = vpop.permute.xlu0 %1698 }
 0x9b4   : > { %2399 = vmatpush3.msra.mxu1 %v1699_v36  ;;  %v1776_v42 = vpop.permute.xlu1 %1775 }
 0x9b5   : > { %2414 = vmatprep.subr.mxu1 %v2711_v0  ;;  %v1786_v44 = vsel %vm761_vm3, %v3079_v2, %v1776_v42 }
 0x9b8   : > { %v1780_v43 = vpop.permute.xlu1 %1779 }
 0x9b9   : > { %v1788_v10 = vsel %vm1787_vm8, %v1786_v44, %v1780_v43 }
 0x9c0   : > { %v2551_v37 = vpop.eup %2550 }
 0x9c1   : > { %v1697_v38 = vmul.f32 %v2551_v37, %v2549_v32  ;;  %v2246_v37 = vld [vmem:[%s3269_s12] ss:$0 sm:$0xff] }
 0x9c3   : > { %2401 = vmatmul.mubr.msk.f32.vlgmr.msra.gmra.mxu1 %vm761_vm3, %v1697_v38 }
 0x9c4   : > { %2422 = vmatprep.mubr.msk.f32.mxu1 %vm2712_vm0, %v2711_v0  ;;  %2415 = vmatpush3.msra.mxu1 %v1902_v56 }
 0x9c5   : > { %2416 = vmatprep.subr.mxu1 %v2711_v0 }
 0x9c6   : > { %2417 = vmatpush3.msra.mxu1 %v1901_v18 }
 0x9c7   : > { %2418 = vmatprep.subr.mxu1 %v2711_v0 }
 0x9c8   : > { %2419 = vmatpush3.msra.mxu1 %v1900_v57 }
 0x9c9   : > { %2420 = vmatprep.subr.mxu1 %v2711_v0 }
 0xa83   : > { %v1770_v40 = vpop.f32.mrf.mxu1 }
 0xa84   : > { %1783 = vrot.lane.b32.xlu0 %v1770_v40, %s2718_s21 }
 0xa85   : > { %v2402_v41 = vpop.f32.mrf.mxu1 }
 0xaf6   : > { %v1784_v45 = vpop.permute.xlu0 %1783 }
 0xaf7   : > { %v1790_v46 = vsel %vm1789_vm9, %v1788_v10, %v1784_v45 }
 0xaf8   : > { %2412 = vmatmul.mubr.msk.f32.vlgmr.msra.gmra.mxu0 %vm517_vm1, %v1790_v46 }
 0xaf9   : > { %2441 = vmatprep.mubr.msk.f32.mxu0 %vm2712_vm0, %v2711_v0  ;;  %2426 = vmatpush3.msra.mxu0 %v1991_v20 }
 0xafa   : > { %2427 = vmatprep.subr.mxu0 %v2711_v0 }
 0xafb   : > { %2428 = vmatpush3.msra.mxu0 %v1990_v58 }
 0xafc   : > { %2429 = vmatprep.subr.mxu0 %v2711_v0 }
 0xafd   : > { %2430 = vmatpush3.msra.mxu0 %v1989_v59 }
 0xafe   : > { %2431 = vmatprep.subr.mxu0 %v2711_v0 }
 0xaff   : > { %2432 = vmatpush3.msra.mxu0 %v1988_v60 }
 0xb00   : > { %2433 = vmatprep.subr.mxu0 %v2711_v0 }
 0xb01   : > { %2434 = vmatpush3.msra.mxu0 %v1987_v61 }
 0xb02   : > { %2435 = vmatprep.subr.mxu0 %v2711_v0 }
 0xb03   : > { %2436 = vmatpush3.msra.mxu0 %v1986_v11 }
 0xb04   : > { %2437 = vmatprep.subr.mxu0 %v2711_v0 }
 0xb05   : > { %2438 = vmatpush3.msra.mxu0 %v1985_v14 }
 0xb06   : > { %2439 = vmatprep.subr.mxu0 %v2711_v0 }
 0xb07   : > { %2440 = vmatpush3.msra.mxu0 %v1984_v15 }
 0xbb8   : > { %v1864_v47 = vpop.f32.mrf.mxu0 }
 0xbb9   : > { %v1868_v48 = vadd.f32 %v1864_v47, %v2947_v5  ;;  %v1899_v5 = vld [vmem:[#allocation7] sm:$0xff] }
 0xbba   : > { %v2413_v49 = vpop.f32.mrf.mxu0  ;;  %2421 = vmatpush3.msra.mxu1 %v1899_v5 }
 0xbbb   : > { %v1871_v50 = vsel %vm517_vm1, %v1868_v48, 0.0 }
 0xbbc   : > { %1872 = vadd.xlane.f32.xlu1 %v1871_v50 }
 0xc45   : > { %v1873_v51 = vpop.xlane.xlu1 %1872 }
 0xc46   : > { %v1875_v53 = vmul.f32 0.03125, %v1873_v51 }
 0xc48   : > { %v1876_v54 = vsub.f32 %v1868_v48, %v1875_v53 }
 0xc4a   : > { %v1877_v55 = vmul.f32 %v1876_v54, %v1876_v54 }
 0xc4c   : > { %v1878_v2 = vsel %vm517_vm1, %v1877_v55, 0.0 }
 0xc4d   : > { %1879 = vadd.xlane.f32.xlu0 %v1878_v2 }
 0xcd6   : > { %v1880_v62 = vpop.xlane.xlu0 %1879 }
 0xcd7   : > { %v1881_v63 = vmul.f32 0.03125, %v1880_v62 }
 0xcd9   : > { %v1882_v1 = vadd.f32 1e-05, %v1881_v63 }
 0xcdb   : > { %2552 = vrsqrt.f32 %v1882_v1 }
 0xce8   : > { %v2553_v3 = vpop.eup %2552 }
 0xce9   : > { %v1884_v6 = vmul.f32 %v2553_v3, %v1876_v54 }
 0xceb   : > { %v1891_v8 = vmul.f32 %v2240_v4, %v1884_v6 }
 0xced   : > { %v1898_v9 = vadd.f32 %v2241_v7, %v1891_v8 }
 0xcef   : > { %2423 = vmatmul.mubr.msk.f32.vlgmr.msra.gmra.mxu1 %vm517_vm1, %v1898_v9 }
 0xdaf   : > { %v1979_v19 = vpop.f32.mrf.mxu1 }
 0xdb0   : > { %v1980_v21 = vadd.f32 %v2242_v17, %v1979_v19 }
 0xdb1   : > { %v2424_v22 = vpop.f32.mrf.mxu1 }
 0xdb2   : > { %v1983_v23 = vmax.f32 %v1980_v21, 0.0 }
 0xdb4   : > { %2442 = vmatmul.mubr.msk.f32.vlgmr.msra.gmra.mxu0 %vm1999_vm10, %v1983_v23 }
 0xe74   : > { %v2069_v0 = vpop.f32.mrf.mxu0 }
 0xe75   : > { %v2070_v25 = vadd.f32 %v2244_v24, %v2069_v0 }
 0xe76   : > { %v2443_v27 = vpop.f32.mrf.mxu0 }
 0xe77   : > { %v2073_v28 = vadd.f32 %v2070_v25, %v1898_v9 }
 0xe79   : > { %v2076_v29 = vsel %vm517_vm1, %v2073_v28, 0.0 }
 0xe7a   : > { %2077 = vadd.xlane.f32.xlu0 %v2076_v29 }
 0xf03   : > { %v2078_v30 = vpop.xlane.xlu0 %2077 }
 0xf04   : > { %v2079_v31 = vmul.f32 0.03125, %v2078_v30 }
 0xf06   : > { %v2080_v32 = vsub.f32 %v2073_v28, %v2079_v31 }
 0xf08   : > { %v2081_v33 = vmul.f32 %v2080_v32, %v2080_v32 }
 0xf0a   : > { %v2082_v34 = vsel %vm517_vm1, %v2081_v33, 0.0 }
 0xf0b   : > { %2083 = vadd.xlane.f32.xlu1 %v2082_v34 }
 0xf94   : > { %v2084_v12 = vpop.xlane.xlu1 %2083 }
 0xf95   : > { %v2085_v13 = vmul.f32 0.03125, %v2084_v12 }
 0xf97   : > { %v2086_v35 = vadd.f32 1e-05, %v2085_v13 }
 0xf99   : > { %2554 = vrsqrt.f32 %v2086_v35 }
 0xfa6   : > { %v2555_v36 = vpop.eup %2554 }
 0xfa7   : > { %v2088_v38 = vmul.f32 %v2555_v36, %v2080_v32 }
 0xfa9   : > { %v2095_v26 = vmul.f32 %v2246_v37, %v2088_v38 }
 0xfab   : > { %v2102_v52 = vadd.f32 %v2247_v16, %v2095_v26 }
 0xfad   : > { %2103 = vst.msk [vmem:[%s511_s23] sm:$0xff] %vm517_vm1, %v2102_v52 }
 0xfae   : > { %2649 = shalt.err (!%p2646_p9)
}
 0xfaf   : > { %s2650_s4 = scalar_lea.hbm %s2116_s24, 128  ;;  %s2654_s19 = scalar_lea.hbm %s3305_s27, 256 }
 0xfb0   : > { %p2651_p13 = scmp.ne.s32.totalorder %s2116_s24, %s2650_s4  ;;  %p2655_p4 = scmp.lt.s32.totalorder %s2116_s24, %s3305_s27 }
 0xfb1   : > { %p2656_p8 = scmp.lt.s32.totalorder %s2654_s19, %s2650_s4 }
 0xfb2   : > { %p2652_p5 = pnand %p2651_p13, %p3306_p0 }
 0xfb3   : > { %p2657_p3 = por %p2656_p8, %p2655_p4 }
 0xfb4   : > { %p2653_p10 = pneg %p2652_p5 }
 0xfb6   : > { %p2658_p11 = pnand %p2657_p3, %p2653_p10 }
 0xfb8   : > { %2661 = shalt.err (!%p2658_p11)
}
 0xfb9   : > { %2454 = dma.vmem_to_hbm [thread:$0]  (%p3306_p0), %s2119_s26, 128, %s2116_s24, %s2105_s25  }
 0xfba PF: > { %s3307_s23 = sld [smem:[#allocation12_spill]] }
 0xfbb   : > { %s3308_s28 = sld [smem:[#allocation15_spill]] }
 0xfbc   : > { %s3309_s18 = sld [smem:[#allocation14_spill]] }
 0xfc0   : > { %s2130_s16 = sand.u32 1, %s3307_s23  }
 0xfc1   : > { %p3310_p1 = scmp.ne.s32.totalorder %s3308_s28, 0  ;;  %s2131_s14 = scalar_lea.sflag [#allocation4], %s2130_s16 }
 0xfc2   : > { %p3311_p2 = scmp.ge.s32.totalorder %s3309_s18, 2 }
 0xfc4   : > { %p2468_p6 = pnand %p3311_p2, %p3310_p1 }
 0xfc6   : > { %p2469_p12 = pneg %p2468_p6 }
 0xfc8   : > { %2687 = dma.done.wait (%p2469_p12), %s2131_s14, 128  }
 0xfc9   : > { %2689 = vsyncadd (%p2469_p12), %s2131_s14, 4294967168  ;;  %s3312_s16 = sld [smem:[#allocation16_spill]]  ;;  %s3315_s29 = smov %s2696_s30 }
 0xfca   : > { %s3313_s17 = sld [smem:[#allocation13_spill]] }
 0xfcb   : > { %s3314_s15 = sld [smem:[#allocation17_spill]] }
 0xfcf   : > { %p28_p7 = scmp.ge.s32.totalorder %s3312_s16, 4  }
 0xfd0   : > { %s3316_s30 = smov %s3313_s17 }
 0xfd1   :  { %30 = sbr.rel (!%p28_p7) target bundleno = 10 (0xa), region = 129 }
 0xfd6   :  { %2136 = vsyncpa [#allocation3], 1 }
 0xfd7   :  { %2138 = vsyncpa [#allocation3 + $0x1], 1 }
 0xfd8   :  { %2139 = vsyncpa [#allocation6], 1 }
 0xfd9   :  { %2140 = vsyncpa [#allocation4], 1 }
 0xfda   :  { %2142 = vsyncpa [#allocation4 + $0x1], 1 }

// kernel: tpu_custom_call.1
= control target key start
LH: loop header
LB: loop body
LE: loop exit
PB: predicated region body
PF: predicated region fallthrough
CT: control target
= control target key end

     0   :  { %s3728_s0 = inlined_call_operand.hbm [shape: f32[2,8,32], index: 0, kind: input, shape index: {}]   ;;  %s3729_s1 = inlined_call_operand.vmem [shape: f32[32,32], index: 1, kind: input, shape index: {}]   ;;  %s3730_s2 = inlined_call_operand.vmem [shape: f32[32,32], index: 2, kind: input, shape index: {}]   ;;  %s3731_s3 = inlined_call_operand.vmem [shape: f32[32,32], index: 3, kind: input, shape index: {}]   ;;  %s3732_s4 = inlined_call_operand.hbm [shape: f32[32,32], index: 4, kind: input, shape index: {}]   ;;  %s3733_s5 = inlined_call_operand.vmem [shape: f32[8,8], index: 5, kind: input, shape index: {}]   ;;  %s3734_s6 = inlined_call_operand.vmem [shape: f32[1,32], index: 6, kind: input, shape index: {}]   ;;  %s3735_s7 = inlined_call_operand.vmem [shape: f32[1,32], index: 7, kind: input, shape index: {}]   ;;  %s3736_s8 = inlined_call_operand.hbm [shape: f32[32,64], index: 8, kind: input, shape index: {}]   ;;  %s3737_s9 = inlined_call_operand.vmem [shape: f32[1,64], index: 9, kind: input, shape index: {}]   ;;  %s3738_s10 = inlined_call_operand.vmem [shape: f32[64,32], index: 10, kind: input, shape index: {}]   ;;  %s3739_s11 = inlined_call_operand.vmem [shape: f32[1,32], index: 11, kind: input, shape index: {}]   ;;  %s3740_s12 = inlined_call_operand.vmem [shape: f32[1,32], index: 12, kind: input, shape index: {}]   ;;  %s3741_s13 = inlined_call_operand.vmem [shape: f32[1,32], index: 13, kind: input, shape index: {}]   ;;  %s3742_s14 = inlined_call_operand.hbm [shape: f32[2,8,32], index: 14, kind: output, shape index: {}]  }
   0x1   :  { %3764 = sst [smem:[#allocation18_spill]] %s3732_s4 }
   0x2   :  { %3765 = sst [smem:[#allocation19_spill]] %s3736_s8 }
   0x3   :  { %3766 = sst [smem:[#allocation20_spill]] %s3742_s14 }
   0x4   :  { %19 = vsyncpa [#allocation3], 0 }
   0x5   :  { %21 = vsyncpa [#allocation3 + $0x1], 0 }
   0x6   :  { %22 = vsyncpa [#allocation6], 0 }
   0x7   :  { %23 = vsyncpa [#allocation4], 0 }
   0x8   :  { %25 = vsyncpa [#allocation4 + $0x1], 0  ;;  %s3090_s29 = smov 0   ;;  %s3092_s30 = smov 0  }
   0x9   :  { %s3094_s15 = smov 0   ;;  %s3096_s16 = smov 0  }
   0xa LB: > { %3767 = sst [smem:[#allocation12_spill]] %s2979_s29  ;;  %s3111_s17 = sadd.s32 4294967295, %s2991_s16   ;;  %s2991_s16 = sphi %s3096_s16, %s3819_s16   ;;  %s2987_s15 = sphi %s3094_s15, %s3821_s15   ;;  %s2983_s30 = sphi %s3092_s30, %s3823_s30   ;;  %s2979_s29 = sphi %s3090_s29, %s3822_s29  }
   0xb   : > { %3768 = sst [smem:[#allocation13_spill]] %s2987_s15  ;;  %s2459_s18 = sadd.s32 4294967294, %s2991_s16  }
   0xc   : > { %3769 = sst [smem:[#allocation14_spill]] %s2991_s16  ;;  %p51_p0 = scmp.ne.s32.totalorder %s2983_s30, %s2979_s29 }
   0xd   : > { %p3744_p1 = scmp.eq.s32.totalorder %s3111_s17, 0  ;;  %p354_p3 = scmp.eq.s32.totalorder %s2459_s18, 1 }
   0xe   : > { %p2460_p5 = scmp.ge.s32.totalorder %s2991_s16, 1  ;;  %p361_p7 = scmp.lt.s32.totalorder %s2991_s16, 3 }
   0xf   : > { %p3120_p4 = por %p3744_p1, %p51_p0  ;;  %p3125_p6 = por %p354_p3, %p51_p0 }
  0x10   : > { %p3130_p8 = pnand %p2460_p5, %p361_p7  ;;  %s2993_s22 = smov [#allocation5]  }
  0x11   : > { %s3770_s19 = scalar_select %p3120_p4, 1, 0 }
  0x12   : > { %s3771_s20 = scalar_select %p3125_p6, 1, 0 }
  0x13   : > { %s3773_s21 = scalar_select %p3130_p8, 1, 0 }
  0x14   : > { %3772 = sst [smem:[#allocation15_spill]] %s3771_s20  ;;  %s382_s23 = sshll.u32 %s2993_s22, 4  ;;  %s383_s23 = int_to_ptr.vmem [resolvable:$true] %s382_s23 }
  0x15   : > { %p2708_p9 = pneg %p3130_p8  ;;  %s2994_s25 = smov [#allocation7]  }
  0x16   : > { %s404_s26 = sshll.u32 %s2994_s25, 4  ;;  %s2854_s27 = scalar_lea.vmem %s383_s23, 512  ;;  %s405_s26 = int_to_ptr.vmem [resolvable:$true] %s404_s26 }
  0x17   : > { %p3139_p11 = pnand %p2708_p9, %p3744_p1  ;;  %p2855_p13 = scmp.ne.s32.totalorder %s383_s23, %s2854_s27 }
  0x18   : > { %p2862_p5 = scmp.lt.s32.totalorder %s383_s23, %s383_s23  ;;  %p2863_p7 = scmp.lt.s32.totalorder %s2854_s27, %s2854_s27 }
  0x19   : > { %p2845_p12 = pneg %p3139_p11 }
  0x1a   : > { %p2864_p10 = por %p2863_p7, %p2862_p5 }
  0x1b   : > { %p2857_p0 = pnand %p2855_p13, %p2845_p12 }
  0x1d   : > { %p2858_p3 = pneg %p2857_p0 }
  0x1f   : > { %p2865_p9 = pnand %p2864_p10, %p2858_p3 }
  0x21   : > { %2868 = shalt.err (!%p2865_p9)
}
  0x22   : > { %s2995_s28 = smov 128   ;;  %s2996_s18 = smov 8  }
  0x23   : > { %s3775_s4 = sld [smem:[#allocation18_spill]]  ;;  %s2880_s20 = scalar_lea.vmem %s405_s26, 512 }
  0x24   : > { %p2881_p1 = scmp.ne.s32.totalorder %s405_s26, %s2880_s20  ;;  %p2888_p2 = scmp.lt.s32.totalorder %s405_s26, %s405_s26 }
  0x25   : > { %p2889_p6 = scmp.lt.s32.totalorder %s2880_s20, %s2880_s20 }
  0x26   : > { %p2883_p13 = pnand %p2881_p1, %p2845_p12 }
  0x27   : > { %p2890_p5 = por %p2889_p6, %p2888_p2 }
  0x28   : > { %p2884_p0 = pneg %p2883_p13 }
  0x29   : > { %2711 = dma.hbm_to_vmem [thread:$0]  (!%p3139_p11), %s3775_s4, 512, %s383_s23, [#allocation6], %s2995_s28, %s2995_s28, %s2996_s18  }
  0x2a   : > { %p2891_p10 = pnand %p2890_p5, %p2884_p0 }
  0x2c   : > { %2894 = shalt.err (!%p2891_p10)
}
  0x2d   : > { %s3776_s8 = sld [smem:[#allocation19_spill]]  ;;  %s3162_s20 = sadd.s32 1, %s2991_s16  }
  0x2e   : > { %3777 = sst [smem:[#allocation16_spill]] %s3162_s20  ;;  %s38_s23 = sadd.s32 1, %s2987_s15 }
  0x2f   : > { %s35_s24 = ssub.s32 %s2991_s16, %s3162_s20  ;;  %p45_p1 = scmp.ne.s32.totalorder %s2987_s15, %s2983_s30 }
  0x30   : > { %p36_p2 = scmp.eq.s32.totalorder %s35_s24, 0  ;;  %p46_p6 = scmp.eq.s32.totalorder %s2991_s16, 0 }
  0x31   : > { %p3778_p12 = scmp.eq.s32.totalorder %s3111_s17, 1  ;;  %p2725_p7 = scmp.lt.s32.totalorder %s2991_s16, 2 }
  0x32   : > { %s3178_s22 = scalar_select %p36_p2, %s2987_s15, %s38_s23  }
  0x33   : > { %2714 = dma.hbm_to_vmem [thread:$0]  (!%p3139_p11), %s3776_s8, 512, %s405_s26, [#allocation6], %s2995_s28, %s2995_s28, %s2996_s18  }
  0x34   : > { %p3172_p3 = por %p3778_p12, %p45_p1  ;;  %3780 = sst [smem:[#allocation17_spill]] %s3178_s22 }
  0x35   : > { %p47_p9 = por %p46_p6, %p45_p1  ;;  %s433_s25 = sand.u32 1, %s2987_s15  }
  0x36   : > { %s3779_s29 = scalar_select %p3172_p3, 1, 0 }
  0x37   : > { %s2464_s27 = sshll.u32 %s433_s25, 3  ;;  %s2465_s26 = sshll.u32 %s2991_s16, 7 }
  0x38   : > { %s3185_s4 = scalar_lea.hbm %s3728_s0, %s2465_s26  ;;  %s437_s24 = scalar_lea.vmem [#allocation2], %s2464_s27 }
  0x39   : > { %s444_s8 = sshll.u32 %s437_s24, 4  ;;  %p3187_p11 = pnand %p2725_p7, %p47_p9  ;;  %s445_s8 = int_to_ptr.vmem [resolvable:$true] %s444_s8 }
  0x3a   : > { %s434_s23 = scalar_lea.sflag [#allocation3], %s433_s25  ;;  %s2895_s22 = scalar_lea.hbm %s3185_s4, 128 }
  0x3b   : > { %p2896_p13 = scmp.ne.s32.totalorder %s3185_s4, %s2895_s22  ;;  %p2897_p0 = pneg %p3187_p11 }
  0x3c   : > { %s2900_s18 = scalar_lea.hbm %s3728_s0, 256  ;;  %p2901_p1 = scmp.lt.s32.totalorder %s3185_s4, %s3728_s0 }
  0x3d   : > { %p2898_p5 = pnand %p2897_p0, %p2896_p13  ;;  %p2902_p2 = scmp.lt.s32.totalorder %s2900_s18, %s2895_s22 }
  0x3f   : > { %p2899_p10 = pneg %p2898_p5  ;;  %p2903_p6 = por %p2902_p2, %p2901_p1 }
  0x41   : > { %p2904_p12 = pnand %p2903_p6, %p2899_p10 }
  0x43   : > { %2907 = shalt.err (!%p2904_p12)
}
  0x44   : > { %s2908_s24 = scalar_lea.vmem %s445_s8, 128  ;;  %s2997_s25 = smov [#allocation2]  }
  0x45   : > { %p2909_p7 = scmp.ne.s32.totalorder %s445_s8, %s2908_s24  ;;  %s2913_s16 = sshll.u32 %s2997_s25, 4  ;;  %s2914_s16 = int_to_ptr.vmem [resolvable:$false] %s2913_s16 }
  0x46   : > { %s2915_s14 = scalar_lea.vmem %s2914_s16, 256  ;;  %p2916_p13 = scmp.lt.s32.totalorder %s445_s8, %s2914_s16 }
  0x47   : > { %p2911_p9 = pnand %p2909_p7, %p2897_p0  ;;  %p2917_p5 = scmp.lt.s32.totalorder %s2915_s14, %s2908_s24 }
  0x49   : > { %p2912_p3 = pneg %p2911_p9  ;;  %p2918_p4 = por %p2917_p5, %p2916_p13 }
  0x4b   : > { %p2919_p8 = pnand %p2918_p4, %p2912_p3 }
  0x4d   : > { %2922 = shalt.err (!%p2919_p8)
}
  0x4e   : > { %2718 = dma.hbm_to_vmem [thread:$0]  (!%p3187_p11), %s3185_s4, 128, %s445_s8, %s434_s23  }
  0x4f   : > { %p3782_p10 = scmp.ne.s32.totalorder %s3773_s21, 0 }
  0x50   : > { %s3208_s15 = sand.u32 (!%p3782_p10), 1, %s2983_s30   ;;  %p3783_p4 = scmp.ne.s32.totalorder (!%p3782_p10), %s3770_s19, 0 }
  0x51   : > { %453 = sbr.rel (%p3782_p10) target bundleno = 4042 (0xfca), region = 76  ;;  %s2467_s22 = sshll.u32 (!%p3782_p10), %s3208_s15, 3 }
  0x52   : > { %s456_s16 = scalar_lea.sflag (!%p3782_p10), [#allocation3], %s3208_s15  ;;  %s3214_s14 = scalar_lea.vmem (!%p3782_p10), [#allocation2], %s2467_s22 }
  0x56   : > { %2966 = dma.done.wait (%p3783_p4), %s456_s16, 128  }
  0x57   : > { %2968 = vsyncadd (%p3783_p4), %s456_s16, 4294967168  ;;  %p3784_p8 = scmp.eq.s32.totalorder %s3111_s17, 0 }
  0x59   : > { %2970 = dma.done.wait (%p3784_p8), [#allocation6], 1024   ;;  %p3785_p3 = pmov %p3784_p8 }
  0x5a   : > { %v2998_v0 = vmov 0.0   ;;  %vm2999_vm0 = vmmov 0   ;;  %v516_v1 = vld [vmem:[%s3729_s1 + $0x18] sm:$0xff]  ;;  %v515_v2 = vld [vmem:[%s3729_s1 + $0x10] sm:$0xff]  ;;  %v514_v3 = vld [vmem:[%s3729_s1 + $0x8] sm:$0xff]  ;;  %vm3754_vm1 = vcmask 261120   ;;  %v741_v32 = vlaneseq }
  0x5b   : > { %2972 = vsyncadd (%p3785_p3), [#allocation6], 4294966272  ;;  %2562 = vmatprep.subr.mxu1 %v2998_v0  ;;  %2570 = vmatprep.mubr.msk.f32.mxu1 %vm2999_vm0, %v2998_v0  ;;  %v513_v4 = vld [vmem:[%s3729_s1] sm:$0xff]  ;;  %v595_v6 = vld [vmem:[%s3730_s2 + $0x18] sm:$0xff]  ;;  %v3000_v11 = vmov 2   ;;  %v3001_v12 = vmov 0  }
  0x5c   : > { %2584 = vmatprep.subr.mxu0 %v2998_v0  ;;  %2592 = vmatprep.mubr.msk.f32.mxu0 %vm2999_vm0, %v2998_v0  ;;  %v3245_v5 = vld [vmem:[%s3214_s14] sm:$0xff]  ;;  %v594_v7 = vld [vmem:[%s3730_s2 + $0x10] sm:$0xff]  ;;  %vm761_vm2 = vcmask 64512   ;;  %v3002_v20 = vmov 3   ;;  %v3003_v21 = vmov 1   ;;  %v3004_v23 = vmov 4  }
  0x5d   : > { %2563 = vmatpush3.msra.mxu1 %v516_v1  ;;  %v593_v8 = vld [vmem:[%s3730_s2 + $0x8] sm:$0xff]  ;;  %v592_v9 = vld [vmem:[%s3730_s2] sm:$0xff]  ;;  %2783 = vset.pattern.permute.xlu1 %v3000_v11  ;;  %v3005_v24 = vmov 5   ;;  %v3006_v26 = vmov 6   ;;  %v3007_v27 = vmov 7   ;;  %v669_v28 = vld [vmem:[%s3731_s3 + $0x18] sm:$0xff] }
  0x5e   : > { %2564 = vmatprep.subr.mxu1 %v2998_v0  ;;  %v3271_v10 = vld [vmem:[%s3733_s5] sm:$0xff]  ;;  %2781 = vset.pattern.permute.xlu0 %v3001_v12  ;;  %v668_v29 = vld [vmem:[%s3731_s3 + $0x10] sm:$0xff]  ;;  %v667_v30 = vld [vmem:[%s3731_s3 + $0x8] sm:$0xff]  ;;  %v3329_v33 = vshrl.u32 %v741_v32, 7  ;;  %v3331_v34 = vand.u32 127, %v741_v32  ;;  %s3008_s4 = smov 120  }
  0x5f   : > { %2565 = vmatpush3.msra.mxu1 %v515_v2  ;;  %2585 = vmatpush3.msra.mxu0 %v669_v28  ;;  %v666_v31 = vld [vmem:[%s3731_s3] sm:$0xff]  ;;  %s3009_s8 = smov 112   ;;  %s3010_s19 = smov 104  }
  0x60   : > { %2566 = vmatprep.subr.mxu1 %v2998_v0  ;;  %2586 = vmatprep.subr.mxu0 %v2998_v0  ;;  %v746_v35 = vsub.s32 %v3331_v34, %v3329_v33  ;;  %v755_v36 = vadd.s32 8, %v3331_v34  ;;  %s3011_s21 = smov 8   ;;  %s3012_s20 = smov 16  }
  0x61   : > { %2567 = vmatpush3.msra.mxu1 %v514_v3  ;;  %2587 = vmatpush3.msra.mxu0 %v668_v29  ;;  %s3013_s23 = smov 24   ;;  %s511_s26 = scalar_lea.vmem [#allocation8], %s2467_s22 }
  0x62   : > { %2568 = vmatprep.subr.mxu1 %v2998_v0  ;;  %2588 = vmatprep.subr.mxu0 %v2998_v0  ;;  %vm747_vm3 = vcmp.gt.s32.totalorder %v746_v35, 0  ;;  %v756_v37 = vsub.s32 %v755_v36, %v3329_v33  ;;  %s2370_s28 = sshll.u32 %s511_s26, 4  ;;  %s3811_s24 = sld [smem:[#allocation20_spill]]  ;;  %s2371_s28 = int_to_ptr.vmem [resolvable:$true] %s2370_s28 }
  0x63   : > { %2569 = vmatpush3.msra.mxu1 %v513_v4  ;;  %2589 = vmatpush3.msra.mxu0 %v667_v30  ;;  %v748_v38 = vsel %vm747_vm3, %v746_v35, 0  ;;  %s2357_s16 = scalar_lea.sflag [#allocation4], %s3208_s15  ;;  %p3813_p0 = scmp.ne.s32.totalorder %s3779_s29, 0 }
  0x64   : > { %2571 = vmatmul.mubr.msk.f32.vlgmr.msra.gmra.mxu1 %vm3754_vm1, %v3245_v5  ;;  %2573 = vmatprep.subr.mxu1 %v2998_v0  ;;  %vm749_vm4 = vcmp.lt.s32.totalorder %v748_v38, 7  ;;  %vm759_vm5 = vcmp.lt.s32.totalorder %v756_v37, 7 }
  0x65   : > { %2574 = vmatpush3.msra.mxu1 %v595_v6  ;;  %2581 = vmatprep.mubr.msk.f32.mxu1 %vm2999_vm0, %v2998_v0  ;;  %v3337_v39 = vsel %vm749_vm4, %v748_v38, 7  ;;  %v3339_v40 = vsel %vm759_vm5, %v756_v37, 7 }
  0x66   : > { %2575 = vmatprep.subr.mxu1 %v2998_v0  ;;  %2590 = vmatprep.subr.mxu0 %v2998_v0  ;;  %vm835_vm6 = vcmp.eq.s32.totalorder %v3337_v39, 0  ;;  %vm893_vm7 = vcmp.eq.s32.totalorder %v3339_v40, 0  ;;  %vm843_vm8 = vcmp.eq.s32.totalorder %v3337_v39, 1  ;;  %vm896_vm9 = vcmp.eq.s32.totalorder %v3339_v40, 1 }
  0x67   : > { %2576 = vmatpush3.msra.mxu1 %v594_v7  ;;  %2591 = vmatpush3.msra.mxu0 %v666_v31  ;;  %vm850_vm10 = vcmp.eq.s32.totalorder %v3337_v39, 2  ;;  %vm3763_vm11 = vcmp.eq.s32.totalorder %v3339_v40, 2  ;;  %vm857_vm12 = vcmp.eq.s32.totalorder %v3337_v39, 3  ;;  %vm3756_vm13 = vcmp.eq.s32.totalorder %v3339_v40, 3 }
  0x68   : > { %2577 = vmatprep.subr.mxu1 %v2998_v0  ;;  %2593 = vmatmul.mubr.msk.f32.vlgmr.msra.gmra.mxu0 %vm3754_vm1, %v3245_v5  ;;  %vm864_vm14 = vcmp.eq.s32.totalorder %v3337_v39, 4  ;;  %vm3755_vm15 = vcmp.eq.s32.totalorder %v3339_v40, 4  ;;  %vm3762_vm3 = vcmp.eq.s32.totalorder %v3337_v39, 5  ;;  %vm3757_vm4 = vcmp.eq.s32.totalorder %v3339_v40, 5 }
  0x69   : > { %2578 = vmatpush3.msra.mxu1 %v593_v8  ;;  %2605 = vmatprep.subr.mxu0 %v2998_v0  ;;  %vm3761_vm5 = vcmp.eq.s32.totalorder %v3337_v39, 6 }
  0x6a   : > { %2579 = vmatprep.subr.mxu1 %v2998_v0  ;;  %2607 = vmatprep.mubr.msk.f32.mxu0 %vm2999_vm0, %v2998_v0 }
  0x6b   : > { %2580 = vmatpush3.msra.mxu1 %v592_v9 }
  0x6c   : > { %2582 = vmatmul.mubr.msk.f32.vlgmr.msra.gmra.mxu1 %vm3754_vm1, %v3245_v5  ;;  %2595 = vmatprep.subr.mxu1 %v2998_v0  ;;  %vm3758_vm1 = vcmp.eq.s32.totalorder %v3339_v40, 6 }
  0x6d   : > { %2596 = vmatpush3.msra.mxu1 %v3271_v10  ;;  %2597 = vmatprep.mubr.msk.f32.mxu1 %vm2999_vm0, %v2998_v0 }
  0x6e   : > { %2600 = vmatprep.subr.mxu1 %v2998_v0 }
 0x124   : > { %v587_v13 = vpop.f32.mrf.mxu1 }
 0x125   : > { %v3282_v14 = vmul.f32 0.35355338, %v587_v13 }
 0x126   : > { %v2572_v15 = vpop.f32.mrf.mxu1 }
 0x127   : > { %2598 = vmatmul.mubr.msk.f32.vlgmr.msra.gmra.mxu1 %vm761_vm2, %v3282_v14 }
 0x128   : > { %2602 = vmatprep.mubr.msk.f32.mxu1 %vm2999_vm0, %v2998_v0 }
 0x12c   : > { %v3288_v16 = vpop.f32.mrf.mxu1 }
 0x12d   : > { %2601 = vmatpush3.xpose.msk.msra.mxu1 %vm761_vm2, %v3288_v16 }
 0x12e   : > { %v2583_v17 = vpop.f32.mrf.mxu1  ;;  %2610 = vmatprep.subr.mxu1 %v2998_v0 }
 0x130   : > { %2603 = vmatmul.mubr.msk.f32.vlgmr.msra.gmra.mxu1 %vm761_vm2, %v3282_v14 }
 0x131   : > { %2611 = vmatpush3.msra.mxu1 %v3271_v10  ;;  %2612 = vmatprep.mubr.msk.f32.mxu1 %vm2999_vm0, %v2998_v0 }
 0x132   : > { %2620 = vmatprep.subr.mxu1 %v2998_v0 }
 0x1e7   : > { %v831_v18 = vpop.f32.mrf.mxu1 }
 0x1e8   : > { %852 = vperm.xlu1 %2783, %v831_v18   ;;  %838 = vperm.xlu0 %2781, %v831_v18  }
 0x1e9   : > { %v2599_v19 = vpop.f32.mrf.mxu1 }
 0x1ec   : > { %2784 = vset.pattern.permute.xlu1 %v3002_v20  ;;  %2782 = vset.pattern.permute.xlu0 %v3003_v21 }
 0x1ed   : > { %859 = vperm.xlu1 %2784, %v831_v18   ;;  %845 = vperm.xlu0 %2782, %v831_v18  }
 0x1f0   : > { %v3301_v22 = vpop.f32.mrf.mxu1 }
 0x1f1   : > { %2785 = vset.pattern.permute.xlu1 %v3004_v23  ;;  %2786 = vset.pattern.permute.xlu0 %v3005_v24 }
 0x1f2   : > { %866 = vperm.xlu1 %2785, %v831_v18   ;;  %873 = vperm.xlu0 %2786, %v831_v18   ;;  %v2604_v25 = vpop.f32.mrf.mxu1 }
 0x1f6   : > { %2787 = vset.pattern.permute.xlu1 %v3006_v26  ;;  %2789 = vset.pattern.permute.xlu0 %v3001_v12 }
 0x1f7   : > { %880 = vperm.xlu1 %2787, %v831_v18  }
 0x1fb   : > { %2788 = vset.pattern.permute.xlu1 %v3007_v27 }
 0x1fc   : > { %887 = vperm.xlu1 %2788, %v831_v18  }
 0x200   : > { %2791 = vset.pattern.permute.xlu1 %v3000_v11 }
 0x263   : > { %v853_v41 = vpop.permute.xlu1 %852  ;;  %v839_v42 = vpop.permute.xlu0 %838 }
 0x264   : > { %v841_v45 = vsel %vm835_vm6, %v839_v42, 0.0  ;;  %v894_v46 = vsel %vm893_vm7, %v839_v42, 0.0  ;;  %v855_v51 = vsel %vm850_vm10, %v853_v41, 0.0  ;;  %v900_v52 = vsel %vm3763_vm11, %v853_v41, 0.0 }
 0x268   : > { %v860_v43 = vpop.permute.xlu1 %859  ;;  %v846_v44 = vpop.permute.xlu0 %845 }
 0x269   : > { %v848_v47 = vsel %vm843_vm8, %v846_v44, 0.0  ;;  %v897_v48 = vsel %vm896_vm9, %v846_v44, 0.0  ;;  %v862_v55 = vsel %vm857_vm12, %v860_v43, 0.0  ;;  %v903_v56 = vsel %vm3756_vm13, %v860_v43, 0.0 }
 0x26a   : > { %v849_v49 = vadd.f32 %v848_v47, %v841_v45  ;;  %v898_v50 = vadd.f32 %v897_v48, %v894_v46  ;;  %vm914_vm13 = vcmp.eq.s32.totalorder %v3339_v40, 7  ;;  %v3409_v48 = vpop.f32.mrf.mxu0 }
 0x26b   : > { %2606 = vmatpush3.msra.mxu0 %v3409_v48 }
 0x26c   : > { %v856_v53 = vadd.f32 %v855_v51, %v849_v49  ;;  %v901_v54 = vadd.f32 %v900_v52, %v898_v50  ;;  %v2594_v49 = vpop.f32.mrf.mxu0  ;;  %2615 = vmatprep.subr.mxu0 %v2998_v0 }
 0x26d   : > { %v867_v57 = vpop.permute.xlu1 %866  ;;  %v874_v62 = vpop.permute.xlu0 %873 }
 0x26e   : > { %v863_v58 = vadd.f32 %v862_v55, %v856_v53  ;;  %v869_v59 = vsel %vm864_vm14, %v867_v57, 0.0  ;;  %v904_v60 = vadd.f32 %v903_v56, %v901_v54  ;;  %v906_v61 = vsel %vm3755_vm15, %v867_v57, 0.0 }
 0x26f   : > { %v876_v2 = vsel %vm3762_vm3, %v874_v62, 0.0  ;;  %v909_v3 = vsel %vm3757_vm4, %v874_v62, 0.0  ;;  %vm3760_vm15 = vcmp.eq.s32.totalorder %v3337_v39, 7  ;;  %vm3759_vm4 = vcmp.ge.s32.totalorder %v3331_v34, %v3329_v33 }
 0x270   : > { %v870_v63 = vadd.f32 %v869_v59, %v863_v58  ;;  %v907_v1 = vadd.f32 %v906_v61, %v904_v60 }
 0x272   : > { %v881_v4 = vpop.permute.xlu1 %880  ;;  %v877_v5 = vadd.f32 %v876_v2, %v870_v63  ;;  %v910_v6 = vadd.f32 %v909_v3, %v907_v1 }
 0x273   : > { %v883_v7 = vsel %vm3761_vm5, %v881_v4, 0.0  ;;  %v912_v8 = vsel %vm3758_vm1, %v881_v4, 0.0  ;;  %vm751_vm1 = vcmp.lt.s32.totalorder %v3331_v34, %v3329_v33 }
 0x274   : > { %v884_v9 = vadd.f32 %v883_v7, %v877_v5  ;;  %v913_v13 = vadd.f32 %v912_v8, %v910_v6 }
 0x277   : > { %v888_v15 = vpop.permute.xlu1 %887 }
 0x278   : > { %v890_v17 = vsel %vm3760_vm15, %v888_v15, 0.0  ;;  %v915_v18 = vsel %vm914_vm13, %v888_v15, 0.0 }
 0x279   : > { %v891_v19 = vadd.f32 %v890_v17, %v884_v9  ;;  %v916_v25 = vadd.f32 %v915_v18, %v913_v13 }
 0x27b   : > { %v892_v28 = vsel %vm3759_vm4, %v891_v19, -1e+30  ;;  %v987_v29 = vadd.f32 %v3301_v22, %v916_v25 }
 0x27c   : > { %v991_v30 = vsel %vm761_vm2, %v892_v28, -inf }
 0x27d   : > { %992 = vmax.xlane.f32.xlu0 %v991_v30  ;;  %v990_v31 = vsel %vm751_vm1, %v987_v29, -1e+30 }
 0x27e   : > { %v994_v32 = vsel %vm761_vm2, %v990_v31, -inf }
 0x27f   : > { %995 = vmax.xlane.f32.xlu1 %v994_v32 }
 0x293   : > { %1086 = vrot.lane.b32.xlu0 %v3282_v14, %s3008_s4 }
 0x306   : > { %v993_v35 = vpop.xlane.xlu0 %992 }
 0x308   : > { %v996_v36 = vpop.xlane.xlu1 %995 }
 0x309   : > { %v997_v37 = vmax.f32 %v993_v35, %v996_v36 }
 0x30a   : > { %v1087_v38 = vpop.permute.xlu0 %1086 }
 0x30b   : > { %v998_v41 = vsub.f32 %v892_v28, %v997_v37  ;;  %v1001_v22 = vsub.f32 %v990_v31, %v997_v37  ;;  %2613 = vmatmul.mubr.msk.f32.vlgmr.msra.gmra.mxu1 %vm761_vm2, %v1087_v38 }
 0x30c   : > { %2622 = vmatprep.mubr.msk.f32.mxu1 %vm2999_vm0, %v2998_v0 }
 0x30d   : > { %v999_v42 = vmul.f32 1.442695, %v998_v41  ;;  %v1002_v43 = vmul.f32 1.442695, %v1001_v22 }
 0x30f   : > { %2814 = vpow2.f32 %v999_v42 }
 0x310   : > { %2816 = vpow2.f32 %v1002_v43 }
 0x31c   : > { %v2815_v44 = vpop.eup %2814 }
 0x31d   : > { %v1004_v45 = vsel %vm761_vm2, %v2815_v44, 0.0  ;;  %v2817_v46 = vpop.eup %2816 }
 0x31e   : > { %1005 = vadd.xlane.f32.xlu1 %v1004_v45  ;;  %v1007_v47 = vsel %vm761_vm2, %v2817_v46, 0.0 }
 0x322   : > { %1008 = vadd.xlane.f32.xlu1 %v1007_v47 }
 0x333   : > { %1226 = vrot.lane.b32.xlu1 %v3288_v16, %s3008_s4 }
 0x3a7   : > { %v1006_v50 = vpop.xlane.xlu1 %1005 }
 0x3ab   : > { %v1009_v51 = vpop.xlane.xlu1 %1008 }
 0x3ac   : > { %v1010_v52 = vadd.f32 %v1009_v51, %v1006_v50 }
 0x3ae   : > { %2818 = vrcp.f32 %v1010_v52 }
 0x3af   : > { %v1227_v55 = vpop.permute.xlu1 %1226 }
 0x3bb   : > { %v2819_v53 = vpop.eup %2818 }
 0x3bc   : > { %v1012_v54 = vmul.f32 %v2819_v53, %v2817_v46 }
 0x3be   : > { %2608 = vmatmul.mubr.msk.f32.vlgmr.msra.gmra.mxu0 %vm761_vm2, %v1012_v54 }
 0x3bf   : > { %2616 = vmatpush3.xpose.msk.msra.mxu0 %vm761_vm2, %v1227_v55  ;;  %2617 = vmatprep.mubr.msk.f32.mxu0 %vm2999_vm0, %v2998_v0 }
 0x3c0   : > { %2625 = vmatprep.subr.mxu0 %v2998_v0 }
 0x3c2   : > { %2618 = vmatmul.mubr.msk.f32.vlgmr.msra.gmra.mxu0 %vm761_vm2, %v1087_v38 }
 0x3c3   : > { %2626 = vmatpush3.msra.mxu0 %v3271_v10  ;;  %2627 = vmatprep.mubr.msk.f32.mxu0 %vm2999_vm0, %v2998_v0 }
 0x3c4   : > { %2635 = vmatprep.subr.mxu0 %v2998_v0 }
 0x3cb   : > { %v1156_v56 = vpop.f32.mrf.mxu1 }
 0x3cc   : > { %1174 = vperm.xlu1 %2791, %v1156_v56   ;;  %1162 = vperm.xlu0 %2789, %v1156_v56  }
 0x3cd   : > { %v2614_v57 = vpop.f32.mrf.mxu1 }
 0x3d0   : > { %2792 = vset.pattern.permute.xlu1 %v3002_v20  ;;  %2790 = vset.pattern.permute.xlu0 %v3003_v21 }
 0x3d1   : > { %1180 = vperm.xlu1 %2792, %v1156_v56   ;;  %1168 = vperm.xlu0 %2790, %v1156_v56  }
 0x3d5   : > { %2794 = vset.pattern.permute.xlu1 %v3005_v24  ;;  %2793 = vset.pattern.permute.xlu0 %v3004_v23 }
 0x3d6   : > { %1192 = vperm.xlu1 %2794, %v1156_v56   ;;  %1186 = vperm.xlu0 %2793, %v1156_v56  }
 0x3da   : > { %2795 = vset.pattern.permute.xlu1 %v3006_v26  ;;  %2796 = vset.pattern.permute.xlu0 %v3007_v27 }
 0x3db   : > { %1198 = vperm.xlu1 %2795, %v1156_v56   ;;  %1204 = vperm.xlu0 %2796, %v1156_v56  }
 0x3df   : > { %2797 = vset.pattern.permute.xlu1 %v3001_v12  ;;  %2800 = vset.pattern.permute.xlu0 %v3002_v20 }
 0x447   : > { %v1175_v58 = vpop.permute.xlu1 %1174  ;;  %v1163_v59 = vpop.permute.xlu0 %1162 }
 0x448   : > { %v1165_v62 = vsel %vm835_vm6, %v1163_v59, 0.0  ;;  %v1177_v2 = vsel %vm850_vm10, %v1175_v58, 0.0  ;;  %v1210_v35 = vsel %vm893_vm7, %v1163_v59, 0.0  ;;  %v1214_v37 = vsel %vm3763_vm11, %v1175_v58, 0.0 }
 0x44c   : > { %v1181_v60 = vpop.permute.xlu1 %1180  ;;  %v1169_v61 = vpop.permute.xlu0 %1168 }
 0x44d   : > { %v1171_v63 = vsel %vm843_vm8, %v1169_v61, 0.0  ;;  %v1183_v4 = vsel %vm857_vm12, %v1181_v60, 0.0  ;;  %v1212_v32 = vsel %vm896_vm9, %v1169_v61, 0.0 }
 0x44e   : > { %v1172_v1 = vadd.f32 %v1171_v63, %v1165_v62  ;;  %v1213_v36 = vadd.f32 %v1212_v32, %v1210_v35 }
 0x450   : > { %v1178_v3 = vadd.f32 %v1177_v2, %v1172_v1  ;;  %v1215_v38 = vadd.f32 %v1214_v37, %v1213_v36 }
 0x451   : > { %v1193_v5 = vpop.permute.xlu1 %1192  ;;  %v1187_v6 = vpop.permute.xlu0 %1186 }
 0x452   : > { %v1184_v7 = vadd.f32 %v1183_v4, %v1178_v3  ;;  %v1189_v8 = vsel %vm864_vm14, %v1187_v6, 0.0  ;;  %v1195_v13 = vsel %vm3762_vm3, %v1193_v5, 0.0  ;;  %vm3789_vm3 = vcmp.eq.s32.totalorder %v3339_v40, 6 }
 0x454   : > { %v1190_v9 = vadd.f32 %v1189_v8, %v1184_v7 }
 0x456   : > { %v1199_v15 = vpop.permute.xlu1 %1198  ;;  %v1196_v17 = vadd.f32 %v1195_v13, %v1190_v9  ;;  %v1205_v18 = vpop.permute.xlu0 %1204 }
 0x457   : > { %v1201_v19 = vsel %vm3761_vm5, %v1199_v15, 0.0  ;;  %v1207_v28 = vsel %vm3760_vm15, %v1205_v18, 0.0  ;;  %vm3787_vm15 = vcmp.eq.s32.totalorder %v3339_v40, 4  ;;  %vm3788_vm5 = vcmp.eq.s32.totalorder %v3339_v40, 5 }
 0x458   : > { %v1202_v25 = vadd.f32 %v1201_v19, %v1196_v17  ;;  %v1218_v42 = vsel %vm3787_vm15, %v1187_v6, 0.0  ;;  %v1220_v44 = vsel %vm3788_vm5, %v1193_v5, 0.0  ;;  %v1222_v46 = vsel %vm3789_vm3, %v1199_v15, 0.0 }
 0x459   : > { %v1224_v50 = vsel %vm914_vm13, %v1205_v18, 0.0  ;;  %vm3791_vm3 = vcmp.eq.s32.totalorder %v3339_v40, 4 }
 0x45a   : > { %v1208_v29 = vadd.f32 %v1207_v28, %v1202_v25 }
 0x45c   : > { %v1209_v30 = vsel %vm3759_vm4, %v1208_v29, -1e+30  ;;  %vm3786_vm4 = vcmp.eq.s32.totalorder %v3339_v40, 3 }
 0x45d   : > { %v1301_v31 = vsel %vm761_vm2, %v1209_v30, -inf  ;;  %v1216_v41 = vsel %vm3786_vm4, %v1181_v60, 0.0  ;;  %vm3790_vm15 = vmmov %vm3786_vm4  ;;  %vm3792_vm4 = vcmp.eq.s32.totalorder %v3337_v39, 5 }
 0x45e   : > { %1302 = vmax.xlane.f32.xlu1 %v1301_v31  ;;  %v1217_v22 = vadd.f32 %v1216_v41, %v1215_v38 }
 0x460   : > { %v1219_v43 = vadd.f32 %v1218_v42, %v1217_v22 }
 0x462   : > { %v1221_v45 = vadd.f32 %v1220_v44, %v1219_v43 }
 0x464   : > { %v1223_v47 = vadd.f32 %v1222_v46, %v1221_v45 }
 0x466   : > { %v1225_v52 = vadd.f32 %v1224_v50, %v1223_v47 }
 0x46f   : > { %1400 = vrot.lane.b32.xlu1 %v3282_v14, %s3009_s8 }
 0x473   : > { %1540 = vrot.lane.b32.xlu1 %v3288_v16, %s3009_s8 }
 0x47e   : > { %v3471_v49 = vpop.f32.mrf.mxu0 }
 0x480   : > { %v2609_v51 = vpop.f32.mrf.mxu0 }
 0x482   : > { %v1296_v53 = vpop.f32.mrf.mxu0 }
 0x483   : > { %v1297_v54 = vadd.f32 %v1296_v53, %v1225_v52 }
 0x484   : > { %v2619_v55 = vpop.f32.mrf.mxu0 }
 0x485   : > { %v1300_v56 = vsel %vm751_vm1, %v1297_v54, -1e+30 }
 0x486   : > { %v1304_v57 = vsel %vm761_vm2, %v1300_v56, -inf }
 0x487   : > { %1305 = vmax.xlane.f32.xlu0 %v1304_v57 }
 0x4e7   : > { %v1303_v58 = vpop.xlane.xlu1 %1302 }
 0x4eb   : > { %v1401_v59 = vpop.permute.xlu1 %1400 }
 0x4ec   : > { %2628 = vmatmul.mubr.msk.f32.vlgmr.msra.gmra.mxu0 %vm761_vm2, %v1401_v59 }
 0x4ed   : > { %2637 = vmatprep.mubr.msk.f32.mxu0 %vm2999_vm0, %v2998_v0 }
 0x4ef   : > { %v1541_v25 = vpop.permute.xlu1 %1540 }
 0x510   : > { %v1306_v60 = vpop.xlane.xlu0 %1305 }
 0x511   : > { %v1307_v61 = vmax.f32 %v1303_v58, %v1306_v60 }
 0x513   : > { %v1308_v62 = vsub.f32 %v1209_v30, %v1307_v61  ;;  %v1311_v63 = vsub.f32 %v1300_v56, %v1307_v61 }
 0x515   : > { %v1309_v1 = vmul.f32 1.442695, %v1308_v62  ;;  %v1312_v2 = vmul.f32 1.442695, %v1311_v63 }
 0x517   : > { %2820 = vpow2.f32 %v1309_v1 }
 0x518   : > { %2822 = vpow2.f32 %v1312_v2 }
 0x524   : > { %v2821_v3 = vpop.eup %2820 }
 0x525   : > { %v1314_v4 = vsel %vm761_vm2, %v2821_v3, 0.0  ;;  %v2823_v5 = vpop.eup %2822 }
 0x526   : > { %1315 = vadd.xlane.f32.xlu0 %v1314_v4  ;;  %v1317_v6 = vsel %vm761_vm2, %v2823_v5, 0.0 }
 0x52a   : > { %1318 = vadd.xlane.f32.xlu0 %v1317_v6 }
 0x540   : > { %1324 = vrot.lane.b32.xlu0 %v3409_v48, %s3008_s4  ;;  %s2923_s4 = scalar_lea.vmem %s2371_s28, 128 }
 0x541   : > { %p2924_p11 = scmp.ne.s32.totalorder %s2371_s28, %s2923_s4 }
 0x543   : > { %p2925_p1 = pnand %p2924_p11, %p3813_p0 }
 0x545   : > { %p2926_p2 = pneg %p2925_p1 }
 0x5ac   : > { %v1470_v7 = vpop.f32.mrf.mxu0 }
 0x5ad   : > { %1494 = vperm.xlu0 %2800, %v1470_v7   ;;  %1476 = vperm.xlu1 %2797, %v1470_v7  }
 0x5ae   : > { %v2629_v8 = vpop.f32.mrf.mxu0 }
 0x5af   : > { %v1316_v9 = vpop.xlane.xlu0 %1315 }
 0x5b1   : > { %2803 = vset.pattern.permute.xlu0 %v3006_v26  ;;  %2798 = vset.pattern.permute.xlu1 %v3003_v21 }
 0x5b2   : > { %1512 = vperm.xlu0 %2803, %v1470_v7   ;;  %1482 = vperm.xlu1 %2798, %v1470_v7  }
 0x5b3   : > { %v1319_v13 = vpop.xlane.xlu0 %1318 }
 0x5b4   : > { %v1320_v15 = vadd.f32 %v1319_v13, %v1316_v9 }
 0x5b6   : > { %2824 = vrcp.f32 %v1320_v15  ;;  %2799 = vset.pattern.permute.xlu1 %v3000_v11  ;;  %2805 = vset.pattern.permute.xlu0 %v3001_v12 }
 0x5b7   : > { %v1325_v17 = vpop.permute.xlu0 %1324  ;;  %1488 = vperm.xlu1 %2799, %v1470_v7  }
 0x5b8   : > { %2621 = vmatpush3.msra.mxu1 %v1325_v17 }
 0x5b9   : > { %2630 = vmatprep.subr.mxu1 %v2998_v0 }
 0x5bb   : > { %2801 = vset.pattern.permute.xlu1 %v3004_v23 }
 0x5bc   : > { %1500 = vperm.xlu1 %2801, %v1470_v7  }
 0x5c0   : > { %2802 = vset.pattern.permute.xlu1 %v3005_v24 }
 0x5c1   : > { %1506 = vperm.xlu1 %2802, %v1470_v7  }
 0x5c3   : > { %v2825_v18 = vpop.eup %2824 }
 0x5c4   : > { %v1322_v19 = vmul.f32 %v2825_v18, %v2823_v5 }
 0x5c5   : > { %2804 = vset.pattern.permute.xlu1 %v3007_v27 }
 0x5c6   : > { %2623 = vmatmul.mubr.msk.f32.vlgmr.msra.gmra.mxu1 %vm761_vm2, %v1322_v19  ;;  %1518 = vperm.xlu1 %2804, %v1470_v7  }
 0x5c7   : > { %2631 = vmatpush3.xpose.msk.msra.mxu1 %vm761_vm2, %v1541_v25  ;;  %2632 = vmatprep.mubr.msk.f32.mxu1 %vm2999_vm0, %v2998_v0 }
 0x5c8   : > { %2640 = vmatprep.subr.mxu1 %v2998_v0 }
 0x5ca   : > { %2633 = vmatmul.mubr.msk.f32.vlgmr.msra.gmra.mxu1 %vm761_vm2, %v1401_v59  ;;  %2806 = vset.pattern.permute.xlu1 %v3003_v21 }
 0x5cb   : > { %2641 = vmatpush3.msra.mxu1 %v3271_v10  ;;  %2642 = vmatprep.mubr.msk.f32.mxu1 %vm2999_vm0, %v2998_v0 }
 0x5cc   : > { %2650 = vmatprep.subr.mxu1 %v2998_v0 }
 0x628   : > { %v1477_v12 = vpop.permute.xlu1 %1476  ;;  %v1495_v21 = vpop.permute.xlu0 %1494 }
 0x629   : > { %v1524_v29 = vsel %vm893_vm7, %v1477_v12, 0.0  ;;  %v1479_v10 = vsel %vm835_vm6, %v1477_v12, 0.0  ;;  %v1530_v42 = vsel %vm3790_vm15, %v1495_v21, 0.0  ;;  %v1497_v44 = vsel %vm857_vm12, %v1495_v21, 0.0 }
 0x62a   : > { %vm3793_vm15 = vcmp.eq.s32.totalorder %v3337_v39, 6 }
 0x62d   : > { %v1483_v28 = vpop.permute.xlu1 %1482  ;;  %v1513_v52 = vpop.permute.xlu0 %1512 }
 0x62e   : > { %v1526_v30 = vsel %vm896_vm9, %v1483_v28, 0.0  ;;  %v1485_v31 = vsel %vm843_vm8, %v1483_v28, 0.0  ;;  %v1515_v59 = vsel %vm3793_vm15, %v1513_v52, 0.0 }
 0x62f   : > { %v1527_v32 = vadd.f32 %v1526_v30, %v1524_v29  ;;  %v1486_v35 = vadd.f32 %v1485_v31, %v1479_v10 }
 0x632   : > { %v1489_v36 = vpop.permute.xlu1 %1488 }
 0x633   : > { %v1491_v37 = vsel %vm850_vm10, %v1489_v36, 0.0  ;;  %v1528_v38 = vsel %vm3763_vm11, %v1489_v36, 0.0  ;;  %vm3795_vm11 = vcmp.ge.s32.totalorder %v3331_v34, %v3329_v33 }
 0x634   : > { %v1492_v41 = vadd.f32 %v1491_v37, %v1486_v35  ;;  %v1529_v22 = vadd.f32 %v1528_v38, %v1527_v32 }
 0x636   : > { %v1531_v43 = vadd.f32 %v1530_v42, %v1529_v22  ;;  %v1498_v46 = vadd.f32 %v1497_v44, %v1492_v41 }
 0x637   : > { %v1501_v45 = vpop.permute.xlu1 %1500 }
 0x638   : > { %v1532_v47 = vsel %vm3791_vm3, %v1501_v45, 0.0  ;;  %v1503_v50 = vsel %vm864_vm14, %v1501_v45, 0.0  ;;  %vm3794_vm3 = vcmp.eq.s32.totalorder %v3337_v39, 7 }
 0x639   : > { %v1533_v51 = vadd.f32 %v1532_v47, %v1531_v43  ;;  %v1504_v53 = vadd.f32 %v1503_v50, %v1498_v46 }
 0x63c   : > { %v1507_v54 = vpop.permute.xlu1 %1506 }
 0x63d   : > { %v1509_v55 = vsel %vm3792_vm4, %v1507_v54, 0.0  ;;  %v1534_v56 = vsel %vm3788_vm5, %v1507_v54, 0.0  ;;  %vm3796_vm4 = vcmp.eq.s32.totalorder %v3339_v40, 6  ;;  %vm3802_vm5 = vcmp.eq.s32.totalorder %v3339_v40, 4 }
 0x63e   : > { %v1510_v57 = vadd.f32 %v1509_v55, %v1504_v53  ;;  %v1535_v58 = vadd.f32 %v1534_v56, %v1533_v51  ;;  %v1536_v3 = vsel %vm3796_vm4, %v1513_v52, 0.0 }
 0x640   : > { %v1516_v60 = vadd.f32 %v1515_v59, %v1510_v57  ;;  %v1537_v4 = vadd.f32 %v1536_v3, %v1535_v58 }
 0x641   : > { %v1519_v61 = vpop.permute.xlu1 %1518 }
 0x642   : > { %v1521_v62 = vsel %vm3794_vm3, %v1519_v61, 0.0  ;;  %v1538_v5 = vsel %vm914_vm13, %v1519_v61, 0.0 }
 0x643   : > { %v1522_v63 = vadd.f32 %v1521_v62, %v1516_v60  ;;  %v1539_v8 = vadd.f32 %v1538_v5, %v1537_v4 }
 0x645   : > { %v1523_v1 = vsel %vm3795_vm11, %v1522_v63, -1e+30 }
 0x646   : > { %v1615_v2 = vsel %vm761_vm2, %v1523_v1, -inf }
 0x647   : > { %1616 = vmax.xlane.f32.xlu1 %v1615_v2 }
 0x686   : > { %v3541_v6 = vpop.f32.mrf.mxu1 }
 0x688   : > { %v2624_v7 = vpop.f32.mrf.mxu1 }
 0x68a   : > { %v1610_v9 = vpop.f32.mrf.mxu1 }
 0x68b   : > { %v1611_v13 = vadd.f32 %v1610_v9, %v1539_v8 }
 0x68c   : > { %v2634_v15 = vpop.f32.mrf.mxu1 }
 0x68d   : > { %v1614_v17 = vsel %vm751_vm1, %v1611_v13, -1e+30 }
 0x68e   : > { %v1618_v18 = vsel %vm761_vm2, %v1614_v17, -inf }
 0x68f   : > { %1619 = vmax.xlane.f32.xlu0 %v1618_v18 }
 0x6a5   : > { %1713 = vrot.lane.b32.xlu0 %v3282_v14, %s3010_s19 }
 0x6a9   : > { %1853 = vrot.lane.b32.xlu0 %v3288_v16, %s3010_s19 }
 0x6d0   : > { %v1617_v19 = vpop.xlane.xlu1 %1616 }
 0x718   : > { %v1620_v25 = vpop.xlane.xlu0 %1619 }
 0x719   : > { %v1621_v12 = vmax.f32 %v1617_v19, %v1620_v25 }
 0x71b   : > { %v1622_v28 = vsub.f32 %v1523_v1, %v1621_v12  ;;  %v1625_v29 = vsub.f32 %v1614_v17, %v1621_v12 }
 0x71c   : > { %v1714_v30 = vpop.permute.xlu0 %1713 }
 0x71d   : > { %v1623_v31 = vmul.f32 1.442695, %v1622_v28  ;;  %v1626_v32 = vmul.f32 1.442695, %v1625_v29  ;;  %2643 = vmatmul.mubr.msk.f32.vlgmr.msra.gmra.mxu1 %vm761_vm2, %v1714_v30 }
 0x71e   : > { %2652 = vmatprep.mubr.msk.f32.mxu1 %vm2999_vm0, %v2998_v0 }
 0x71f   : > { %2826 = vpow2.f32 %v1623_v31 }
 0x720   : > { %2828 = vpow2.f32 %v1626_v32  ;;  %v1854_v42 = vpop.permute.xlu0 %1853 }
 0x72c   : > { %v2827_v10 = vpop.eup %2826 }
 0x72d   : > { %v1628_v14 = vsel %vm761_vm2, %v2827_v10, 0.0  ;;  %v2829_v21 = vpop.eup %2828 }
 0x72e   : > { %1629 = vadd.xlane.f32.xlu1 %v1628_v14  ;;  %v1631_v16 = vsel %vm761_vm2, %v2829_v21, 0.0 }
 0x732   : > { %1632 = vadd.xlane.f32.xlu1 %v1631_v16 }
 0x743   : > { %1637 = vrot.lane.b32.xlu1 %v3409_v48, %s3009_s8  ;;  %s3014_s8 = smov [#allocation8]  }
 0x7b7   : > { %v1630_v35 = vpop.xlane.xlu1 %1629 }
 0x7bb   : > { %v1633_v36 = vpop.xlane.xlu1 %1632 }
 0x7bc   : > { %v1634_v37 = vadd.f32 %v1633_v36, %v1630_v35 }
 0x7be   : > { %2830 = vrcp.f32 %v1634_v37 }
 0x7bf   : > { %v1638_v38 = vpop.permute.xlu1 %1637 }
 0x7c0   : > { %2636 = vmatpush3.msra.mxu0 %v1638_v38 }
 0x7c1   : > { %2645 = vmatprep.subr.mxu0 %v2998_v0 }
 0x7cb   : > { %v2831_v41 = vpop.eup %2830 }
 0x7cc   : > { %v1636_v22 = vmul.f32 %v2831_v41, %v2829_v21 }
 0x7ce   : > { %2638 = vmatmul.mubr.msk.f32.vlgmr.msra.gmra.mxu0 %vm761_vm2, %v1636_v22 }
 0x7cf   : > { %2646 = vmatpush3.xpose.msk.msra.mxu0 %vm761_vm2, %v1854_v42  ;;  %2647 = vmatprep.mubr.msk.f32.mxu0 %vm2999_vm0, %v2998_v0 }
 0x7d0   : > { %2655 = vmatprep.subr.mxu0 %v2998_v0 }
 0x7d2   : > { %2648 = vmatmul.mubr.msk.f32.vlgmr.msra.gmra.mxu0 %vm761_vm2, %v1714_v30 }
 0x7d3   : > { %2663 = vmatprep.mubr.msk.f32.mxu0 %vm2999_vm0, %v2998_v0 }
 0x7dd   : > { %v1783_v43 = vpop.f32.mrf.mxu1 }
 0x7de   : > { %1795 = vperm.xlu1 %2806, %v1783_v43   ;;  %1789 = vperm.xlu0 %2805, %v1783_v43  }
 0x7df   : > { %v2644_v44 = vpop.f32.mrf.mxu1 }
 0x7e2   : > { %2807 = vset.pattern.permute.xlu1 %v3000_v11  ;;  %2808 = vset.pattern.permute.xlu0 %v3002_v20 }
 0x7e3   : > { %1801 = vperm.xlu1 %2807, %v1783_v43   ;;  %1807 = vperm.xlu0 %2808, %v1783_v43  }
 0x7e7   : > { %2809 = vset.pattern.permute.xlu1 %v3004_v23  ;;  %2811 = vset.pattern.permute.xlu0 %v3006_v26 }
 0x7e8   : > { %1813 = vperm.xlu1 %2809, %v1783_v43   ;;  %1825 = vperm.xlu0 %2811, %v1783_v43  }
 0x7ec   : > { %2810 = vset.pattern.permute.xlu1 %v3005_v24  ;;  %2813 = vset.pattern.permute.xlu0 %v3007_v27 }
 0x7ed   : > { %1819 = vperm.xlu1 %2810, %v1783_v43  }
 0x7f1   : > { %2812 = vset.pattern.permute.xlu1 %v3007_v27 }
 0x7f2   : > { %1831 = vperm.xlu1 %2812, %v1783_v43  }
 0x859   : > { %v1796_v45 = vpop.permute.xlu1 %1795  ;;  %v1790_v11 = vpop.permute.xlu0 %1789 }
 0x85a   : > { %v1798_v20 = vsel %vm843_vm8, %v1796_v45, 0.0  ;;  %v1792_v23 = vsel %vm835_vm6, %v1790_v11, 0.0  ;;  %vm3797_vm6 = vcmp.eq.s32.totalorder %v3337_v39, 5  ;;  %vm3798_vm8 = vmmov %vm3793_vm15  ;;  %v1839_v3 = vsel %vm896_vm9, %v1796_v45, 0.0 }
 0x85b   : > { %v1799_v46 = vadd.f32 %v1798_v20, %v1792_v23  ;;  %v1837_v4 = vsel %vm893_vm7, %v1790_v11, 0.0  ;;  %vm3803_vm15 = vcmp.eq.s32.totalorder %v3339_v40, 5  ;;  %vm3804_vm9 = vmmov %vm3796_vm4  ;;  %vm2041_vm7 = vcmask 195584  }
 0x85c   : > { %v1840_v7 = vadd.f32 %v1839_v3, %v1837_v4  ;;  %v2152_v3 = vld [vmem:[#allocation7 + $0x8] sm:$0xff]  ;;  %v2151_v4 = vld [vmem:[#allocation7] sm:$0xff]  ;;  %vm2251_vm4 = vcmask 523264  }
 0x85e   : > { %v1802_v26 = vpop.permute.xlu1 %1801  ;;  %v1808_v50 = vpop.permute.xlu0 %1807 }
 0x85f   : > { %v1804_v47 = vsel %vm850_vm10, %v1802_v26, 0.0  ;;  %v1810_v51 = vsel %vm857_vm12, %v1808_v50, 0.0  ;;  %vm3799_vm10 = vmmov %vm3794_vm3  ;;  %vm3800_vm12 = vcmp.eq.s32.totalorder %v3339_v40, 2 }
 0x860   : > { %v1805_v24 = vadd.f32 %v1804_v47, %v1799_v46  ;;  %v1841_v5 = vsel %vm3800_vm12, %v1802_v26, 0.0  ;;  %v2045_v46 = vld [vmem:[#allocation5 + $0x10] sm:$0xff]  ;;  %v2043_v26 = vld [vmem:[#allocation5] sm:$0xff] }
 0x861   : > { %v1842_v39 = vadd.f32 %v1841_v5, %v1840_v7  ;;  %v2243_v5 = vld [vmem:[%s3738_s10 + $0x38] sm:$0xff]  ;;  %v2242_v7 = vld [vmem:[%s3738_s10 + $0x30] sm:$0xff] }
 0x862   : > { %v1811_v52 = vadd.f32 %v1810_v51, %v1805_v24 }
 0x863   : > { %v1814_v27 = vpop.permute.xlu1 %1813  ;;  %v1826_v55 = vpop.permute.xlu0 %1825 }
 0x864   : > { %v1816_v53 = vsel %vm864_vm14, %v1814_v27, 0.0  ;;  %v1828_v59 = vsel %vm3798_vm8, %v1826_v55, 0.0  ;;  %vm3801_vm14 = vcmp.eq.s32.totalorder %v3339_v40, 3  ;;  %v1845_v13 = vsel %vm3802_vm5, %v1814_v27, 0.0 }
 0x865   : > { %v1817_v54 = vadd.f32 %v1816_v53, %v1811_v52  ;;  %v1843_v8 = vsel %vm3801_vm14, %v1808_v50, 0.0  ;;  %v1849_v19 = vsel %vm3804_vm9, %v1826_v55, 0.0 }
 0x866   : > { %v1844_v9 = vadd.f32 %v1843_v8, %v1842_v39  ;;  %v2241_v39 = vld [vmem:[%s3738_s10 + $0x28] sm:$0xff]  ;;  %v2240_v8 = vld [vmem:[%s3738_s10 + $0x20] sm:$0xff] }
 0x868   : > { %v1820_v56 = vpop.permute.xlu1 %1819  ;;  %v1846_v17 = vadd.f32 %v1845_v13, %v1844_v9  ;;  %v2239_v9 = vld [vmem:[%s3738_s10 + $0x18] sm:$0xff] }
 0x869   : > { %v1822_v57 = vsel %vm3797_vm6, %v1820_v56, 0.0  ;;  %v1847_v15 = vsel %vm3803_vm15, %v1820_v56, 0.0  ;;  %v2842_v56 = vld [vmem:[%s3214_s14] sm:$0xff]  ;;  %s2501_s14 = sshll.u32 %s3111_s17, 7  ;;  %s2927_s17 = sshll.u32 %s3014_s8, 4  ;;  %s2928_s17 = int_to_ptr.vmem [resolvable:$false] %s2927_s17 }
 0x86a   : > { %v1823_v58 = vadd.f32 %v1822_v57, %v1817_v54  ;;  %v1848_v18 = vadd.f32 %v1847_v15, %v1846_v17  ;;  %s2368_s25 = scalar_lea.hbm %s3811_s24, %s2501_s14  ;;  %s2929_s22 = scalar_lea.vmem %s2928_s17, 256 }
 0x86b   : > { %p2930_p6 = scmp.lt.s32.totalorder %s2371_s28, %s2928_s17  ;;  %p2931_p12 = scmp.lt.s32.totalorder %s2929_s22, %s2923_s4 }
 0x86c   : > { %v1829_v60 = vadd.f32 %v1828_v59, %v1823_v58  ;;  %v1850_v25 = vadd.f32 %v1849_v19, %v1848_v18  ;;  %v2492_v19 = vld [vmem:[%s3734_s6] ss:$0 sm:$0xff] }
 0x86d   : > { %v1832_v61 = vpop.permute.xlu1 %1831  ;;  %p2932_p7 = por %p2931_p12, %p2930_p6 }
 0x86e   : > { %v1834_v62 = vsel %vm3799_vm10, %v1832_v61, 0.0  ;;  %v1851_v12 = vsel %vm914_vm13, %v1832_v61, 0.0  ;;  %vm3805_vm13 = vcmask 261120  }
 0x86f   : > { %v1835_v63 = vadd.f32 %v1834_v62, %v1829_v60  ;;  %v1852_v30 = vadd.f32 %v1851_v12, %v1850_v25  ;;  %vm3806_vm3 = vmmov %vm3805_vm13  ;;  %v2493_v12 = vld [vmem:[%s3735_s7] ss:$0 sm:$0xff]  ;;  %p2933_p9 = pnand %p2932_p7, %p2926_p2 }
 0x871   : > { %v1836_v1 = vsel %vm3795_vm11, %v1835_v63, -1e+30 }
 0x872   : > { %v1928_v2 = vsel %vm761_vm2, %v1836_v1, -inf }
 0x873   : > { %1929 = vmax.xlane.f32.xlu1 %v1928_v2  ;;  %v2153_v2 = vld [vmem:[#allocation7 + $0x10] sm:$0xff] }
 0x88e   : > { %v1709_v28 = vpop.f32.mrf.mxu0 }
 0x890   : > { %v2639_v29 = vpop.f32.mrf.mxu0 }
 0x892   : > { %v1923_v31 = vpop.f32.mrf.mxu0 }
 0x893   : > { %v1924_v32 = vadd.f32 %v1923_v31, %v1852_v30  ;;  %v2238_v30 = vld [vmem:[%s3738_s10 + $0x10] sm:$0xff]  ;;  %v2237_v31 = vld [vmem:[%s3738_s10 + $0x8] sm:$0xff] }
 0x894   : > { %v2649_v10 = vpop.f32.mrf.mxu0 }
 0x895   : > { %v1927_v14 = vsel %vm751_vm1, %v1924_v32, -1e+30  ;;  %vm2039_vm1 = vcmask 130048   ;;  %v2236_v32 = vld [vmem:[%s3738_s10] sm:$0xff] }
 0x896   : > { %v1931_v21 = vsel %vm761_vm2, %v1927_v14, -inf  ;;  %v2494_v10 = vld [vmem:[%s3737_s9] ss:$0 sm:$0xff] }
 0x897   : > { %1932 = vmax.xlane.f32.xlu0 %v1931_v21 }
 0x8fc   : > { %v1930_v16 = vpop.xlane.xlu1 %1929 }
 0x920   : > { %v1933_v35 = vpop.xlane.xlu0 %1932 }
 0x921   : > { %v1934_v36 = vmax.f32 %v1930_v16, %v1933_v35 }
 0x923   : > { %v1935_v37 = vsub.f32 %v1836_v1, %v1934_v36  ;;  %v1938_v38 = vsub.f32 %v1927_v14, %v1934_v36  ;;  %v2154_v1 = vld [vmem:[#allocation7 + $0x18] sm:$0xff]  ;;  %v2496_v36 = vld [vmem:[%s3739_s11] ss:$0 sm:$0xff] }
 0x925   : > { %v1936_v40 = vmul.f32 1.442695, %v1935_v37  ;;  %v1939_v41 = vmul.f32 1.442695, %v1938_v38 }
 0x927   : > { %2832 = vpow2.f32 %v1936_v40 }
 0x928   : > { %2834 = vpow2.f32 %v1939_v41 }
 0x934   : > { %v2833_v22 = vpop.eup %2832 }
 0x935   : > { %v2835_v42 = vpop.eup %2834  ;;  %v1941_v43 = vsel %vm761_vm2, %v2833_v22, 0.0 }
 0x936   : > { %v1944_v44 = vsel %vm761_vm2, %v2835_v42, 0.0  ;;  %1942 = vadd.xlane.f32.xlu0 %v1941_v43 }
 0x937   : > { %1945 = vadd.xlane.f32.xlu1 %v1944_v44 }
 0x948   : > { %2027 = vrot.lane.b32.xlu1 %v3541_v6, %s3011_s21  ;;  %v2046_v6 = vld [vmem:[#allocation5 + $0x18] sm:$0xff] }
 0x949   : > { %2656 = vmatpush3.msra.mxu0 %v2046_v6 }
 0x94a   : > { %2657 = vmatprep.subr.mxu0 %v2998_v0 }
 0x94b   : > { %2658 = vmatpush3.msra.mxu0 %v2045_v46  ;;  %v2499_v46 = vld [vmem:[%s3741_s13] ss:$0 sm:$0xff] }
 0x94c   : > { %2031 = vrot.lane.b32.xlu1 %v1709_v28, %s3012_s20  ;;  %1950 = vrot.lane.b32.xlu0 %v3409_v48, %s3010_s19  ;;  %v2044_v48 = vld [vmem:[#allocation5 + $0x8] sm:$0xff] }
 0x94d   : > { %2659 = vmatprep.subr.mxu0 %v2998_v0 }
 0x94e   : > { %2660 = vmatpush3.msra.mxu0 %v2044_v48 }
 0x94f   : > { %2661 = vmatprep.subr.mxu0 %v2998_v0 }
 0x950   : > { %2662 = vmatpush3.msra.mxu0 %v2043_v26 }
 0x951   : > { %2677 = vmatprep.subr.mxu0 %v2998_v0 }
 0x9bf   : > { %v1943_v33 = vpop.xlane.xlu0 %1942 }
 0x9c0   : > { %v1946_v34 = vpop.xlane.xlu1 %1945 }
 0x9c1   : > { %v1947_v45 = vadd.f32 %v1946_v34, %v1943_v33 }
 0x9c3   : > { %2836 = vrcp.f32 %v1947_v45  ;;  %v1951_v11 = vpop.permute.xlu0 %1950 }
 0x9c4   : > { %2651 = vmatpush3.msra.mxu1 %v1951_v11  ;;  %v2028_v50 = vpop.permute.xlu1 %2027 }
 0x9c5   : > { %2666 = vmatprep.subr.mxu1 %v2998_v0  ;;  %v2038_v27 = vsel %vm761_vm2, %v3471_v49, %v2028_v50 }
 0x9c8   : > { %v2032_v51 = vpop.permute.xlu1 %2031 }
 0x9c9   : > { %v2040_v52 = vsel %vm2039_vm1, %v2038_v27, %v2032_v51 }
 0x9d0   : > { %v2837_v20 = vpop.eup %2836 }
 0x9d1   : > { %v1949_v23 = vmul.f32 %v2837_v20, %v2835_v42 }
 0x9d3   : > { %2653 = vmatmul.mubr.msk.f32.vlgmr.msra.gmra.mxu1 %vm761_vm2, %v1949_v23  ;;  %vm3807_vm2 = vmmov %vm3806_vm3  ;;  %v2498_v23 = vld [vmem:[%s3740_s12] ss:$0 sm:$0xff] }
 0x9d4   : > { %2674 = vmatprep.mubr.msk.f32.mxu1 %vm2999_vm0, %v2998_v0  ;;  %2667 = vmatpush3.msra.mxu1 %v2154_v1 }
 0x9d5   : > { %2668 = vmatprep.subr.mxu1 %v2998_v0 }
 0x9d6   : > { %2669 = vmatpush3.msra.mxu1 %v2153_v2 }
 0x9d7   : > { %2670 = vmatprep.subr.mxu1 %v2998_v0 }
 0x9d8   : > { %2671 = vmatpush3.msra.mxu1 %v2152_v3 }
 0x9d9   : > { %2672 = vmatprep.subr.mxu1 %v2998_v0 }
 0x9da   : > { %2673 = vmatpush3.msra.mxu1 %v2151_v4 }
 0xa93   : > { %v2022_v47 = vpop.f32.mrf.mxu1 }
 0xa94   : > { %2035 = vrot.lane.b32.xlu0 %v2022_v47, %s3013_s23 }
 0xa95   : > { %v2654_v24 = vpop.f32.mrf.mxu1 }
 0xb06   : > { %v2036_v53 = vpop.permute.xlu0 %2035 }
 0xb07   : > { %v2042_v54 = vsel %vm2041_vm7, %v2040_v52, %v2036_v53 }
 0xb08   : > { %2664 = vmatmul.mubr.msk.f32.vlgmr.msra.gmra.mxu0 %vm3805_vm13, %v2042_v54 }
 0xb09   : > { %2693 = vmatprep.mubr.msk.f32.mxu0 %vm2999_vm0, %v2998_v0  ;;  %2678 = vmatpush3.msra.mxu0 %v2243_v5  ;;  %vm3808_vm0 = vmmov %vm3807_vm2 }
 0xb0a   : > { %2679 = vmatprep.subr.mxu0 %v2998_v0  ;;  %vm3809_vm6 = vmmov %vm3808_vm0 }
 0xb0b   : > { %2680 = vmatpush3.msra.mxu0 %v2242_v7  ;;  %vm3810_vm8 = vmmov %vm3808_vm0 }
 0xb0c   : > { %2681 = vmatprep.subr.mxu0 %v2998_v0  ;;  %vm3812_vm10 = vmmov %vm3808_vm0 }
 0xb0d   : > { %2682 = vmatpush3.msra.mxu0 %v2241_v39 }
 0xb0e   : > { %2683 = vmatprep.subr.mxu0 %v2998_v0 }
 0xb0f   : > { %2684 = vmatpush3.msra.mxu0 %v2240_v8 }
 0xb10   : > { %2685 = vmatprep.subr.mxu0 %v2998_v0 }
 0xb11   : > { %2686 = vmatpush3.msra.mxu0 %v2239_v9 }
 0xb12   : > { %2687 = vmatprep.subr.mxu0 %v2998_v0 }
 0xb13   : > { %2688 = vmatpush3.msra.mxu0 %v2238_v30 }
 0xb14   : > { %2689 = vmatprep.subr.mxu0 %v2998_v0 }
 0xb15   : > { %2690 = vmatpush3.msra.mxu0 %v2237_v31 }
 0xb16   : > { %2691 = vmatprep.subr.mxu0 %v2998_v0 }
 0xb17   : > { %2692 = vmatpush3.msra.mxu0 %v2236_v32 }
 0xbc8   : > { %v2116_v55 = vpop.f32.mrf.mxu0 }
 0xbc9   : > { %v2120_v57 = vadd.f32 %v2842_v56, %v2116_v55 }
 0xbca   : > { %v2665_v58 = vpop.f32.mrf.mxu0 }
 0xbcb   : > { %v2123_v59 = vsel %vm3806_vm3, %v2120_v57, 0.0 }
 0xbcc   : > { %2124 = vadd.xlane.f32.xlu1 %v2123_v59 }
 0xc55   : > { %v2125_v60 = vpop.xlane.xlu1 %2124 }
 0xc56   : > { %v2127_v61 = vmul.f32 0.03125, %v2125_v60 }
 0xc58   : > { %v2128_v62 = vsub.f32 %v2120_v57, %v2127_v61 }
 0xc5a   : > { %v2129_v63 = vmul.f32 %v2128_v62, %v2128_v62 }
 0xc5c   : > { %v2130_v49 = vsel %vm3807_vm2, %v2129_v63, 0.0 }
 0xc5d   : > { %2131 = vadd.xlane.f32.xlu0 %v2130_v49 }
 0xce6   : > { %v2132_v13 = vpop.xlane.xlu0 %2131 }
 0xce7   : > { %v2133_v15 = vmul.f32 0.03125, %v2132_v13 }
 0xce9   : > { %v2134_v17 = vadd.f32 1e-05, %v2133_v15 }
 0xceb   : > { %2838 = vrsqrt.f32 %v2134_v17 }
 0xcf8   : > { %v2839_v18 = vpop.eup %2838 }
 0xcf9   : > { %v2136_v25 = vmul.f32 %v2839_v18, %v2128_v62 }
 0xcfb   : > { %v2143_v28 = vmul.f32 %v2492_v19, %v2136_v25 }
 0xcfd   : > { %v2150_v29 = vadd.f32 %v2493_v12, %v2143_v28 }
 0xcff   : > { %2675 = vmatmul.mubr.msk.f32.vlgmr.msra.gmra.mxu1 %vm3808_vm0, %v2150_v29 }
 0xdbf   : > { %v2231_v14 = vpop.f32.mrf.mxu1 }
 0xdc0   : > { %v2232_v21 = vadd.f32 %v2494_v10, %v2231_v14 }
 0xdc1   : > { %v2676_v16 = vpop.f32.mrf.mxu1 }
 0xdc2   : > { %v2235_v35 = vmax.f32 %v2232_v21, 0.0 }
 0xdc4   : > { %2694 = vmatmul.mubr.msk.f32.vlgmr.msra.gmra.mxu0 %vm2251_vm4, %v2235_v35 }
 0xe84   : > { %v2321_v0 = vpop.f32.mrf.mxu0 }
 0xe85   : > { %v2322_v37 = vadd.f32 %v2496_v36, %v2321_v0 }
 0xe86   : > { %v2695_v38 = vpop.f32.mrf.mxu0 }
 0xe87   : > { %v2325_v40 = vadd.f32 %v2322_v37, %v2150_v29 }
 0xe89   : > { %v2328_v41 = vsel %vm3809_vm6, %v2325_v40, 0.0 }
 0xe8a   : > { %2329 = vadd.xlane.f32.xlu0 %v2328_v41 }
 0xf13   : > { %v2330_v22 = vpop.xlane.xlu0 %2329 }
 0xf14   : > { %v2331_v42 = vmul.f32 0.03125, %v2330_v22 }
 0xf16   : > { %v2332_v43 = vsub.f32 %v2325_v40, %v2331_v42 }
 0xf18   : > { %v2333_v44 = vmul.f32 %v2332_v43, %v2332_v43 }
 0xf1a   : > { %v2334_v33 = vsel %vm3810_vm8, %v2333_v44, 0.0 }
 0xf1b   : > { %2335 = vadd.xlane.f32.xlu1 %v2334_v33 }
 0xfa4   : > { %v2336_v34 = vpop.xlane.xlu1 %2335 }
 0xfa5   : > { %v2337_v45 = vmul.f32 0.03125, %v2336_v34 }
 0xfa7   : > { %v2338_v11 = vadd.f32 1e-05, %v2337_v45 }
 0xfa9   : > { %2840 = vrsqrt.f32 %v2338_v11 }
 0xfb6   : > { %v2841_v20 = vpop.eup %2840 }
 0xfb7   : > { %v2340_v6 = vmul.f32 %v2841_v20, %v2332_v43 }
 0xfb9   : > { %v2347_v48 = vmul.f32 %v2498_v23, %v2340_v6 }
 0xfbb   : > { %v2354_v26 = vadd.f32 %v2499_v46, %v2347_v48 }
 0xfbd   : > { %2355 = vst.msk [vmem:[%s511_s26] sm:$0xff] %vm3812_vm10, %v2354_v26 }
 0xfbe   : > { %2936 = shalt.err (!%p2933_p9)
}
 0xfbf   : > { %s2937_s19 = scalar_lea.hbm %s2368_s25, 128  ;;  %s2941_s20 = scalar_lea.hbm %s3811_s24, 256 }
 0xfc0   : > { %p2938_p13 = scmp.ne.s32.totalorder %s2368_s25, %s2937_s19  ;;  %p2942_p4 = scmp.lt.s32.totalorder %s2368_s25, %s3811_s24 }
 0xfc1   : > { %p2943_p8 = scmp.lt.s32.totalorder %s2941_s20, %s2937_s19 }
 0xfc2   : > { %p2939_p5 = pnand %p2938_p13, %p3813_p0 }
 0xfc3   : > { %p2944_p3 = por %p2943_p8, %p2942_p4 }
 0xfc4   : > { %p2940_p10 = pneg %p2939_p5 }
 0xfc6   : > { %p2945_p11 = pnand %p2944_p3, %p2940_p10 }
 0xfc8   : > { %2948 = shalt.err (!%p2945_p11)
}
 0xfc9   : > { %2706 = dma.vmem_to_hbm [thread:$0]  (%p3813_p0), %s2371_s28, 128, %s2368_s25, %s2357_s16  }
 0xfca PF: > { %s3814_s26 = sld [smem:[#allocation12_spill]] }
 0xfcb   : > { %s3815_s18 = sld [smem:[#allocation15_spill]] }
 0xfcc   : > { %s3816_s27 = sld [smem:[#allocation14_spill]] }
 0xfd0   : > { %s2382_s4 = sand.u32 1, %s3814_s26  }
 0xfd1   : > { %p3817_p1 = scmp.ne.s32.totalorder %s3815_s18, 0  ;;  %s2383_s8 = scalar_lea.sflag [#allocation4], %s2382_s4 }
 0xfd2   : > { %p3818_p2 = scmp.ge.s32.totalorder %s3816_s27, 2 }
 0xfd4   : > { %p2720_p6 = pnand %p3818_p2, %p3817_p1 }
 0xfd6   : > { %p2721_p12 = pneg %p2720_p6 }
 0xfd8   : > { %2974 = dma.done.wait (%p2721_p12), %s2383_s8, 128  }
 0xfd9   : > { %2976 = vsyncadd (%p2721_p12), %s2383_s8, 4294967168  ;;  %s3819_s16 = sld [smem:[#allocation16_spill]]  ;;  %s3822_s29 = smov %s2983_s30 }
 0xfda   : > { %s3820_s17 = sld [smem:[#allocation13_spill]] }
 0xfdb   : > { %s3821_s15 = sld [smem:[#allocation17_spill]] }
 0xfdf   : > { %p28_p7 = scmp.ge.s32.totalorder %s3819_s16, 4  }
 0xfe0   : > { %s3823_s30 = smov %s3820_s17 }
 0xfe1   :  { %30 = sbr.rel (!%p28_p7) target bundleno = 10 (0xa), region = 129 }
 0xfe6   :  { %2388 = vsyncpa [#allocation3], 1 }
 0xfe7   :  { %2390 = vsyncpa [#allocation3 + $0x1], 1 }
 0xfe8   :  { %2391 = vsyncpa [#allocation6], 1 }
 0xfe9   :  { %2392 = vsyncpa [#allocation4], 1 }
 0xfea   :  { %2394 = vsyncpa [#allocation4 + $0x1], 1 }

</bundles_post_ra>
